<compile_context>
chip_gen: v5e
topology: v5e:2x2
jax: 0.10.0
libtpu: 0.0.40
codegen_flags: <defaults>
</compile_context>

<pallas_src>
import functools
import math

import numpy as np
import jax
import jax.numpy as jnp
from jax.experimental import pallas as pl
from jax.experimental.pallas import tpu as pltpu

# Resonator constants (Resonator(beta=-1.0, freq=10.0, dt=0.01, rest=0.0))
_BETA = -1.0
_FREQ = 10.0
_DT = 0.01
_LANES = 128


def _emit_steps(carry, pattern, drives, c1, c2):
    """Emit len(pattern) resonator steps as straight-line code.

    carry = (rc, im) where rc is the PRE-reset real part: the spike reset of
    step t is folded into step t+1's update, shortening the carried chain:
        r_t  = 0 if im_t > 0 else rc_t
        im'  = c2*r_t + c1*im_t
        rc'  = c1*r_t - c2*im_t + drive_t
    `pattern` is a trace-time tuple of (inpOn[t], inpOff[t]) Python floats;
    `drives` maps each nonzero pattern to its hoisted dt*inp vector.
    """
    rc, im = carry
    for key in pattern:
        pos = im > 0.0
        ci = c1 * im                       # shared across both select branches
        cr = c2 * rc
        nci = (-c2) * im
        c1rc = c1 * rc
        new_im = jnp.where(pos, ci, ci + cr)
        new_rc = jnp.where(pos, nci, c1rc + nci)
        if key != (0.0, 0.0):              # drive fires on ~3% of steps only
            new_rc = new_rc + drives[key]
        rc, im = new_rc, new_im
    return rc, im


def _ornet_kernel(x1_ref, x2_ref, out_ref, *, c1, c2, dt,
                  prologue, period, epilogue, n_blocks):
    """x1_ref, x2_ref, out_ref: (R, 128) f32 VMEM. out = final mem.imag."""
    shape = out_ref.shape

    # Hoisted per-lane drive vectors (one per distinct nonzero schedule value):
    #   inp[b, t] = c[b]*inpOn[t] + (2 - c[b])*inpOff[t],  c[b] = #{x[b] > 0}
    # dt is folded in so drives[p] is already dt * inp.
    nonzero = sorted({p for p in (tuple(prologue) + tuple(period) + tuple(epilogue))
                      if p != (0.0, 0.0)})
    drives = {}
    if nonzero:
        cnt = ((x1_ref[...] > 0).astype(jnp.float32)
               + (x2_ref[...] > 0).astype(jnp.float32))
        a = dt * cnt             # coefficient of inpOn[t]
        b = dt * (2.0 - cnt)     # coefficient of inpOff[t]
        for on_v, off_v in nonzero:
            drives[(on_v, off_v)] = a * on_v + b * off_v

    zeros = jnp.zeros(shape, jnp.float32)
    carry = (zeros, zeros)                      # (rc, im) at the first kept step

    # Straight-line prologue: first drive event up to the start of the periodic
    # region (all earlier steps keep mem exactly at rest == 0 and are skipped).
    carry = _emit_steps(carry, prologue, drives, c1, c2)

    # Steady state: n_blocks full periods, each period unrolled inside the body.
    if n_blocks > 0 and len(period) > 0:
        def block_body(_, c):
            return _emit_steps(c, period, drives, c1, c2)
        carry = jax.lax.fori_loop(0, n_blocks, block_body, carry)

    # Straight-line epilogue (remaining < one period of steps).
    carry = _emit_steps(carry, epilogue, drives, c1, c2)

    out_ref[...] = carry[1]                     # final mem.imag


def ornet_forward(x1, x2, *, freq_on=64, freq_off=32, scale=20.0, T=1000):
    """JAX/Pallas equivalent of OrNet.forward; returns mem.imag, shape (B,)."""
    B = x1.shape[0]
    R = max(1, (B + _LANES - 1) // _LANES)      # (sublane, lane) batch tiles
    B_pad = R * _LANES

    # Drive schedules built with numpy at trace time; they enter the kernel
    # only as baked-in Python constants (no SMEM inputs, no device scatters).
    on = np.zeros((T,), np.float64)
    off = np.zeros((T,), np.float64)
    if freq_on < T:
        on[freq_on::freq_on] = scale
    if freq_off < T:
        off[freq_off::freq_off] = scale
    pattern = [(float(on[t]), float(off[t])) for t in range(T)]

    nz = [t for t, p in enumerate(pattern) if p != (0.0, 0.0)]
    if nz:
        t_first = nz[0]                      # steps [0, t_first) keep mem == 0
        P = math.lcm(max(freq_on, 1), max(freq_off, 1))
        steady = min(P, T)                   # pattern is P-periodic for t >= P
        prologue = tuple(pattern[t_first:steady])
        n_blocks = max(0, (T - steady) // P) if steady < T else 0
        period = tuple(pattern[steady:steady + P]) if n_blocks > 0 else ()
        epi_start = steady + n_blocks * P
        epilogue = tuple(pattern[epi_start:T])
    else:
        prologue = period = epilogue = ()
        n_blocks = 0

    x1p = jnp.zeros((B_pad,), jnp.float32).at[:B].set(
        jnp.asarray(x1, jnp.float32)).reshape(R, _LANES)
    x2p = jnp.zeros((B_pad,), jnp.float32).at[:B].set(
        jnp.asarray(x2, jnp.float32)).reshape(R, _LANES)

    kernel = functools.partial(
        _ornet_kernel,
        c1=float(1.0 + _DT * _BETA),         # 0.99
        c2=float(_DT * _FREQ),               # 0.1
        dt=float(_DT),
        prologue=prologue, period=period, epilogue=epilogue, n_blocks=n_blocks)

    out = pl.pallas_call(
        kernel,
        out_shape=jax.ShapeDtypeStruct((R, _LANES), jnp.float32),
        in_specs=[
            pl.BlockSpec(memory_space=pltpu.MemorySpace.VMEM),   # x1 (R, 128)
            pl.BlockSpec(memory_space=pltpu.MemorySpace.VMEM),   # x2 (R, 128)
        ],
        out_specs=pl.BlockSpec(memory_space=pltpu.MemorySpace.VMEM),
    )(x1p, x2p)
    return out.reshape(B_pad)[:B]


def _ornet_reference(x1, x2, *, freq_on=64, freq_off=32, scale=20.0, T=1000):
    """Plain numpy reference mirroring the PyTorch loop (for verification)."""
    x1 = np.asarray(x1, np.float32)
    x2 = np.asarray(x2, np.float32)
    B = x1.shape[0]
    inp_on = np.zeros((T,), np.float32)
    inp_on[freq_on::freq_on] = scale
    inp_off = np.zeros((T,), np.float32)
    inp_off[freq_off::freq_off] = scale

    z = np.zeros((B, T), np.float32)
    for x in (x1, x2):
        for b in range(B):
            z[b, :] += inp_on if x[b] > 0 else inp_off

    mem = np.zeros((B,), np.complex64)
    params = np.complex64(_BETA + 1j * _FREQ)
    for t in range(T):
        mem = mem + np.float32(_DT) * (params * mem + z[:, t])
        spk = (mem.imag > 0).astype(np.float32)
        mem = (mem.real * (1.0 - spk)) + 1j * mem.imag
        mem = mem.astype(np.complex64)
    return mem.imag.astype(np.float32)


if __name__ == "__main__":
    B = 4
    T = 1000  # module default
    key = jax.random.PRNGKey(0)
    k1, k2 = jax.random.split(key)
    # Per-batch scalar "inputs" whose sign selects inpOn vs inpOff.
    x1 = jax.random.normal(k1, (B,), dtype=jnp.float32)
    x2 = jax.random.normal(k2, (B,), dtype=jnp.float32)

    out = ornet_forward(x1, x2, T=T)
    out = jax.block_until_ready(out)

    ref = _ornet_reference(np.asarray(x1), np.asarray(x2), T=T)
    np.testing.assert_allclose(np.asarray(out), ref, rtol=1e-4, atol=1e-4)

    print("KERNEL_OK")
</pallas_src>

<mosaic_0001>
module attributes {stable_mosaic.version = 11 : i64} {
  func.func @_ornet_kernel(%arg0: memref<1x128xf32, #tpu.memory_space<vmem>>, %arg1: memref<1x128xf32, #tpu.memory_space<vmem>>, %arg2: memref<1x128xf32, #tpu.memory_space<vmem>>) attributes {dimension_semantics = [], scalar_prefetch = 0 : i64, scratch_operands = 0 : i64, tpu.core_type = #tpu.core_type<tc>} {
    %c0 = arith.constant 0 : index
    %c0_0 = arith.constant 0 : index
    %0 = vector.load %arg0[%c0, %c0_0] : memref<1x128xf32, #tpu.memory_space<vmem>>, vector<1x128xf32>
    %cst = arith.constant 0.000000e+00 : f32
    %1 = vector.broadcast %cst : f32 to vector<1x128xf32>
    %2 = arith.cmpf ogt, %0, %1 : vector<1x128xf32>
    %3 = arith.extui %2 : vector<1x128xi1> to vector<1x128xi32>
    %4 = arith.sitofp %3 : vector<1x128xi32> to vector<1x128xf32>
    %c0_1 = arith.constant 0 : index
    %c0_2 = arith.constant 0 : index
    %5 = vector.load %arg1[%c0_1, %c0_2] : memref<1x128xf32, #tpu.memory_space<vmem>>, vector<1x128xf32>
    %cst_3 = arith.constant 0.000000e+00 : f32
    %6 = vector.broadcast %cst_3 : f32 to vector<1x128xf32>
    %7 = arith.cmpf ogt, %5, %6 : vector<1x128xf32>
    %8 = arith.extui %7 : vector<1x128xi1> to vector<1x128xi32>
    %9 = arith.sitofp %8 : vector<1x128xi32> to vector<1x128xf32>
    %10 = arith.addf %4, %9 : vector<1x128xf32>
    %cst_4 = arith.constant 0.00999999977 : f32
    %11 = vector.broadcast %cst_4 : f32 to vector<1x128xf32>
    %12 = arith.mulf %11, %10 : vector<1x128xf32>
    %cst_5 = arith.constant 2.000000e+00 : f32
    %13 = vector.broadcast %cst_5 : f32 to vector<1x128xf32>
    %14 = arith.subf %13, %10 : vector<1x128xf32>
    %cst_6 = arith.constant 0.00999999977 : f32
    %15 = vector.broadcast %cst_6 : f32 to vector<1x128xf32>
    %16 = arith.mulf %15, %14 : vector<1x128xf32>
    %cst_7 = arith.constant 0.000000e+00 : f32
    %17 = vector.broadcast %cst_7 : f32 to vector<1x128xf32>
    %18 = arith.mulf %12, %17 : vector<1x128xf32>
    %cst_8 = arith.constant 2.000000e+01 : f32
    %19 = vector.broadcast %cst_8 : f32 to vector<1x128xf32>
    %20 = arith.mulf %16, %19 : vector<1x128xf32>
    %21 = arith.addf %18, %20 : vector<1x128xf32>
    %cst_9 = arith.constant 2.000000e+01 : f32
    %22 = vector.broadcast %cst_9 : f32 to vector<1x128xf32>
    %23 = arith.mulf %12, %22 : vector<1x128xf32>
    %cst_10 = arith.constant 2.000000e+01 : f32
    %24 = vector.broadcast %cst_10 : f32 to vector<1x128xf32>
    %25 = arith.mulf %16, %24 : vector<1x128xf32>
    %26 = arith.addf %23, %25 : vector<1x128xf32>
    %cst_11 = arith.constant 0.000000e+00 : f32
    %27 = vector.broadcast %cst_11 : f32 to vector<1x128xf32>
    %cst_12 = arith.constant 0.000000e+00 : f32
    %28 = vector.broadcast %cst_12 : f32 to vector<1x128xf32>
    %29 = arith.cmpf ogt, %27, %28 : vector<1x128xf32>
    %cst_13 = arith.constant 9.900000e-01 : f32
    %30 = vector.broadcast %cst_13 : f32 to vector<1x128xf32>
    %31 = arith.mulf %30, %27 : vector<1x128xf32>
    %cst_14 = arith.constant 1.000000e-01 : f32
    %32 = vector.broadcast %cst_14 : f32 to vector<1x128xf32>
    %33 = arith.mulf %32, %27 : vector<1x128xf32>
    %cst_15 = arith.constant -1.000000e-01 : f32
    %34 = vector.broadcast %cst_15 : f32 to vector<1x128xf32>
    %35 = arith.mulf %34, %27 : vector<1x128xf32>
    %cst_16 = arith.constant 9.900000e-01 : f32
    %36 = vector.broadcast %cst_16 : f32 to vector<1x128xf32>
    %37 = arith.mulf %36, %27 : vector<1x128xf32>
    %38 = arith.addf %31, %33 : vector<1x128xf32>
    %39 = arith.select %29, %31, %38 : vector<1x128xi1>, vector<1x128xf32>
    %40 = arith.addf %37, %35 : vector<1x128xf32>
    %41 = arith.select %29, %35, %40 : vector<1x128xi1>, vector<1x128xf32>
    %42 = arith.addf %41, %21 : vector<1x128xf32>
    %cst_17 = arith.constant 0.000000e+00 : f32
    %43 = vector.broadcast %cst_17 : f32 to vector<1x128xf32>
    %44 = arith.cmpf ogt, %39, %43 : vector<1x128xf32>
    %cst_18 = arith.constant 9.900000e-01 : f32
    %45 = vector.broadcast %cst_18 : f32 to vector<1x128xf32>
    %46 = arith.mulf %45, %39 : vector<1x128xf32>
    %cst_19 = arith.constant 1.000000e-01 : f32
    %47 = vector.broadcast %cst_19 : f32 to vector<1x128xf32>
    %48 = arith.mulf %47, %42 : vector<1x128xf32>
    %cst_20 = arith.constant -1.000000e-01 : f32
    %49 = vector.broadcast %cst_20 : f32 to vector<1x128xf32>
    %50 = arith.mulf %49, %39 : vector<1x128xf32>
    %cst_21 = arith.constant 9.900000e-01 : f32
    %51 = vector.broadcast %cst_21 : f32 to vector<1x128xf32>
    %52 = arith.mulf %51, %42 : vector<1x128xf32>
    %53 = arith.addf %46, %48 : vector<1x128xf32>
    %54 = arith.select %44, %46, %53 : vector<1x128xi1>, vector<1x128xf32>
    %55 = arith.addf %52, %50 : vector<1x128xf32>
    %56 = arith.select %44, %50, %55 : vector<1x128xi1>, vector<1x128xf32>
    %cst_22 = arith.constant 0.000000e+00 : f32
    %57 = vector.broadcast %cst_22 : f32 to vector<1x128xf32>
    %58 = arith.cmpf ogt, %54, %57 : vector<1x128xf32>
    %cst_23 = arith.constant 9.900000e-01 : f32
    %59 = vector.broadcast %cst_23 : f32 to vector<1x128xf32>
    %60 = arith.mulf %59, %54 : vector<1x128xf32>
    %cst_24 = arith.constant 1.000000e-01 : f32
    %61 = vector.broadcast %cst_24 : f32 to vector<1x128xf32>
    %62 = arith.mulf %61, %56 : vector<1x128xf32>
    %cst_25 = arith.constant -1.000000e-01 : f32
    %63 = vector.broadcast %cst_25 : f32 to vector<1x128xf32>
    %64 = arith.mulf %63, %54 : vector<1x128xf32>
    %cst_26 = arith.constant 9.900000e-01 : f32
    %65 = vector.broadcast %cst_26 : f32 to vector<1x128xf32>
    %66 = arith.mulf %65, %56 : vector<1x128xf32>
    %67 = arith.addf %60, %62 : vector<1x128xf32>
    %68 = arith.select %58, %60, %67 : vector<1x128xi1>, vector<1x128xf32>
    %69 = arith.addf %66, %64 : vector<1x128xf32>
    %70 = arith.select %58, %64, %69 : vector<1x128xi1>, vector<1x128xf32>
    %cst_27 = arith.constant 0.000000e+00 : f32
    %71 = vector.broadcast %cst_27 : f32 to vector<1x128xf32>
    %72 = arith.cmpf ogt, %68, %71 : vector<1x128xf32>
    %cst_28 = arith.constant 9.900000e-01 : f32
    %73 = vector.broadcast %cst_28 : f32 to vector<1x128xf32>
    %74 = arith.mulf %73, %68 : vector<1x128xf32>
    %cst_29 = arith.constant 1.000000e-01 : f32
    %75 = vector.broadcast %cst_29 : f32 to vector<1x128xf32>
    %76 = arith.mulf %75, %70 : vector<1x128xf32>
    %cst_30 = arith.constant -1.000000e-01 : f32
    %77 = vector.broadcast %cst_30 : f32 to vector<1x128xf32>
    %78 = arith.mulf %77, %68 : vector<1x128xf32>
    %cst_31 = arith.constant 9.900000e-01 : f32
    %79 = vector.broadcast %cst_31 : f32 to vector<1x128xf32>
    %80 = arith.mulf %79, %70 : vector<1x128xf32>
    %81 = arith.addf %74, %76 : vector<1x128xf32>
    %82 = arith.select %72, %74, %81 : vector<1x128xi1>, vector<1x128xf32>
    %83 = arith.addf %80, %78 : vector<1x128xf32>
    %84 = arith.select %72, %78, %83 : vector<1x128xi1>, vector<1x128xf32>
    %cst_32 = arith.constant 0.000000e+00 : f32
    %85 = vector.broadcast %cst_32 : f32 to vector<1x128xf32>
    %86 = arith.cmpf ogt, %82, %85 : vector<1x128xf32>
    %cst_33 = arith.constant 9.900000e-01 : f32
    %87 = vector.broadcast %cst_33 : f32 to vector<1x128xf32>
    %88 = arith.mulf %87, %82 : vector<1x128xf32>
    %cst_34 = arith.constant 1.000000e-01 : f32
    %89 = vector.broadcast %cst_34 : f32 to vector<1x128xf32>
    %90 = arith.mulf %89, %84 : vector<1x128xf32>
    %cst_35 = arith.constant -1.000000e-01 : f32
    %91 = vector.broadcast %cst_35 : f32 to vector<1x128xf32>
    %92 = arith.mulf %91, %82 : vector<1x128xf32>
    %cst_36 = arith.constant 9.900000e-01 : f32
    %93 = vector.broadcast %cst_36 : f32 to vector<1x128xf32>
    %94 = arith.mulf %93, %84 : vector<1x128xf32>
    %95 = arith.addf %88, %90 : vector<1x128xf32>
    %96 = arith.select %86, %88, %95 : vector<1x128xi1>, vector<1x128xf32>
    %97 = arith.addf %94, %92 : vector<1x128xf32>
    %98 = arith.select %86, %92, %97 : vector<1x128xi1>, vector<1x128xf32>
    %cst_37 = arith.constant 0.000000e+00 : f32
    %99 = vector.broadcast %cst_37 : f32 to vector<1x128xf32>
    %100 = arith.cmpf ogt, %96, %99 : vector<1x128xf32>
    %cst_38 = arith.constant 9.900000e-01 : f32
    %101 = vector.broadcast %cst_38 : f32 to vector<1x128xf32>
    %102 = arith.mulf %101, %96 : vector<1x128xf32>
    %cst_39 = arith.constant 1.000000e-01 : f32
    %103 = vector.broadcast %cst_39 : f32 to vector<1x128xf32>
    %104 = arith.mulf %103, %98 : vector<1x128xf32>
    %cst_40 = arith.constant -1.000000e-01 : f32
    %105 = vector.broadcast %cst_40 : f32 to vector<1x128xf32>
    %106 = arith.mulf %105, %96 : vector<1x128xf32>
    %cst_41 = arith.constant 9.900000e-01 : f32
    %107 = vector.broadcast %cst_41 : f32 to vector<1x128xf32>
    %108 = arith.mulf %107, %98 : vector<1x128xf32>
    %109 = arith.addf %102, %104 : vector<1x128xf32>
    %110 = arith.select %100, %102, %109 : vector<1x128xi1>, vector<1x128xf32>
    %111 = arith.addf %108, %106 : vector<1x128xf32>
    %112 = arith.select %100, %106, %111 : vector<1x128xi1>, vector<1x128xf32>
    %cst_42 = arith.constant 0.000000e+00 : f32
    %113 = vector.broadcast %cst_42 : f32 to vector<1x128xf32>
    %114 = arith.cmpf ogt, %110, %113 : vector<1x128xf32>
    %cst_43 = arith.constant 9.900000e-01 : f32
    %115 = vector.broadcast %cst_43 : f32 to vector<1x128xf32>
    %116 = arith.mulf %115, %110 : vector<1x128xf32>
    %cst_44 = arith.constant 1.000000e-01 : f32
    %117 = vector.broadcast %cst_44 : f32 to vector<1x128xf32>
    %118 = arith.mulf %117, %112 : vector<1x128xf32>
    %cst_45 = arith.constant -1.000000e-01 : f32
    %119 = vector.broadcast %cst_45 : f32 to vector<1x128xf32>
    %120 = arith.mulf %119, %110 : vector<1x128xf32>
    %cst_46 = arith.constant 9.900000e-01 : f32
    %121 = vector.broadcast %cst_46 : f32 to vector<1x128xf32>
    %122 = arith.mulf %121, %112 : vector<1x128xf32>
    %123 = arith.addf %116, %118 : vector<1x128xf32>
    %124 = arith.select %114, %116, %123 : vector<1x128xi1>, vector<1x128xf32>
    %125 = arith.addf %122, %120 : vector<1x128xf32>
    %126 = arith.select %114, %120, %125 : vector<1x128xi1>, vector<1x128xf32>
    %cst_47 = arith.constant 0.000000e+00 : f32
    %127 = vector.broadcast %cst_47 : f32 to vector<1x128xf32>
    %128 = arith.cmpf ogt, %124, %127 : vector<1x128xf32>
    %cst_48 = arith.constant 9.900000e-01 : f32
    %129 = vector.broadcast %cst_48 : f32 to vector<1x128xf32>
    %130 = arith.mulf %129, %124 : vector<1x128xf32>
    %cst_49 = arith.constant 1.000000e-01 : f32
    %131 = vector.broadcast %cst_49 : f32 to vector<1x128xf32>
    %132 = arith.mulf %131, %126 : vector<1x128xf32>
    %cst_50 = arith.constant -1.000000e-01 : f32
    %133 = vector.broadcast %cst_50 : f32 to vector<1x128xf32>
    %134 = arith.mulf %133, %124 : vector<1x128xf32>
    %cst_51 = arith.constant 9.900000e-01 : f32
    %135 = vector.broadcast %cst_51 : f32 to vector<1x128xf32>
    %136 = arith.mulf %135, %126 : vector<1x128xf32>
    %137 = arith.addf %130, %132 : vector<1x128xf32>
    %138 = arith.select %128, %130, %137 : vector<1x128xi1>, vector<1x128xf32>
    %139 = arith.addf %136, %134 : vector<1x128xf32>
    %140 = arith.select %128, %134, %139 : vector<1x128xi1>, vector<1x128xf32>
    %cst_52 = arith.constant 0.000000e+00 : f32
    %141 = vector.broadcast %cst_52 : f32 to vector<1x128xf32>
    %142 = arith.cmpf ogt, %138, %141 : vector<1x128xf32>
    %cst_53 = arith.constant 9.900000e-01 : f32
    %143 = vector.broadcast %cst_53 : f32 to vector<1x128xf32>
    %144 = arith.mulf %143, %138 : vector<1x128xf32>
    %cst_54 = arith.constant 1.000000e-01 : f32
    %145 = vector.broadcast %cst_54 : f32 to vector<1x128xf32>
    %146 = arith.mulf %145, %140 : vector<1x128xf32>
    %cst_55 = arith.constant -1.000000e-01 : f32
    %147 = vector.broadcast %cst_55 : f32 to vector<1x128xf32>
    %148 = arith.mulf %147, %138 : vector<1x128xf32>
    %cst_56 = arith.constant 9.900000e-01 : f32
    %149 = vector.broadcast %cst_56 : f32 to vector<1x128xf32>
    %150 = arith.mulf %149, %140 : vector<1x128xf32>
    %151 = arith.addf %144, %146 : vector<1x128xf32>
    %152 = arith.select %142, %144, %151 : vector<1x128xi1>, vector<1x128xf32>
    %153 = arith.addf %150, %148 : vector<1x128xf32>
    %154 = arith.select %142, %148, %153 : vector<1x128xi1>, vector<1x128xf32>
    %cst_57 = arith.constant 0.000000e+00 : f32
    %155 = vector.broadcast %cst_57 : f32 to vector<1x128xf32>
    %156 = arith.cmpf ogt, %152, %155 : vector<1x128xf32>
    %cst_58 = arith.constant 9.900000e-01 : f32
    %157 = vector.broadcast %cst_58 : f32 to vector<1x128xf32>
    %158 = arith.mulf %157, %152 : vector<1x128xf32>
    %cst_59 = arith.constant 1.000000e-01 : f32
    %159 = vector.broadcast %cst_59 : f32 to vector<1x128xf32>
    %160 = arith.mulf %159, %154 : vector<1x128xf32>
    %cst_60 = arith.constant -1.000000e-01 : f32
    %161 = vector.broadcast %cst_60 : f32 to vector<1x128xf32>
    %162 = arith.mulf %161, %152 : vector<1x128xf32>
    %cst_61 = arith.constant 9.900000e-01 : f32
    %163 = vector.broadcast %cst_61 : f32 to vector<1x128xf32>
    %164 = arith.mulf %163, %154 : vector<1x128xf32>
    %165 = arith.addf %158, %160 : vector<1x128xf32>
    %166 = arith.select %156, %158, %165 : vector<1x128xi1>, vector<1x128xf32>
    %167 = arith.addf %164, %162 : vector<1x128xf32>
    %168 = arith.select %156, %162, %167 : vector<1x128xi1>, vector<1x128xf32>
    %cst_62 = arith.constant 0.000000e+00 : f32
    %169 = vector.broadcast %cst_62 : f32 to vector<1x128xf32>
    %170 = arith.cmpf ogt, %166, %169 : vector<1x128xf32>
    %cst_63 = arith.constant 9.900000e-01 : f32
    %171 = vector.broadcast %cst_63 : f32 to vector<1x128xf32>
    %172 = arith.mulf %171, %166 : vector<1x128xf32>
    %cst_64 = arith.constant 1.000000e-01 : f32
    %173 = vector.broadcast %cst_64 : f32 to vector<1x128xf32>
    %174 = arith.mulf %173, %168 : vector<1x128xf32>
    %cst_65 = arith.constant -1.000000e-01 : f32
    %175 = vector.broadcast %cst_65 : f32 to vector<1x128xf32>
    %176 = arith.mulf %175, %166 : vector<1x128xf32>
    %cst_66 = arith.constant 9.900000e-01 : f32
    %177 = vector.broadcast %cst_66 : f32 to vector<1x128xf32>
    %178 = arith.mulf %177, %168 : vector<1x128xf32>
    %179 = arith.addf %172, %174 : vector<1x128xf32>
    %180 = arith.select %170, %172, %179 : vector<1x128xi1>, vector<1x128xf32>
    %181 = arith.addf %178, %176 : vector<1x128xf32>
    %182 = arith.select %170, %176, %181 : vector<1x128xi1>, vector<1x128xf32>
    %cst_67 = arith.constant 0.000000e+00 : f32
    %183 = vector.broadcast %cst_67 : f32 to vector<1x128xf32>
    %184 = arith.cmpf ogt, %180, %183 : vector<1x128xf32>
    %cst_68 = arith.constant 9.900000e-01 : f32
    %185 = vector.broadcast %cst_68 : f32 to vector<1x128xf32>
    %186 = arith.mulf %185, %180 : vector<1x128xf32>
    %cst_69 = arith.constant 1.000000e-01 : f32
    %187 = vector.broadcast %cst_69 : f32 to vector<1x128xf32>
    %188 = arith.mulf %187, %182 : vector<1x128xf32>
    %cst_70 = arith.constant -1.000000e-01 : f32
    %189 = vector.broadcast %cst_70 : f32 to vector<1x128xf32>
    %190 = arith.mulf %189, %180 : vector<1x128xf32>
    %cst_71 = arith.constant 9.900000e-01 : f32
    %191 = vector.broadcast %cst_71 : f32 to vector<1x128xf32>
    %192 = arith.mulf %191, %182 : vector<1x128xf32>
    %193 = arith.addf %186, %188 : vector<1x128xf32>
    %194 = arith.select %184, %186, %193 : vector<1x128xi1>, vector<1x128xf32>
    %195 = arith.addf %192, %190 : vector<1x128xf32>
    %196 = arith.select %184, %190, %195 : vector<1x128xi1>, vector<1x128xf32>
    %cst_72 = arith.constant 0.000000e+00 : f32
    %197 = vector.broadcast %cst_72 : f32 to vector<1x128xf32>
    %198 = arith.cmpf ogt, %194, %197 : vector<1x128xf32>
    %cst_73 = arith.constant 9.900000e-01 : f32
    %199 = vector.broadcast %cst_73 : f32 to vector<1x128xf32>
    %200 = arith.mulf %199, %194 : vector<1x128xf32>
    %cst_74 = arith.constant 1.000000e-01 : f32
    %201 = vector.broadcast %cst_74 : f32 to vector<1x128xf32>
    %202 = arith.mulf %201, %196 : vector<1x128xf32>
    %cst_75 = arith.constant -1.000000e-01 : f32
    %203 = vector.broadcast %cst_75 : f32 to vector<1x128xf32>
    %204 = arith.mulf %203, %194 : vector<1x128xf32>
    %cst_76 = arith.constant 9.900000e-01 : f32
    %205 = vector.broadcast %cst_76 : f32 to vector<1x128xf32>
    %206 = arith.mulf %205, %196 : vector<1x128xf32>
    %207 = arith.addf %200, %202 : vector<1x128xf32>
    %208 = arith.select %198, %200, %207 : vector<1x128xi1>, vector<1x128xf32>
    %209 = arith.addf %206, %204 : vector<1x128xf32>
    %210 = arith.select %198, %204, %209 : vector<1x128xi1>, vector<1x128xf32>
    %cst_77 = arith.constant 0.000000e+00 : f32
    %211 = vector.broadcast %cst_77 : f32 to vector<1x128xf32>
    %212 = arith.cmpf ogt, %208, %211 : vector<1x128xf32>
    %cst_78 = arith.constant 9.900000e-01 : f32
    %213 = vector.broadcast %cst_78 : f32 to vector<1x128xf32>
    %214 = arith.mulf %213, %208 : vector<1x128xf32>
    %cst_79 = arith.constant 1.000000e-01 : f32
    %215 = vector.broadcast %cst_79 : f32 to vector<1x128xf32>
    %216 = arith.mulf %215, %210 : vector<1x128xf32>
    %cst_80 = arith.constant -1.000000e-01 : f32
    %217 = vector.broadcast %cst_80 : f32 to vector<1x128xf32>
    %218 = arith.mulf %217, %208 : vector<1x128xf32>
    %cst_81 = arith.constant 9.900000e-01 : f32
    %219 = vector.broadcast %cst_81 : f32 to vector<1x128xf32>
    %220 = arith.mulf %219, %210 : vector<1x128xf32>
    %221 = arith.addf %214, %216 : vector<1x128xf32>
    %222 = arith.select %212, %214, %221 : vector<1x128xi1>, vector<1x128xf32>
    %223 = arith.addf %220, %218 : vector<1x128xf32>
    %224 = arith.select %212, %218, %223 : vector<1x128xi1>, vector<1x128xf32>
    %cst_82 = arith.constant 0.000000e+00 : f32
    %225 = vector.broadcast %cst_82 : f32 to vector<1x128xf32>
    %226 = arith.cmpf ogt, %222, %225 : vector<1x128xf32>
    %cst_83 = arith.constant 9.900000e-01 : f32
    %227 = vector.broadcast %cst_83 : f32 to vector<1x128xf32>
    %228 = arith.mulf %227, %222 : vector<1x128xf32>
    %cst_84 = arith.constant 1.000000e-01 : f32
    %229 = vector.broadcast %cst_84 : f32 to vector<1x128xf32>
    %230 = arith.mulf %229, %224 : vector<1x128xf32>
    %cst_85 = arith.constant -1.000000e-01 : f32
    %231 = vector.broadcast %cst_85 : f32 to vector<1x128xf32>
    %232 = arith.mulf %231, %222 : vector<1x128xf32>
    %cst_86 = arith.constant 9.900000e-01 : f32
    %233 = vector.broadcast %cst_86 : f32 to vector<1x128xf32>
    %234 = arith.mulf %233, %224 : vector<1x128xf32>
    %235 = arith.addf %228, %230 : vector<1x128xf32>
    %236 = arith.select %226, %228, %235 : vector<1x128xi1>, vector<1x128xf32>
    %237 = arith.addf %234, %232 : vector<1x128xf32>
    %238 = arith.select %226, %232, %237 : vector<1x128xi1>, vector<1x128xf32>
    %cst_87 = arith.constant 0.000000e+00 : f32
    %239 = vector.broadcast %cst_87 : f32 to vector<1x128xf32>
    %240 = arith.cmpf ogt, %236, %239 : vector<1x128xf32>
    %cst_88 = arith.constant 9.900000e-01 : f32
    %241 = vector.broadcast %cst_88 : f32 to vector<1x128xf32>
    %242 = arith.mulf %241, %236 : vector<1x128xf32>
    %cst_89 = arith.constant 1.000000e-01 : f32
    %243 = vector.broadcast %cst_89 : f32 to vector<1x128xf32>
    %244 = arith.mulf %243, %238 : vector<1x128xf32>
    %cst_90 = arith.constant -1.000000e-01 : f32
    %245 = vector.broadcast %cst_90 : f32 to vector<1x128xf32>
    %246 = arith.mulf %245, %236 : vector<1x128xf32>
    %cst_91 = arith.constant 9.900000e-01 : f32
    %247 = vector.broadcast %cst_91 : f32 to vector<1x128xf32>
    %248 = arith.mulf %247, %238 : vector<1x128xf32>
    %249 = arith.addf %242, %244 : vector<1x128xf32>
    %250 = arith.select %240, %242, %249 : vector<1x128xi1>, vector<1x128xf32>
    %251 = arith.addf %248, %246 : vector<1x128xf32>
    %252 = arith.select %240, %246, %251 : vector<1x128xi1>, vector<1x128xf32>
    %cst_92 = arith.constant 0.000000e+00 : f32
    %253 = vector.broadcast %cst_92 : f32 to vector<1x128xf32>
    %254 = arith.cmpf ogt, %250, %253 : vector<1x128xf32>
    %cst_93 = arith.constant 9.900000e-01 : f32
    %255 = vector.broadcast %cst_93 : f32 to vector<1x128xf32>
    %256 = arith.mulf %255, %250 : vector<1x128xf32>
    %cst_94 = arith.constant 1.000000e-01 : f32
    %257 = vector.broadcast %cst_94 : f32 to vector<1x128xf32>
    %258 = arith.mulf %257, %252 : vector<1x128xf32>
    %cst_95 = arith.constant -1.000000e-01 : f32
    %259 = vector.broadcast %cst_95 : f32 to vector<1x128xf32>
    %260 = arith.mulf %259, %250 : vector<1x128xf32>
    %cst_96 = arith.constant 9.900000e-01 : f32
    %261 = vector.broadcast %cst_96 : f32 to vector<1x128xf32>
    %262 = arith.mulf %261, %252 : vector<1x128xf32>
    %263 = arith.addf %256, %258 : vector<1x128xf32>
    %264 = arith.select %254, %256, %263 : vector<1x128xi1>, vector<1x128xf32>
    %265 = arith.addf %262, %260 : vector<1x128xf32>
    %266 = arith.select %254, %260, %265 : vector<1x128xi1>, vector<1x128xf32>
    %cst_97 = arith.constant 0.000000e+00 : f32
    %267 = vector.broadcast %cst_97 : f32 to vector<1x128xf32>
    %268 = arith.cmpf ogt, %264, %267 : vector<1x128xf32>
    %cst_98 = arith.constant 9.900000e-01 : f32
    %269 = vector.broadcast %cst_98 : f32 to vector<1x128xf32>
    %270 = arith.mulf %269, %264 : vector<1x128xf32>
    %cst_99 = arith.constant 1.000000e-01 : f32
    %271 = vector.broadcast %cst_99 : f32 to vector<1x128xf32>
    %272 = arith.mulf %271, %266 : vector<1x128xf32>
    %cst_100 = arith.constant -1.000000e-01 : f32
    %273 = vector.broadcast %cst_100 : f32 to vector<1x128xf32>
    %274 = arith.mulf %273, %264 : vector<1x128xf32>
    %cst_101 = arith.constant 9.900000e-01 : f32
    %275 = vector.broadcast %cst_101 : f32 to vector<1x128xf32>
    %276 = arith.mulf %275, %266 : vector<1x128xf32>
    %277 = arith.addf %270, %272 : vector<1x128xf32>
    %278 = arith.select %268, %270, %277 : vector<1x128xi1>, vector<1x128xf32>
    %279 = arith.addf %276, %274 : vector<1x128xf32>
    %280 = arith.select %268, %274, %279 : vector<1x128xi1>, vector<1x128xf32>
    %cst_102 = arith.constant 0.000000e+00 : f32
    %281 = vector.broadcast %cst_102 : f32 to vector<1x128xf32>
    %282 = arith.cmpf ogt, %278, %281 : vector<1x128xf32>
    %cst_103 = arith.constant 9.900000e-01 : f32
    %283 = vector.broadcast %cst_103 : f32 to vector<1x128xf32>
    %284 = arith.mulf %283, %278 : vector<1x128xf32>
    %cst_104 = arith.constant 1.000000e-01 : f32
    %285 = vector.broadcast %cst_104 : f32 to vector<1x128xf32>
    %286 = arith.mulf %285, %280 : vector<1x128xf32>
    %cst_105 = arith.constant -1.000000e-01 : f32
    %287 = vector.broadcast %cst_105 : f32 to vector<1x128xf32>
    %288 = arith.mulf %287, %278 : vector<1x128xf32>
    %cst_106 = arith.constant 9.900000e-01 : f32
    %289 = vector.broadcast %cst_106 : f32 to vector<1x128xf32>
    %290 = arith.mulf %289, %280 : vector<1x128xf32>
    %291 = arith.addf %284, %286 : vector<1x128xf32>
    %292 = arith.select %282, %284, %291 : vector<1x128xi1>, vector<1x128xf32>
    %293 = arith.addf %290, %288 : vector<1x128xf32>
    %294 = arith.select %282, %288, %293 : vector<1x128xi1>, vector<1x128xf32>
    %cst_107 = arith.constant 0.000000e+00 : f32
    %295 = vector.broadcast %cst_107 : f32 to vector<1x128xf32>
    %296 = arith.cmpf ogt, %292, %295 : vector<1x128xf32>
    %cst_108 = arith.constant 9.900000e-01 : f32
    %297 = vector.broadcast %cst_108 : f32 to vector<1x128xf32>
    %298 = arith.mulf %297, %292 : vector<1x128xf32>
    %cst_109 = arith.constant 1.000000e-01 : f32
    %299 = vector.broadcast %cst_109 : f32 to vector<1x128xf32>
    %300 = arith.mulf %299, %294 : vector<1x128xf32>
    %cst_110 = arith.constant -1.000000e-01 : f32
    %301 = vector.broadcast %cst_110 : f32 to vector<1x128xf32>
    %302 = arith.mulf %301, %292 : vector<1x128xf32>
    %cst_111 = arith.constant 9.900000e-01 : f32
    %303 = vector.broadcast %cst_111 : f32 to vector<1x128xf32>
    %304 = arith.mulf %303, %294 : vector<1x128xf32>
    %305 = arith.addf %298, %300 : vector<1x128xf32>
    %306 = arith.select %296, %298, %305 : vector<1x128xi1>, vector<1x128xf32>
    %307 = arith.addf %304, %302 : vector<1x128xf32>
    %308 = arith.select %296, %302, %307 : vector<1x128xi1>, vector<1x128xf32>
    %cst_112 = arith.constant 0.000000e+00 : f32
    %309 = vector.broadcast %cst_112 : f32 to vector<1x128xf32>
    %310 = arith.cmpf ogt, %306, %309 : vector<1x128xf32>
    %cst_113 = arith.constant 9.900000e-01 : f32
    %311 = vector.broadcast %cst_113 : f32 to vector<1x128xf32>
    %312 = arith.mulf %311, %306 : vector<1x128xf32>
    %cst_114 = arith.constant 1.000000e-01 : f32
    %313 = vector.broadcast %cst_114 : f32 to vector<1x128xf32>
    %314 = arith.mulf %313, %308 : vector<1x128xf32>
    %cst_115 = arith.constant -1.000000e-01 : f32
    %315 = vector.broadcast %cst_115 : f32 to vector<1x128xf32>
    %316 = arith.mulf %315, %306 : vector<1x128xf32>
    %cst_116 = arith.constant 9.900000e-01 : f32
    %317 = vector.broadcast %cst_116 : f32 to vector<1x128xf32>
    %318 = arith.mulf %317, %308 : vector<1x128xf32>
    %319 = arith.addf %312, %314 : vector<1x128xf32>
    %320 = arith.select %310, %312, %319 : vector<1x128xi1>, vector<1x128xf32>
    %321 = arith.addf %318, %316 : vector<1x128xf32>
    %322 = arith.select %310, %316, %321 : vector<1x128xi1>, vector<1x128xf32>
    %cst_117 = arith.constant 0.000000e+00 : f32
    %323 = vector.broadcast %cst_117 : f32 to vector<1x128xf32>
    %324 = arith.cmpf ogt, %320, %323 : vector<1x128xf32>
    %cst_118 = arith.constant 9.900000e-01 : f32
    %325 = vector.broadcast %cst_118 : f32 to vector<1x128xf32>
    %326 = arith.mulf %325, %320 : vector<1x128xf32>
    %cst_119 = arith.constant 1.000000e-01 : f32
    %327 = vector.broadcast %cst_119 : f32 to vector<1x128xf32>
    %328 = arith.mulf %327, %322 : vector<1x128xf32>
    %cst_120 = arith.constant -1.000000e-01 : f32
    %329 = vector.broadcast %cst_120 : f32 to vector<1x128xf32>
    %330 = arith.mulf %329, %320 : vector<1x128xf32>
    %cst_121 = arith.constant 9.900000e-01 : f32
    %331 = vector.broadcast %cst_121 : f32 to vector<1x128xf32>
    %332 = arith.mulf %331, %322 : vector<1x128xf32>
    %333 = arith.addf %326, %328 : vector<1x128xf32>
    %334 = arith.select %324, %326, %333 : vector<1x128xi1>, vector<1x128xf32>
    %335 = arith.addf %332, %330 : vector<1x128xf32>
    %336 = arith.select %324, %330, %335 : vector<1x128xi1>, vector<1x128xf32>
    %cst_122 = arith.constant 0.000000e+00 : f32
    %337 = vector.broadcast %cst_122 : f32 to vector<1x128xf32>
    %338 = arith.cmpf ogt, %334, %337 : vector<1x128xf32>
    %cst_123 = arith.constant 9.900000e-01 : f32
    %339 = vector.broadcast %cst_123 : f32 to vector<1x128xf32>
    %340 = arith.mulf %339, %334 : vector<1x128xf32>
    %cst_124 = arith.constant 1.000000e-01 : f32
    %341 = vector.broadcast %cst_124 : f32 to vector<1x128xf32>
    %342 = arith.mulf %341, %336 : vector<1x128xf32>
    %cst_125 = arith.constant -1.000000e-01 : f32
    %343 = vector.broadcast %cst_125 : f32 to vector<1x128xf32>
    %344 = arith.mulf %343, %334 : vector<1x128xf32>
    %cst_126 = arith.constant 9.900000e-01 : f32
    %345 = vector.broadcast %cst_126 : f32 to vector<1x128xf32>
    %346 = arith.mulf %345, %336 : vector<1x128xf32>
    %347 = arith.addf %340, %342 : vector<1x128xf32>
    %348 = arith.select %338, %340, %347 : vector<1x128xi1>, vector<1x128xf32>
    %349 = arith.addf %346, %344 : vector<1x128xf32>
    %350 = arith.select %338, %344, %349 : vector<1x128xi1>, vector<1x128xf32>
    %cst_127 = arith.constant 0.000000e+00 : f32
    %351 = vector.broadcast %cst_127 : f32 to vector<1x128xf32>
    %352 = arith.cmpf ogt, %348, %351 : vector<1x128xf32>
    %cst_128 = arith.constant 9.900000e-01 : f32
    %353 = vector.broadcast %cst_128 : f32 to vector<1x128xf32>
    %354 = arith.mulf %353, %348 : vector<1x128xf32>
    %cst_129 = arith.constant 1.000000e-01 : f32
    %355 = vector.broadcast %cst_129 : f32 to vector<1x128xf32>
    %356 = arith.mulf %355, %350 : vector<1x128xf32>
    %cst_130 = arith.constant -1.000000e-01 : f32
    %357 = vector.broadcast %cst_130 : f32 to vector<1x128xf32>
    %358 = arith.mulf %357, %348 : vector<1x128xf32>
    %cst_131 = arith.constant 9.900000e-01 : f32
    %359 = vector.broadcast %cst_131 : f32 to vector<1x128xf32>
    %360 = arith.mulf %359, %350 : vector<1x128xf32>
    %361 = arith.addf %354, %356 : vector<1x128xf32>
    %362 = arith.select %352, %354, %361 : vector<1x128xi1>, vector<1x128xf32>
    %363 = arith.addf %360, %358 : vector<1x128xf32>
    %364 = arith.select %352, %358, %363 : vector<1x128xi1>, vector<1x128xf32>
    %cst_132 = arith.constant 0.000000e+00 : f32
    %365 = vector.broadcast %cst_132 : f32 to vector<1x128xf32>
    %366 = arith.cmpf ogt, %362, %365 : vector<1x128xf32>
    %cst_133 = arith.constant 9.900000e-01 : f32
    %367 = vector.broadcast %cst_133 : f32 to vector<1x128xf32>
    %368 = arith.mulf %367, %362 : vector<1x128xf32>
    %cst_134 = arith.constant 1.000000e-01 : f32
    %369 = vector.broadcast %cst_134 : f32 to vector<1x128xf32>
    %370 = arith.mulf %369, %364 : vector<1x128xf32>
    %cst_135 = arith.constant -1.000000e-01 : f32
    %371 = vector.broadcast %cst_135 : f32 to vector<1x128xf32>
    %372 = arith.mulf %371, %362 : vector<1x128xf32>
    %cst_136 = arith.constant 9.900000e-01 : f32
    %373 = vector.broadcast %cst_136 : f32 to vector<1x128xf32>
    %374 = arith.mulf %373, %364 : vector<1x128xf32>
    %375 = arith.addf %368, %370 : vector<1x128xf32>
    %376 = arith.select %366, %368, %375 : vector<1x128xi1>, vector<1x128xf32>
    %377 = arith.addf %374, %372 : vector<1x128xf32>
    %378 = arith.select %366, %372, %377 : vector<1x128xi1>, vector<1x128xf32>
    %cst_137 = arith.constant 0.000000e+00 : f32
    %379 = vector.broadcast %cst_137 : f32 to vector<1x128xf32>
    %380 = arith.cmpf ogt, %376, %379 : vector<1x128xf32>
    %cst_138 = arith.constant 9.900000e-01 : f32
    %381 = vector.broadcast %cst_138 : f32 to vector<1x128xf32>
    %382 = arith.mulf %381, %376 : vector<1x128xf32>
    %cst_139 = arith.constant 1.000000e-01 : f32
    %383 = vector.broadcast %cst_139 : f32 to vector<1x128xf32>
    %384 = arith.mulf %383, %378 : vector<1x128xf32>
    %cst_140 = arith.constant -1.000000e-01 : f32
    %385 = vector.broadcast %cst_140 : f32 to vector<1x128xf32>
    %386 = arith.mulf %385, %376 : vector<1x128xf32>
    %cst_141 = arith.constant 9.900000e-01 : f32
    %387 = vector.broadcast %cst_141 : f32 to vector<1x128xf32>
    %388 = arith.mulf %387, %378 : vector<1x128xf32>
    %389 = arith.addf %382, %384 : vector<1x128xf32>
    %390 = arith.select %380, %382, %389 : vector<1x128xi1>, vector<1x128xf32>
    %391 = arith.addf %388, %386 : vector<1x128xf32>
    %392 = arith.select %380, %386, %391 : vector<1x128xi1>, vector<1x128xf32>
    %cst_142 = arith.constant 0.000000e+00 : f32
    %393 = vector.broadcast %cst_142 : f32 to vector<1x128xf32>
    %394 = arith.cmpf ogt, %390, %393 : vector<1x128xf32>
    %cst_143 = arith.constant 9.900000e-01 : f32
    %395 = vector.broadcast %cst_143 : f32 to vector<1x128xf32>
    %396 = arith.mulf %395, %390 : vector<1x128xf32>
    %cst_144 = arith.constant 1.000000e-01 : f32
    %397 = vector.broadcast %cst_144 : f32 to vector<1x128xf32>
    %398 = arith.mulf %397, %392 : vector<1x128xf32>
    %cst_145 = arith.constant -1.000000e-01 : f32
    %399 = vector.broadcast %cst_145 : f32 to vector<1x128xf32>
    %400 = arith.mulf %399, %390 : vector<1x128xf32>
    %cst_146 = arith.constant 9.900000e-01 : f32
    %401 = vector.broadcast %cst_146 : f32 to vector<1x128xf32>
    %402 = arith.mulf %401, %392 : vector<1x128xf32>
    %403 = arith.addf %396, %398 : vector<1x128xf32>
    %404 = arith.select %394, %396, %403 : vector<1x128xi1>, vector<1x128xf32>
    %405 = arith.addf %402, %400 : vector<1x128xf32>
    %406 = arith.select %394, %400, %405 : vector<1x128xi1>, vector<1x128xf32>
    %cst_147 = arith.constant 0.000000e+00 : f32
    %407 = vector.broadcast %cst_147 : f32 to vector<1x128xf32>
    %408 = arith.cmpf ogt, %404, %407 : vector<1x128xf32>
    %cst_148 = arith.constant 9.900000e-01 : f32
    %409 = vector.broadcast %cst_148 : f32 to vector<1x128xf32>
    %410 = arith.mulf %409, %404 : vector<1x128xf32>
    %cst_149 = arith.constant 1.000000e-01 : f32
    %411 = vector.broadcast %cst_149 : f32 to vector<1x128xf32>
    %412 = arith.mulf %411, %406 : vector<1x128xf32>
    %cst_150 = arith.constant -1.000000e-01 : f32
    %413 = vector.broadcast %cst_150 : f32 to vector<1x128xf32>
    %414 = arith.mulf %413, %404 : vector<1x128xf32>
    %cst_151 = arith.constant 9.900000e-01 : f32
    %415 = vector.broadcast %cst_151 : f32 to vector<1x128xf32>
    %416 = arith.mulf %415, %406 : vector<1x128xf32>
    %417 = arith.addf %410, %412 : vector<1x128xf32>
    %418 = arith.select %408, %410, %417 : vector<1x128xi1>, vector<1x128xf32>
    %419 = arith.addf %416, %414 : vector<1x128xf32>
    %420 = arith.select %408, %414, %419 : vector<1x128xi1>, vector<1x128xf32>
    %cst_152 = arith.constant 0.000000e+00 : f32
    %421 = vector.broadcast %cst_152 : f32 to vector<1x128xf32>
    %422 = arith.cmpf ogt, %418, %421 : vector<1x128xf32>
    %cst_153 = arith.constant 9.900000e-01 : f32
    %423 = vector.broadcast %cst_153 : f32 to vector<1x128xf32>
    %424 = arith.mulf %423, %418 : vector<1x128xf32>
    %cst_154 = arith.constant 1.000000e-01 : f32
    %425 = vector.broadcast %cst_154 : f32 to vector<1x128xf32>
    %426 = arith.mulf %425, %420 : vector<1x128xf32>
    %cst_155 = arith.constant -1.000000e-01 : f32
    %427 = vector.broadcast %cst_155 : f32 to vector<1x128xf32>
    %428 = arith.mulf %427, %418 : vector<1x128xf32>
    %cst_156 = arith.constant 9.900000e-01 : f32
    %429 = vector.broadcast %cst_156 : f32 to vector<1x128xf32>
    %430 = arith.mulf %429, %420 : vector<1x128xf32>
    %431 = arith.addf %424, %426 : vector<1x128xf32>
    %432 = arith.select %422, %424, %431 : vector<1x128xi1>, vector<1x128xf32>
    %433 = arith.addf %430, %428 : vector<1x128xf32>
    %434 = arith.select %422, %428, %433 : vector<1x128xi1>, vector<1x128xf32>
    %cst_157 = arith.constant 0.000000e+00 : f32
    %435 = vector.broadcast %cst_157 : f32 to vector<1x128xf32>
    %436 = arith.cmpf ogt, %432, %435 : vector<1x128xf32>
    %cst_158 = arith.constant 9.900000e-01 : f32
    %437 = vector.broadcast %cst_158 : f32 to vector<1x128xf32>
    %438 = arith.mulf %437, %432 : vector<1x128xf32>
    %cst_159 = arith.constant 1.000000e-01 : f32
    %439 = vector.broadcast %cst_159 : f32 to vector<1x128xf32>
    %440 = arith.mulf %439, %434 : vector<1x128xf32>
    %cst_160 = arith.constant -1.000000e-01 : f32
    %441 = vector.broadcast %cst_160 : f32 to vector<1x128xf32>
    %442 = arith.mulf %441, %432 : vector<1x128xf32>
    %cst_161 = arith.constant 9.900000e-01 : f32
    %443 = vector.broadcast %cst_161 : f32 to vector<1x128xf32>
    %444 = arith.mulf %443, %434 : vector<1x128xf32>
    %445 = arith.addf %438, %440 : vector<1x128xf32>
    %446 = arith.select %436, %438, %445 : vector<1x128xi1>, vector<1x128xf32>
    %447 = arith.addf %444, %442 : vector<1x128xf32>
    %448 = arith.select %436, %442, %447 : vector<1x128xi1>, vector<1x128xf32>
    %cst_162 = arith.constant 0.000000e+00 : f32
    %449 = vector.broadcast %cst_162 : f32 to vector<1x128xf32>
    %450 = arith.cmpf ogt, %446, %449 : vector<1x128xf32>
    %cst_163 = arith.constant 9.900000e-01 : f32
    %451 = vector.broadcast %cst_163 : f32 to vector<1x128xf32>
    %452 = arith.mulf %451, %446 : vector<1x128xf32>
    %cst_164 = arith.constant 1.000000e-01 : f32
    %453 = vector.broadcast %cst_164 : f32 to vector<1x128xf32>
    %454 = arith.mulf %453, %448 : vector<1x128xf32>
    %cst_165 = arith.constant -1.000000e-01 : f32
    %455 = vector.broadcast %cst_165 : f32 to vector<1x128xf32>
    %456 = arith.mulf %455, %446 : vector<1x128xf32>
    %cst_166 = arith.constant 9.900000e-01 : f32
    %457 = vector.broadcast %cst_166 : f32 to vector<1x128xf32>
    %458 = arith.mulf %457, %448 : vector<1x128xf32>
    %459 = arith.addf %452, %454 : vector<1x128xf32>
    %460 = arith.select %450, %452, %459 : vector<1x128xi1>, vector<1x128xf32>
    %461 = arith.addf %458, %456 : vector<1x128xf32>
    %462 = arith.select %450, %456, %461 : vector<1x128xi1>, vector<1x128xf32>
    %cst_167 = arith.constant 0.000000e+00 : f32
    %463 = vector.broadcast %cst_167 : f32 to vector<1x128xf32>
    %464 = arith.cmpf ogt, %460, %463 : vector<1x128xf32>
    %cst_168 = arith.constant 9.900000e-01 : f32
    %465 = vector.broadcast %cst_168 : f32 to vector<1x128xf32>
    %466 = arith.mulf %465, %460 : vector<1x128xf32>
    %cst_169 = arith.constant 1.000000e-01 : f32
    %467 = vector.broadcast %cst_169 : f32 to vector<1x128xf32>
    %468 = arith.mulf %467, %462 : vector<1x128xf32>
    %cst_170 = arith.constant -1.000000e-01 : f32
    %469 = vector.broadcast %cst_170 : f32 to vector<1x128xf32>
    %470 = arith.mulf %469, %460 : vector<1x128xf32>
    %cst_171 = arith.constant 9.900000e-01 : f32
    %471 = vector.broadcast %cst_171 : f32 to vector<1x128xf32>
    %472 = arith.mulf %471, %462 : vector<1x128xf32>
    %473 = arith.addf %466, %468 : vector<1x128xf32>
    %474 = arith.select %464, %466, %473 : vector<1x128xi1>, vector<1x128xf32>
    %475 = arith.addf %472, %470 : vector<1x128xf32>
    %476 = arith.select %464, %470, %475 : vector<1x128xi1>, vector<1x128xf32>
    %c0_i32 = arith.constant 0 : i32
    %c14_i32 = arith.constant 14 : i32
    %477 = arith.addi %c0_i32, %c14_i32 : i32
    %c1_i32 = arith.constant 1 : i32
    %478:2 = scf.for %arg3 = %c0_i32 to %477 step %c1_i32 iter_args(%arg4 = %476, %arg5 = %474) -> (vector<1x128xf32>, vector<1x128xf32>)  : i32 {
      %cst_372 = arith.constant 0.000000e+00 : f32
      %1036 = vector.broadcast %cst_372 : f32 to vector<1x128xf32>
      %1037 = arith.cmpf ogt, %arg5, %1036 : vector<1x128xf32>
      %cst_373 = arith.constant 9.900000e-01 : f32
      %1038 = vector.broadcast %cst_373 : f32 to vector<1x128xf32>
      %1039 = arith.mulf %1038, %arg5 : vector<1x128xf32>
      %cst_374 = arith.constant 1.000000e-01 : f32
      %1040 = vector.broadcast %cst_374 : f32 to vector<1x128xf32>
      %1041 = arith.mulf %1040, %arg4 : vector<1x128xf32>
      %cst_375 = arith.constant -1.000000e-01 : f32
      %1042 = vector.broadcast %cst_375 : f32 to vector<1x128xf32>
      %1043 = arith.mulf %1042, %arg5 : vector<1x128xf32>
      %cst_376 = arith.constant 9.900000e-01 : f32
      %1044 = vector.broadcast %cst_376 : f32 to vector<1x128xf32>
      %1045 = arith.mulf %1044, %arg4 : vector<1x128xf32>
      %1046 = arith.addf %1039, %1041 : vector<1x128xf32>
      %1047 = arith.select %1037, %1039, %1046 : vector<1x128xi1>, vector<1x128xf32>
      %1048 = arith.addf %1045, %1043 : vector<1x128xf32>
      %1049 = arith.select %1037, %1043, %1048 : vector<1x128xi1>, vector<1x128xf32>
      %1050 = arith.addf %1049, %26 : vector<1x128xf32>
      %cst_377 = arith.constant 0.000000e+00 : f32
      %1051 = vector.broadcast %cst_377 : f32 to vector<1x128xf32>
      %1052 = arith.cmpf ogt, %1047, %1051 : vector<1x128xf32>
      %cst_378 = arith.constant 9.900000e-01 : f32
      %1053 = vector.broadcast %cst_378 : f32 to vector<1x128xf32>
      %1054 = arith.mulf %1053, %1047 : vector<1x128xf32>
      %cst_379 = arith.constant 1.000000e-01 : f32
      %1055 = vector.broadcast %cst_379 : f32 to vector<1x128xf32>
      %1056 = arith.mulf %1055, %1050 : vector<1x128xf32>
      %cst_380 = arith.constant -1.000000e-01 : f32
      %1057 = vector.broadcast %cst_380 : f32 to vector<1x128xf32>
      %1058 = arith.mulf %1057, %1047 : vector<1x128xf32>
      %cst_381 = arith.constant 9.900000e-01 : f32
      %1059 = vector.broadcast %cst_381 : f32 to vector<1x128xf32>
      %1060 = arith.mulf %1059, %1050 : vector<1x128xf32>
      %1061 = arith.addf %1054, %1056 : vector<1x128xf32>
      %1062 = arith.select %1052, %1054, %1061 : vector<1x128xi1>, vector<1x128xf32>
      %1063 = arith.addf %1060, %1058 : vector<1x128xf32>
      %1064 = arith.select %1052, %1058, %1063 : vector<1x128xi1>, vector<1x128xf32>
      %cst_382 = arith.constant 0.000000e+00 : f32
      %1065 = vector.broadcast %cst_382 : f32 to vector<1x128xf32>
      %1066 = arith.cmpf ogt, %1062, %1065 : vector<1x128xf32>
      %cst_383 = arith.constant 9.900000e-01 : f32
      %1067 = vector.broadcast %cst_383 : f32 to vector<1x128xf32>
      %1068 = arith.mulf %1067, %1062 : vector<1x128xf32>
      %cst_384 = arith.constant 1.000000e-01 : f32
      %1069 = vector.broadcast %cst_384 : f32 to vector<1x128xf32>
      %1070 = arith.mulf %1069, %1064 : vector<1x128xf32>
      %cst_385 = arith.constant -1.000000e-01 : f32
      %1071 = vector.broadcast %cst_385 : f32 to vector<1x128xf32>
      %1072 = arith.mulf %1071, %1062 : vector<1x128xf32>
      %cst_386 = arith.constant 9.900000e-01 : f32
      %1073 = vector.broadcast %cst_386 : f32 to vector<1x128xf32>
      %1074 = arith.mulf %1073, %1064 : vector<1x128xf32>
      %1075 = arith.addf %1068, %1070 : vector<1x128xf32>
      %1076 = arith.select %1066, %1068, %1075 : vector<1x128xi1>, vector<1x128xf32>
      %1077 = arith.addf %1074, %1072 : vector<1x128xf32>
      %1078 = arith.select %1066, %1072, %1077 : vector<1x128xi1>, vector<1x128xf32>
      %cst_387 = arith.constant 0.000000e+00 : f32
      %1079 = vector.broadcast %cst_387 : f32 to vector<1x128xf32>
      %1080 = arith.cmpf ogt, %1076, %1079 : vector<1x128xf32>
      %cst_388 = arith.constant 9.900000e-01 : f32
      %1081 = vector.broadcast %cst_388 : f32 to vector<1x128xf32>
      %1082 = arith.mulf %1081, %1076 : vector<1x128xf32>
      %cst_389 = arith.constant 1.000000e-01 : f32
      %1083 = vector.broadcast %cst_389 : f32 to vector<1x128xf32>
      %1084 = arith.mulf %1083, %1078 : vector<1x128xf32>
      %cst_390 = arith.constant -1.000000e-01 : f32
      %1085 = vector.broadcast %cst_390 : f32 to vector<1x128xf32>
      %1086 = arith.mulf %1085, %1076 : vector<1x128xf32>
      %cst_391 = arith.constant 9.900000e-01 : f32
      %1087 = vector.broadcast %cst_391 : f32 to vector<1x128xf32>
      %1088 = arith.mulf %1087, %1078 : vector<1x128xf32>
      %1089 = arith.addf %1082, %1084 : vector<1x128xf32>
      %1090 = arith.select %1080, %1082, %1089 : vector<1x128xi1>, vector<1x128xf32>
      %1091 = arith.addf %1088, %1086 : vector<1x128xf32>
      %1092 = arith.select %1080, %1086, %1091 : vector<1x128xi1>, vector<1x128xf32>
      %cst_392 = arith.constant 0.000000e+00 : f32
      %1093 = vector.broadcast %cst_392 : f32 to vector<1x128xf32>
      %1094 = arith.cmpf ogt, %1090, %1093 : vector<1x128xf32>
      %cst_393 = arith.constant 9.900000e-01 : f32
      %1095 = vector.broadcast %cst_393 : f32 to vector<1x128xf32>
      %1096 = arith.mulf %1095, %1090 : vector<1x128xf32>
      %cst_394 = arith.constant 1.000000e-01 : f32
      %1097 = vector.broadcast %cst_394 : f32 to vector<1x128xf32>
      %1098 = arith.mulf %1097, %1092 : vector<1x128xf32>
      %cst_395 = arith.constant -1.000000e-01 : f32
      %1099 = vector.broadcast %cst_395 : f32 to vector<1x128xf32>
      %1100 = arith.mulf %1099, %1090 : vector<1x128xf32>
      %cst_396 = arith.constant 9.900000e-01 : f32
      %1101 = vector.broadcast %cst_396 : f32 to vector<1x128xf32>
      %1102 = arith.mulf %1101, %1092 : vector<1x128xf32>
      %1103 = arith.addf %1096, %1098 : vector<1x128xf32>
      %1104 = arith.select %1094, %1096, %1103 : vector<1x128xi1>, vector<1x128xf32>
      %1105 = arith.addf %1102, %1100 : vector<1x128xf32>
      %1106 = arith.select %1094, %1100, %1105 : vector<1x128xi1>, vector<1x128xf32>
      %cst_397 = arith.constant 0.000000e+00 : f32
      %1107 = vector.broadcast %cst_397 : f32 to vector<1x128xf32>
      %1108 = arith.cmpf ogt, %1104, %1107 : vector<1x128xf32>
      %cst_398 = arith.constant 9.900000e-01 : f32
      %1109 = vector.broadcast %cst_398 : f32 to vector<1x128xf32>
      %1110 = arith.mulf %1109, %1104 : vector<1x128xf32>
      %cst_399 = arith.constant 1.000000e-01 : f32
      %1111 = vector.broadcast %cst_399 : f32 to vector<1x128xf32>
      %1112 = arith.mulf %1111, %1106 : vector<1x128xf32>
      %cst_400 = arith.constant -1.000000e-01 : f32
      %1113 = vector.broadcast %cst_400 : f32 to vector<1x128xf32>
      %1114 = arith.mulf %1113, %1104 : vector<1x128xf32>
      %cst_401 = arith.constant 9.900000e-01 : f32
      %1115 = vector.broadcast %cst_401 : f32 to vector<1x128xf32>
      %1116 = arith.mulf %1115, %1106 : vector<1x128xf32>
      %1117 = arith.addf %1110, %1112 : vector<1x128xf32>
      %1118 = arith.select %1108, %1110, %1117 : vector<1x128xi1>, vector<1x128xf32>
      %1119 = arith.addf %1116, %1114 : vector<1x128xf32>
      %1120 = arith.select %1108, %1114, %1119 : vector<1x128xi1>, vector<1x128xf32>
      %cst_402 = arith.constant 0.000000e+00 : f32
      %1121 = vector.broadcast %cst_402 : f32 to vector<1x128xf32>
      %1122 = arith.cmpf ogt, %1118, %1121 : vector<1x128xf32>
      %cst_403 = arith.constant 9.900000e-01 : f32
      %1123 = vector.broadcast %cst_403 : f32 to vector<1x128xf32>
      %1124 = arith.mulf %1123, %1118 : vector<1x128xf32>
      %cst_404 = arith.constant 1.000000e-01 : f32
      %1125 = vector.broadcast %cst_404 : f32 to vector<1x128xf32>
      %1126 = arith.mulf %1125, %1120 : vector<1x128xf32>
      %cst_405 = arith.constant -1.000000e-01 : f32
      %1127 = vector.broadcast %cst_405 : f32 to vector<1x128xf32>
      %1128 = arith.mulf %1127, %1118 : vector<1x128xf32>
      %cst_406 = arith.constant 9.900000e-01 : f32
      %1129 = vector.broadcast %cst_406 : f32 to vector<1x128xf32>
      %1130 = arith.mulf %1129, %1120 : vector<1x128xf32>
      %1131 = arith.addf %1124, %1126 : vector<1x128xf32>
      %1132 = arith.select %1122, %1124, %1131 : vector<1x128xi1>, vector<1x128xf32>
      %1133 = arith.addf %1130, %1128 : vector<1x128xf32>
      %1134 = arith.select %1122, %1128, %1133 : vector<1x128xi1>, vector<1x128xf32>
      %cst_407 = arith.constant 0.000000e+00 : f32
      %1135 = vector.broadcast %cst_407 : f32 to vector<1x128xf32>
      %1136 = arith.cmpf ogt, %1132, %1135 : vector<1x128xf32>
      %cst_408 = arith.constant 9.900000e-01 : f32
      %1137 = vector.broadcast %cst_408 : f32 to vector<1x128xf32>
      %1138 = arith.mulf %1137, %1132 : vector<1x128xf32>
      %cst_409 = arith.constant 1.000000e-01 : f32
      %1139 = vector.broadcast %cst_409 : f32 to vector<1x128xf32>
      %1140 = arith.mulf %1139, %1134 : vector<1x128xf32>
      %cst_410 = arith.constant -1.000000e-01 : f32
      %1141 = vector.broadcast %cst_410 : f32 to vector<1x128xf32>
      %1142 = arith.mulf %1141, %1132 : vector<1x128xf32>
      %cst_411 = arith.constant 9.900000e-01 : f32
      %1143 = vector.broadcast %cst_411 : f32 to vector<1x128xf32>
      %1144 = arith.mulf %1143, %1134 : vector<1x128xf32>
      %1145 = arith.addf %1138, %1140 : vector<1x128xf32>
      %1146 = arith.select %1136, %1138, %1145 : vector<1x128xi1>, vector<1x128xf32>
      %1147 = arith.addf %1144, %1142 : vector<1x128xf32>
      %1148 = arith.select %1136, %1142, %1147 : vector<1x128xi1>, vector<1x128xf32>
      %cst_412 = arith.constant 0.000000e+00 : f32
      %1149 = vector.broadcast %cst_412 : f32 to vector<1x128xf32>
      %1150 = arith.cmpf ogt, %1146, %1149 : vector<1x128xf32>
      %cst_413 = arith.constant 9.900000e-01 : f32
      %1151 = vector.broadcast %cst_413 : f32 to vector<1x128xf32>
      %1152 = arith.mulf %1151, %1146 : vector<1x128xf32>
      %cst_414 = arith.constant 1.000000e-01 : f32
      %1153 = vector.broadcast %cst_414 : f32 to vector<1x128xf32>
      %1154 = arith.mulf %1153, %1148 : vector<1x128xf32>
      %cst_415 = arith.constant -1.000000e-01 : f32
      %1155 = vector.broadcast %cst_415 : f32 to vector<1x128xf32>
      %1156 = arith.mulf %1155, %1146 : vector<1x128xf32>
      %cst_416 = arith.constant 9.900000e-01 : f32
      %1157 = vector.broadcast %cst_416 : f32 to vector<1x128xf32>
      %1158 = arith.mulf %1157, %1148 : vector<1x128xf32>
      %1159 = arith.addf %1152, %1154 : vector<1x128xf32>
      %1160 = arith.select %1150, %1152, %1159 : vector<1x128xi1>, vector<1x128xf32>
      %1161 = arith.addf %1158, %1156 : vector<1x128xf32>
      %1162 = arith.select %1150, %1156, %1161 : vector<1x128xi1>, vector<1x128xf32>
      %cst_417 = arith.constant 0.000000e+00 : f32
      %1163 = vector.broadcast %cst_417 : f32 to vector<1x128xf32>
      %1164 = arith.cmpf ogt, %1160, %1163 : vector<1x128xf32>
      %cst_418 = arith.constant 9.900000e-01 : f32
      %1165 = vector.broadcast %cst_418 : f32 to vector<1x128xf32>
      %1166 = arith.mulf %1165, %1160 : vector<1x128xf32>
      %cst_419 = arith.constant 1.000000e-01 : f32
      %1167 = vector.broadcast %cst_419 : f32 to vector<1x128xf32>
      %1168 = arith.mulf %1167, %1162 : vector<1x128xf32>
      %cst_420 = arith.constant -1.000000e-01 : f32
      %1169 = vector.broadcast %cst_420 : f32 to vector<1x128xf32>
      %1170 = arith.mulf %1169, %1160 : vector<1x128xf32>
      %cst_421 = arith.constant 9.900000e-01 : f32
      %1171 = vector.broadcast %cst_421 : f32 to vector<1x128xf32>
      %1172 = arith.mulf %1171, %1162 : vector<1x128xf32>
      %1173 = arith.addf %1166, %1168 : vector<1x128xf32>
      %1174 = arith.select %1164, %1166, %1173 : vector<1x128xi1>, vector<1x128xf32>
      %1175 = arith.addf %1172, %1170 : vector<1x128xf32>
      %1176 = arith.select %1164, %1170, %1175 : vector<1x128xi1>, vector<1x128xf32>
      %cst_422 = arith.constant 0.000000e+00 : f32
      %1177 = vector.broadcast %cst_422 : f32 to vector<1x128xf32>
      %1178 = arith.cmpf ogt, %1174, %1177 : vector<1x128xf32>
      %cst_423 = arith.constant 9.900000e-01 : f32
      %1179 = vector.broadcast %cst_423 : f32 to vector<1x128xf32>
      %1180 = arith.mulf %1179, %1174 : vector<1x128xf32>
      %cst_424 = arith.constant 1.000000e-01 : f32
      %1181 = vector.broadcast %cst_424 : f32 to vector<1x128xf32>
      %1182 = arith.mulf %1181, %1176 : vector<1x128xf32>
      %cst_425 = arith.constant -1.000000e-01 : f32
      %1183 = vector.broadcast %cst_425 : f32 to vector<1x128xf32>
      %1184 = arith.mulf %1183, %1174 : vector<1x128xf32>
      %cst_426 = arith.constant 9.900000e-01 : f32
      %1185 = vector.broadcast %cst_426 : f32 to vector<1x128xf32>
      %1186 = arith.mulf %1185, %1176 : vector<1x128xf32>
      %1187 = arith.addf %1180, %1182 : vector<1x128xf32>
      %1188 = arith.select %1178, %1180, %1187 : vector<1x128xi1>, vector<1x128xf32>
      %1189 = arith.addf %1186, %1184 : vector<1x128xf32>
      %1190 = arith.select %1178, %1184, %1189 : vector<1x128xi1>, vector<1x128xf32>
      %cst_427 = arith.constant 0.000000e+00 : f32
      %1191 = vector.broadcast %cst_427 : f32 to vector<1x128xf32>
      %1192 = arith.cmpf ogt, %1188, %1191 : vector<1x128xf32>
      %cst_428 = arith.constant 9.900000e-01 : f32
      %1193 = vector.broadcast %cst_428 : f32 to vector<1x128xf32>
      %1194 = arith.mulf %1193, %1188 : vector<1x128xf32>
      %cst_429 = arith.constant 1.000000e-01 : f32
      %1195 = vector.broadcast %cst_429 : f32 to vector<1x128xf32>
      %1196 = arith.mulf %1195, %1190 : vector<1x128xf32>
      %cst_430 = arith.constant -1.000000e-01 : f32
      %1197 = vector.broadcast %cst_430 : f32 to vector<1x128xf32>
      %1198 = arith.mulf %1197, %1188 : vector<1x128xf32>
      %cst_431 = arith.constant 9.900000e-01 : f32
      %1199 = vector.broadcast %cst_431 : f32 to vector<1x128xf32>
      %1200 = arith.mulf %1199, %1190 : vector<1x128xf32>
      %1201 = arith.addf %1194, %1196 : vector<1x128xf32>
      %1202 = arith.select %1192, %1194, %1201 : vector<1x128xi1>, vector<1x128xf32>
      %1203 = arith.addf %1200, %1198 : vector<1x128xf32>
      %1204 = arith.select %1192, %1198, %1203 : vector<1x128xi1>, vector<1x128xf32>
      %cst_432 = arith.constant 0.000000e+00 : f32
      %1205 = vector.broadcast %cst_432 : f32 to vector<1x128xf32>
      %1206 = arith.cmpf ogt, %1202, %1205 : vector<1x128xf32>
      %cst_433 = arith.constant 9.900000e-01 : f32
      %1207 = vector.broadcast %cst_433 : f32 to vector<1x128xf32>
      %1208 = arith.mulf %1207, %1202 : vector<1x128xf32>
      %cst_434 = arith.constant 1.000000e-01 : f32
      %1209 = vector.broadcast %cst_434 : f32 to vector<1x128xf32>
      %1210 = arith.mulf %1209, %1204 : vector<1x128xf32>
      %cst_435 = arith.constant -1.000000e-01 : f32
      %1211 = vector.broadcast %cst_435 : f32 to vector<1x128xf32>
      %1212 = arith.mulf %1211, %1202 : vector<1x128xf32>
      %cst_436 = arith.constant 9.900000e-01 : f32
      %1213 = vector.broadcast %cst_436 : f32 to vector<1x128xf32>
      %1214 = arith.mulf %1213, %1204 : vector<1x128xf32>
      %1215 = arith.addf %1208, %1210 : vector<1x128xf32>
      %1216 = arith.select %1206, %1208, %1215 : vector<1x128xi1>, vector<1x128xf32>
      %1217 = arith.addf %1214, %1212 : vector<1x128xf32>
      %1218 = arith.select %1206, %1212, %1217 : vector<1x128xi1>, vector<1x128xf32>
      %cst_437 = arith.constant 0.000000e+00 : f32
      %1219 = vector.broadcast %cst_437 : f32 to vector<1x128xf32>
      %1220 = arith.cmpf ogt, %1216, %1219 : vector<1x128xf32>
      %cst_438 = arith.constant 9.900000e-01 : f32
      %1221 = vector.broadcast %cst_438 : f32 to vector<1x128xf32>
      %1222 = arith.mulf %1221, %1216 : vector<1x128xf32>
      %cst_439 = arith.constant 1.000000e-01 : f32
      %1223 = vector.broadcast %cst_439 : f32 to vector<1x128xf32>
      %1224 = arith.mulf %1223, %1218 : vector<1x128xf32>
      %cst_440 = arith.constant -1.000000e-01 : f32
      %1225 = vector.broadcast %cst_440 : f32 to vector<1x128xf32>
      %1226 = arith.mulf %1225, %1216 : vector<1x128xf32>
      %cst_441 = arith.constant 9.900000e-01 : f32
      %1227 = vector.broadcast %cst_441 : f32 to vector<1x128xf32>
      %1228 = arith.mulf %1227, %1218 : vector<1x128xf32>
      %1229 = arith.addf %1222, %1224 : vector<1x128xf32>
      %1230 = arith.select %1220, %1222, %1229 : vector<1x128xi1>, vector<1x128xf32>
      %1231 = arith.addf %1228, %1226 : vector<1x128xf32>
      %1232 = arith.select %1220, %1226, %1231 : vector<1x128xi1>, vector<1x128xf32>
      %cst_442 = arith.constant 0.000000e+00 : f32
      %1233 = vector.broadcast %cst_442 : f32 to vector<1x128xf32>
      %1234 = arith.cmpf ogt, %1230, %1233 : vector<1x128xf32>
      %cst_443 = arith.constant 9.900000e-01 : f32
      %1235 = vector.broadcast %cst_443 : f32 to vector<1x128xf32>
      %1236 = arith.mulf %1235, %1230 : vector<1x128xf32>
      %cst_444 = arith.constant 1.000000e-01 : f32
      %1237 = vector.broadcast %cst_444 : f32 to vector<1x128xf32>
      %1238 = arith.mulf %1237, %1232 : vector<1x128xf32>
      %cst_445 = arith.constant -1.000000e-01 : f32
      %1239 = vector.broadcast %cst_445 : f32 to vector<1x128xf32>
      %1240 = arith.mulf %1239, %1230 : vector<1x128xf32>
      %cst_446 = arith.constant 9.900000e-01 : f32
      %1241 = vector.broadcast %cst_446 : f32 to vector<1x128xf32>
      %1242 = arith.mulf %1241, %1232 : vector<1x128xf32>
      %1243 = arith.addf %1236, %1238 : vector<1x128xf32>
      %1244 = arith.select %1234, %1236, %1243 : vector<1x128xi1>, vector<1x128xf32>
      %1245 = arith.addf %1242, %1240 : vector<1x128xf32>
      %1246 = arith.select %1234, %1240, %1245 : vector<1x128xi1>, vector<1x128xf32>
      %cst_447 = arith.constant 0.000000e+00 : f32
      %1247 = vector.broadcast %cst_447 : f32 to vector<1x128xf32>
      %1248 = arith.cmpf ogt, %1244, %1247 : vector<1x128xf32>
      %cst_448 = arith.constant 9.900000e-01 : f32
      %1249 = vector.broadcast %cst_448 : f32 to vector<1x128xf32>
      %1250 = arith.mulf %1249, %1244 : vector<1x128xf32>
      %cst_449 = arith.constant 1.000000e-01 : f32
      %1251 = vector.broadcast %cst_449 : f32 to vector<1x128xf32>
      %1252 = arith.mulf %1251, %1246 : vector<1x128xf32>
      %cst_450 = arith.constant -1.000000e-01 : f32
      %1253 = vector.broadcast %cst_450 : f32 to vector<1x128xf32>
      %1254 = arith.mulf %1253, %1244 : vector<1x128xf32>
      %cst_451 = arith.constant 9.900000e-01 : f32
      %1255 = vector.broadcast %cst_451 : f32 to vector<1x128xf32>
      %1256 = arith.mulf %1255, %1246 : vector<1x128xf32>
      %1257 = arith.addf %1250, %1252 : vector<1x128xf32>
      %1258 = arith.select %1248, %1250, %1257 : vector<1x128xi1>, vector<1x128xf32>
      %1259 = arith.addf %1256, %1254 : vector<1x128xf32>
      %1260 = arith.select %1248, %1254, %1259 : vector<1x128xi1>, vector<1x128xf32>
      %cst_452 = arith.constant 0.000000e+00 : f32
      %1261 = vector.broadcast %cst_452 : f32 to vector<1x128xf32>
      %1262 = arith.cmpf ogt, %1258, %1261 : vector<1x128xf32>
      %cst_453 = arith.constant 9.900000e-01 : f32
      %1263 = vector.broadcast %cst_453 : f32 to vector<1x128xf32>
      %1264 = arith.mulf %1263, %1258 : vector<1x128xf32>
      %cst_454 = arith.constant 1.000000e-01 : f32
      %1265 = vector.broadcast %cst_454 : f32 to vector<1x128xf32>
      %1266 = arith.mulf %1265, %1260 : vector<1x128xf32>
      %cst_455 = arith.constant -1.000000e-01 : f32
      %1267 = vector.broadcast %cst_455 : f32 to vector<1x128xf32>
      %1268 = arith.mulf %1267, %1258 : vector<1x128xf32>
      %cst_456 = arith.constant 9.900000e-01 : f32
      %1269 = vector.broadcast %cst_456 : f32 to vector<1x128xf32>
      %1270 = arith.mulf %1269, %1260 : vector<1x128xf32>
      %1271 = arith.addf %1264, %1266 : vector<1x128xf32>
      %1272 = arith.select %1262, %1264, %1271 : vector<1x128xi1>, vector<1x128xf32>
      %1273 = arith.addf %1270, %1268 : vector<1x128xf32>
      %1274 = arith.select %1262, %1268, %1273 : vector<1x128xi1>, vector<1x128xf32>
      %cst_457 = arith.constant 0.000000e+00 : f32
      %1275 = vector.broadcast %cst_457 : f32 to vector<1x128xf32>
      %1276 = arith.cmpf ogt, %1272, %1275 : vector<1x128xf32>
      %cst_458 = arith.constant 9.900000e-01 : f32
      %1277 = vector.broadcast %cst_458 : f32 to vector<1x128xf32>
      %1278 = arith.mulf %1277, %1272 : vector<1x128xf32>
      %cst_459 = arith.constant 1.000000e-01 : f32
      %1279 = vector.broadcast %cst_459 : f32 to vector<1x128xf32>
      %1280 = arith.mulf %1279, %1274 : vector<1x128xf32>
      %cst_460 = arith.constant -1.000000e-01 : f32
      %1281 = vector.broadcast %cst_460 : f32 to vector<1x128xf32>
      %1282 = arith.mulf %1281, %1272 : vector<1x128xf32>
      %cst_461 = arith.constant 9.900000e-01 : f32
      %1283 = vector.broadcast %cst_461 : f32 to vector<1x128xf32>
      %1284 = arith.mulf %1283, %1274 : vector<1x128xf32>
      %1285 = arith.addf %1278, %1280 : vector<1x128xf32>
      %1286 = arith.select %1276, %1278, %1285 : vector<1x128xi1>, vector<1x128xf32>
      %1287 = arith.addf %1284, %1282 : vector<1x128xf32>
      %1288 = arith.select %1276, %1282, %1287 : vector<1x128xi1>, vector<1x128xf32>
      %cst_462 = arith.constant 0.000000e+00 : f32
      %1289 = vector.broadcast %cst_462 : f32 to vector<1x128xf32>
      %1290 = arith.cmpf ogt, %1286, %1289 : vector<1x128xf32>
      %cst_463 = arith.constant 9.900000e-01 : f32
      %1291 = vector.broadcast %cst_463 : f32 to vector<1x128xf32>
      %1292 = arith.mulf %1291, %1286 : vector<1x128xf32>
      %cst_464 = arith.constant 1.000000e-01 : f32
      %1293 = vector.broadcast %cst_464 : f32 to vector<1x128xf32>
      %1294 = arith.mulf %1293, %1288 : vector<1x128xf32>
      %cst_465 = arith.constant -1.000000e-01 : f32
      %1295 = vector.broadcast %cst_465 : f32 to vector<1x128xf32>
      %1296 = arith.mulf %1295, %1286 : vector<1x128xf32>
      %cst_466 = arith.constant 9.900000e-01 : f32
      %1297 = vector.broadcast %cst_466 : f32 to vector<1x128xf32>
      %1298 = arith.mulf %1297, %1288 : vector<1x128xf32>
      %1299 = arith.addf %1292, %1294 : vector<1x128xf32>
      %1300 = arith.select %1290, %1292, %1299 : vector<1x128xi1>, vector<1x128xf32>
      %1301 = arith.addf %1298, %1296 : vector<1x128xf32>
      %1302 = arith.select %1290, %1296, %1301 : vector<1x128xi1>, vector<1x128xf32>
      %cst_467 = arith.constant 0.000000e+00 : f32
      %1303 = vector.broadcast %cst_467 : f32 to vector<1x128xf32>
      %1304 = arith.cmpf ogt, %1300, %1303 : vector<1x128xf32>
      %cst_468 = arith.constant 9.900000e-01 : f32
      %1305 = vector.broadcast %cst_468 : f32 to vector<1x128xf32>
      %1306 = arith.mulf %1305, %1300 : vector<1x128xf32>
      %cst_469 = arith.constant 1.000000e-01 : f32
      %1307 = vector.broadcast %cst_469 : f32 to vector<1x128xf32>
      %1308 = arith.mulf %1307, %1302 : vector<1x128xf32>
      %cst_470 = arith.constant -1.000000e-01 : f32
      %1309 = vector.broadcast %cst_470 : f32 to vector<1x128xf32>
      %1310 = arith.mulf %1309, %1300 : vector<1x128xf32>
      %cst_471 = arith.constant 9.900000e-01 : f32
      %1311 = vector.broadcast %cst_471 : f32 to vector<1x128xf32>
      %1312 = arith.mulf %1311, %1302 : vector<1x128xf32>
      %1313 = arith.addf %1306, %1308 : vector<1x128xf32>
      %1314 = arith.select %1304, %1306, %1313 : vector<1x128xi1>, vector<1x128xf32>
      %1315 = arith.addf %1312, %1310 : vector<1x128xf32>
      %1316 = arith.select %1304, %1310, %1315 : vector<1x128xi1>, vector<1x128xf32>
      %cst_472 = arith.constant 0.000000e+00 : f32
      %1317 = vector.broadcast %cst_472 : f32 to vector<1x128xf32>
      %1318 = arith.cmpf ogt, %1314, %1317 : vector<1x128xf32>
      %cst_473 = arith.constant 9.900000e-01 : f32
      %1319 = vector.broadcast %cst_473 : f32 to vector<1x128xf32>
      %1320 = arith.mulf %1319, %1314 : vector<1x128xf32>
      %cst_474 = arith.constant 1.000000e-01 : f32
      %1321 = vector.broadcast %cst_474 : f32 to vector<1x128xf32>
      %1322 = arith.mulf %1321, %1316 : vector<1x128xf32>
      %cst_475 = arith.constant -1.000000e-01 : f32
      %1323 = vector.broadcast %cst_475 : f32 to vector<1x128xf32>
      %1324 = arith.mulf %1323, %1314 : vector<1x128xf32>
      %cst_476 = arith.constant 9.900000e-01 : f32
      %1325 = vector.broadcast %cst_476 : f32 to vector<1x128xf32>
      %1326 = arith.mulf %1325, %1316 : vector<1x128xf32>
      %1327 = arith.addf %1320, %1322 : vector<1x128xf32>
      %1328 = arith.select %1318, %1320, %1327 : vector<1x128xi1>, vector<1x128xf32>
      %1329 = arith.addf %1326, %1324 : vector<1x128xf32>
      %1330 = arith.select %1318, %1324, %1329 : vector<1x128xi1>, vector<1x128xf32>
      %cst_477 = arith.constant 0.000000e+00 : f32
      %1331 = vector.broadcast %cst_477 : f32 to vector<1x128xf32>
      %1332 = arith.cmpf ogt, %1328, %1331 : vector<1x128xf32>
      %cst_478 = arith.constant 9.900000e-01 : f32
      %1333 = vector.broadcast %cst_478 : f32 to vector<1x128xf32>
      %1334 = arith.mulf %1333, %1328 : vector<1x128xf32>
      %cst_479 = arith.constant 1.000000e-01 : f32
      %1335 = vector.broadcast %cst_479 : f32 to vector<1x128xf32>
      %1336 = arith.mulf %1335, %1330 : vector<1x128xf32>
      %cst_480 = arith.constant -1.000000e-01 : f32
      %1337 = vector.broadcast %cst_480 : f32 to vector<1x128xf32>
      %1338 = arith.mulf %1337, %1328 : vector<1x128xf32>
      %cst_481 = arith.constant 9.900000e-01 : f32
      %1339 = vector.broadcast %cst_481 : f32 to vector<1x128xf32>
      %1340 = arith.mulf %1339, %1330 : vector<1x128xf32>
      %1341 = arith.addf %1334, %1336 : vector<1x128xf32>
      %1342 = arith.select %1332, %1334, %1341 : vector<1x128xi1>, vector<1x128xf32>
      %1343 = arith.addf %1340, %1338 : vector<1x128xf32>
      %1344 = arith.select %1332, %1338, %1343 : vector<1x128xi1>, vector<1x128xf32>
      %cst_482 = arith.constant 0.000000e+00 : f32
      %1345 = vector.broadcast %cst_482 : f32 to vector<1x128xf32>
      %1346 = arith.cmpf ogt, %1342, %1345 : vector<1x128xf32>
      %cst_483 = arith.constant 9.900000e-01 : f32
      %1347 = vector.broadcast %cst_483 : f32 to vector<1x128xf32>
      %1348 = arith.mulf %1347, %1342 : vector<1x128xf32>
      %cst_484 = arith.constant 1.000000e-01 : f32
      %1349 = vector.broadcast %cst_484 : f32 to vector<1x128xf32>
      %1350 = arith.mulf %1349, %1344 : vector<1x128xf32>
      %cst_485 = arith.constant -1.000000e-01 : f32
      %1351 = vector.broadcast %cst_485 : f32 to vector<1x128xf32>
      %1352 = arith.mulf %1351, %1342 : vector<1x128xf32>
      %cst_486 = arith.constant 9.900000e-01 : f32
      %1353 = vector.broadcast %cst_486 : f32 to vector<1x128xf32>
      %1354 = arith.mulf %1353, %1344 : vector<1x128xf32>
      %1355 = arith.addf %1348, %1350 : vector<1x128xf32>
      %1356 = arith.select %1346, %1348, %1355 : vector<1x128xi1>, vector<1x128xf32>
      %1357 = arith.addf %1354, %1352 : vector<1x128xf32>
      %1358 = arith.select %1346, %1352, %1357 : vector<1x128xi1>, vector<1x128xf32>
      %cst_487 = arith.constant 0.000000e+00 : f32
      %1359 = vector.broadcast %cst_487 : f32 to vector<1x128xf32>
      %1360 = arith.cmpf ogt, %1356, %1359 : vector<1x128xf32>
      %cst_488 = arith.constant 9.900000e-01 : f32
      %1361 = vector.broadcast %cst_488 : f32 to vector<1x128xf32>
      %1362 = arith.mulf %1361, %1356 : vector<1x128xf32>
      %cst_489 = arith.constant 1.000000e-01 : f32
      %1363 = vector.broadcast %cst_489 : f32 to vector<1x128xf32>
      %1364 = arith.mulf %1363, %1358 : vector<1x128xf32>
      %cst_490 = arith.constant -1.000000e-01 : f32
      %1365 = vector.broadcast %cst_490 : f32 to vector<1x128xf32>
      %1366 = arith.mulf %1365, %1356 : vector<1x128xf32>
      %cst_491 = arith.constant 9.900000e-01 : f32
      %1367 = vector.broadcast %cst_491 : f32 to vector<1x128xf32>
      %1368 = arith.mulf %1367, %1358 : vector<1x128xf32>
      %1369 = arith.addf %1362, %1364 : vector<1x128xf32>
      %1370 = arith.select %1360, %1362, %1369 : vector<1x128xi1>, vector<1x128xf32>
      %1371 = arith.addf %1368, %1366 : vector<1x128xf32>
      %1372 = arith.select %1360, %1366, %1371 : vector<1x128xi1>, vector<1x128xf32>
      %cst_492 = arith.constant 0.000000e+00 : f32
      %1373 = vector.broadcast %cst_492 : f32 to vector<1x128xf32>
      %1374 = arith.cmpf ogt, %1370, %1373 : vector<1x128xf32>
      %cst_493 = arith.constant 9.900000e-01 : f32
      %1375 = vector.broadcast %cst_493 : f32 to vector<1x128xf32>
      %1376 = arith.mulf %1375, %1370 : vector<1x128xf32>
      %cst_494 = arith.constant 1.000000e-01 : f32
      %1377 = vector.broadcast %cst_494 : f32 to vector<1x128xf32>
      %1378 = arith.mulf %1377, %1372 : vector<1x128xf32>
      %cst_495 = arith.constant -1.000000e-01 : f32
      %1379 = vector.broadcast %cst_495 : f32 to vector<1x128xf32>
      %1380 = arith.mulf %1379, %1370 : vector<1x128xf32>
      %cst_496 = arith.constant 9.900000e-01 : f32
      %1381 = vector.broadcast %cst_496 : f32 to vector<1x128xf32>
      %1382 = arith.mulf %1381, %1372 : vector<1x128xf32>
      %1383 = arith.addf %1376, %1378 : vector<1x128xf32>
      %1384 = arith.select %1374, %1376, %1383 : vector<1x128xi1>, vector<1x128xf32>
      %1385 = arith.addf %1382, %1380 : vector<1x128xf32>
      %1386 = arith.select %1374, %1380, %1385 : vector<1x128xi1>, vector<1x128xf32>
      %cst_497 = arith.constant 0.000000e+00 : f32
      %1387 = vector.broadcast %cst_497 : f32 to vector<1x128xf32>
      %1388 = arith.cmpf ogt, %1384, %1387 : vector<1x128xf32>
      %cst_498 = arith.constant 9.900000e-01 : f32
      %1389 = vector.broadcast %cst_498 : f32 to vector<1x128xf32>
      %1390 = arith.mulf %1389, %1384 : vector<1x128xf32>
      %cst_499 = arith.constant 1.000000e-01 : f32
      %1391 = vector.broadcast %cst_499 : f32 to vector<1x128xf32>
      %1392 = arith.mulf %1391, %1386 : vector<1x128xf32>
      %cst_500 = arith.constant -1.000000e-01 : f32
      %1393 = vector.broadcast %cst_500 : f32 to vector<1x128xf32>
      %1394 = arith.mulf %1393, %1384 : vector<1x128xf32>
      %cst_501 = arith.constant 9.900000e-01 : f32
      %1395 = vector.broadcast %cst_501 : f32 to vector<1x128xf32>
      %1396 = arith.mulf %1395, %1386 : vector<1x128xf32>
      %1397 = arith.addf %1390, %1392 : vector<1x128xf32>
      %1398 = arith.select %1388, %1390, %1397 : vector<1x128xi1>, vector<1x128xf32>
      %1399 = arith.addf %1396, %1394 : vector<1x128xf32>
      %1400 = arith.select %1388, %1394, %1399 : vector<1x128xi1>, vector<1x128xf32>
      %cst_502 = arith.constant 0.000000e+00 : f32
      %1401 = vector.broadcast %cst_502 : f32 to vector<1x128xf32>
      %1402 = arith.cmpf ogt, %1398, %1401 : vector<1x128xf32>
      %cst_503 = arith.constant 9.900000e-01 : f32
      %1403 = vector.broadcast %cst_503 : f32 to vector<1x128xf32>
      %1404 = arith.mulf %1403, %1398 : vector<1x128xf32>
      %cst_504 = arith.constant 1.000000e-01 : f32
      %1405 = vector.broadcast %cst_504 : f32 to vector<1x128xf32>
      %1406 = arith.mulf %1405, %1400 : vector<1x128xf32>
      %cst_505 = arith.constant -1.000000e-01 : f32
      %1407 = vector.broadcast %cst_505 : f32 to vector<1x128xf32>
      %1408 = arith.mulf %1407, %1398 : vector<1x128xf32>
      %cst_506 = arith.constant 9.900000e-01 : f32
      %1409 = vector.broadcast %cst_506 : f32 to vector<1x128xf32>
      %1410 = arith.mulf %1409, %1400 : vector<1x128xf32>
      %1411 = arith.addf %1404, %1406 : vector<1x128xf32>
      %1412 = arith.select %1402, %1404, %1411 : vector<1x128xi1>, vector<1x128xf32>
      %1413 = arith.addf %1410, %1408 : vector<1x128xf32>
      %1414 = arith.select %1402, %1408, %1413 : vector<1x128xi1>, vector<1x128xf32>
      %cst_507 = arith.constant 0.000000e+00 : f32
      %1415 = vector.broadcast %cst_507 : f32 to vector<1x128xf32>
      %1416 = arith.cmpf ogt, %1412, %1415 : vector<1x128xf32>
      %cst_508 = arith.constant 9.900000e-01 : f32
      %1417 = vector.broadcast %cst_508 : f32 to vector<1x128xf32>
      %1418 = arith.mulf %1417, %1412 : vector<1x128xf32>
      %cst_509 = arith.constant 1.000000e-01 : f32
      %1419 = vector.broadcast %cst_509 : f32 to vector<1x128xf32>
      %1420 = arith.mulf %1419, %1414 : vector<1x128xf32>
      %cst_510 = arith.constant -1.000000e-01 : f32
      %1421 = vector.broadcast %cst_510 : f32 to vector<1x128xf32>
      %1422 = arith.mulf %1421, %1412 : vector<1x128xf32>
      %cst_511 = arith.constant 9.900000e-01 : f32
      %1423 = vector.broadcast %cst_511 : f32 to vector<1x128xf32>
      %1424 = arith.mulf %1423, %1414 : vector<1x128xf32>
      %1425 = arith.addf %1418, %1420 : vector<1x128xf32>
      %1426 = arith.select %1416, %1418, %1425 : vector<1x128xi1>, vector<1x128xf32>
      %1427 = arith.addf %1424, %1422 : vector<1x128xf32>
      %1428 = arith.select %1416, %1422, %1427 : vector<1x128xi1>, vector<1x128xf32>
      %cst_512 = arith.constant 0.000000e+00 : f32
      %1429 = vector.broadcast %cst_512 : f32 to vector<1x128xf32>
      %1430 = arith.cmpf ogt, %1426, %1429 : vector<1x128xf32>
      %cst_513 = arith.constant 9.900000e-01 : f32
      %1431 = vector.broadcast %cst_513 : f32 to vector<1x128xf32>
      %1432 = arith.mulf %1431, %1426 : vector<1x128xf32>
      %cst_514 = arith.constant 1.000000e-01 : f32
      %1433 = vector.broadcast %cst_514 : f32 to vector<1x128xf32>
      %1434 = arith.mulf %1433, %1428 : vector<1x128xf32>
      %cst_515 = arith.constant -1.000000e-01 : f32
      %1435 = vector.broadcast %cst_515 : f32 to vector<1x128xf32>
      %1436 = arith.mulf %1435, %1426 : vector<1x128xf32>
      %cst_516 = arith.constant 9.900000e-01 : f32
      %1437 = vector.broadcast %cst_516 : f32 to vector<1x128xf32>
      %1438 = arith.mulf %1437, %1428 : vector<1x128xf32>
      %1439 = arith.addf %1432, %1434 : vector<1x128xf32>
      %1440 = arith.select %1430, %1432, %1439 : vector<1x128xi1>, vector<1x128xf32>
      %1441 = arith.addf %1438, %1436 : vector<1x128xf32>
      %1442 = arith.select %1430, %1436, %1441 : vector<1x128xi1>, vector<1x128xf32>
      %cst_517 = arith.constant 0.000000e+00 : f32
      %1443 = vector.broadcast %cst_517 : f32 to vector<1x128xf32>
      %1444 = arith.cmpf ogt, %1440, %1443 : vector<1x128xf32>
      %cst_518 = arith.constant 9.900000e-01 : f32
      %1445 = vector.broadcast %cst_518 : f32 to vector<1x128xf32>
      %1446 = arith.mulf %1445, %1440 : vector<1x128xf32>
      %cst_519 = arith.constant 1.000000e-01 : f32
      %1447 = vector.broadcast %cst_519 : f32 to vector<1x128xf32>
      %1448 = arith.mulf %1447, %1442 : vector<1x128xf32>
      %cst_520 = arith.constant -1.000000e-01 : f32
      %1449 = vector.broadcast %cst_520 : f32 to vector<1x128xf32>
      %1450 = arith.mulf %1449, %1440 : vector<1x128xf32>
      %cst_521 = arith.constant 9.900000e-01 : f32
      %1451 = vector.broadcast %cst_521 : f32 to vector<1x128xf32>
      %1452 = arith.mulf %1451, %1442 : vector<1x128xf32>
      %1453 = arith.addf %1446, %1448 : vector<1x128xf32>
      %1454 = arith.select %1444, %1446, %1453 : vector<1x128xi1>, vector<1x128xf32>
      %1455 = arith.addf %1452, %1450 : vector<1x128xf32>
      %1456 = arith.select %1444, %1450, %1455 : vector<1x128xi1>, vector<1x128xf32>
      %cst_522 = arith.constant 0.000000e+00 : f32
      %1457 = vector.broadcast %cst_522 : f32 to vector<1x128xf32>
      %1458 = arith.cmpf ogt, %1454, %1457 : vector<1x128xf32>
      %cst_523 = arith.constant 9.900000e-01 : f32
      %1459 = vector.broadcast %cst_523 : f32 to vector<1x128xf32>
      %1460 = arith.mulf %1459, %1454 : vector<1x128xf32>
      %cst_524 = arith.constant 1.000000e-01 : f32
      %1461 = vector.broadcast %cst_524 : f32 to vector<1x128xf32>
      %1462 = arith.mulf %1461, %1456 : vector<1x128xf32>
      %cst_525 = arith.constant -1.000000e-01 : f32
      %1463 = vector.broadcast %cst_525 : f32 to vector<1x128xf32>
      %1464 = arith.mulf %1463, %1454 : vector<1x128xf32>
      %cst_526 = arith.constant 9.900000e-01 : f32
      %1465 = vector.broadcast %cst_526 : f32 to vector<1x128xf32>
      %1466 = arith.mulf %1465, %1456 : vector<1x128xf32>
      %1467 = arith.addf %1460, %1462 : vector<1x128xf32>
      %1468 = arith.select %1458, %1460, %1467 : vector<1x128xi1>, vector<1x128xf32>
      %1469 = arith.addf %1466, %1464 : vector<1x128xf32>
      %1470 = arith.select %1458, %1464, %1469 : vector<1x128xi1>, vector<1x128xf32>
      %cst_527 = arith.constant 0.000000e+00 : f32
      %1471 = vector.broadcast %cst_527 : f32 to vector<1x128xf32>
      %1472 = arith.cmpf ogt, %1468, %1471 : vector<1x128xf32>
      %cst_528 = arith.constant 9.900000e-01 : f32
      %1473 = vector.broadcast %cst_528 : f32 to vector<1x128xf32>
      %1474 = arith.mulf %1473, %1468 : vector<1x128xf32>
      %cst_529 = arith.constant 1.000000e-01 : f32
      %1475 = vector.broadcast %cst_529 : f32 to vector<1x128xf32>
      %1476 = arith.mulf %1475, %1470 : vector<1x128xf32>
      %cst_530 = arith.constant -1.000000e-01 : f32
      %1477 = vector.broadcast %cst_530 : f32 to vector<1x128xf32>
      %1478 = arith.mulf %1477, %1468 : vector<1x128xf32>
      %cst_531 = arith.constant 9.900000e-01 : f32
      %1479 = vector.broadcast %cst_531 : f32 to vector<1x128xf32>
      %1480 = arith.mulf %1479, %1470 : vector<1x128xf32>
      %1481 = arith.addf %1474, %1476 : vector<1x128xf32>
      %1482 = arith.select %1472, %1474, %1481 : vector<1x128xi1>, vector<1x128xf32>
      %1483 = arith.addf %1480, %1478 : vector<1x128xf32>
      %1484 = arith.select %1472, %1478, %1483 : vector<1x128xi1>, vector<1x128xf32>
      %cst_532 = arith.constant 0.000000e+00 : f32
      %1485 = vector.broadcast %cst_532 : f32 to vector<1x128xf32>
      %1486 = arith.cmpf ogt, %1482, %1485 : vector<1x128xf32>
      %cst_533 = arith.constant 9.900000e-01 : f32
      %1487 = vector.broadcast %cst_533 : f32 to vector<1x128xf32>
      %1488 = arith.mulf %1487, %1482 : vector<1x128xf32>
      %cst_534 = arith.constant 1.000000e-01 : f32
      %1489 = vector.broadcast %cst_534 : f32 to vector<1x128xf32>
      %1490 = arith.mulf %1489, %1484 : vector<1x128xf32>
      %cst_535 = arith.constant -1.000000e-01 : f32
      %1491 = vector.broadcast %cst_535 : f32 to vector<1x128xf32>
      %1492 = arith.mulf %1491, %1482 : vector<1x128xf32>
      %cst_536 = arith.constant 9.900000e-01 : f32
      %1493 = vector.broadcast %cst_536 : f32 to vector<1x128xf32>
      %1494 = arith.mulf %1493, %1484 : vector<1x128xf32>
      %1495 = arith.addf %1488, %1490 : vector<1x128xf32>
      %1496 = arith.select %1486, %1488, %1495 : vector<1x128xi1>, vector<1x128xf32>
      %1497 = arith.addf %1494, %1492 : vector<1x128xf32>
      %1498 = arith.select %1486, %1492, %1497 : vector<1x128xi1>, vector<1x128xf32>
      %1499 = arith.addf %1498, %21 : vector<1x128xf32>
      %cst_537 = arith.constant 0.000000e+00 : f32
      %1500 = vector.broadcast %cst_537 : f32 to vector<1x128xf32>
      %1501 = arith.cmpf ogt, %1496, %1500 : vector<1x128xf32>
      %cst_538 = arith.constant 9.900000e-01 : f32
      %1502 = vector.broadcast %cst_538 : f32 to vector<1x128xf32>
      %1503 = arith.mulf %1502, %1496 : vector<1x128xf32>
      %cst_539 = arith.constant 1.000000e-01 : f32
      %1504 = vector.broadcast %cst_539 : f32 to vector<1x128xf32>
      %1505 = arith.mulf %1504, %1499 : vector<1x128xf32>
      %cst_540 = arith.constant -1.000000e-01 : f32
      %1506 = vector.broadcast %cst_540 : f32 to vector<1x128xf32>
      %1507 = arith.mulf %1506, %1496 : vector<1x128xf32>
      %cst_541 = arith.constant 9.900000e-01 : f32
      %1508 = vector.broadcast %cst_541 : f32 to vector<1x128xf32>
      %1509 = arith.mulf %1508, %1499 : vector<1x128xf32>
      %1510 = arith.addf %1503, %1505 : vector<1x128xf32>
      %1511 = arith.select %1501, %1503, %1510 : vector<1x128xi1>, vector<1x128xf32>
      %1512 = arith.addf %1509, %1507 : vector<1x128xf32>
      %1513 = arith.select %1501, %1507, %1512 : vector<1x128xi1>, vector<1x128xf32>
      %cst_542 = arith.constant 0.000000e+00 : f32
      %1514 = vector.broadcast %cst_542 : f32 to vector<1x128xf32>
      %1515 = arith.cmpf ogt, %1511, %1514 : vector<1x128xf32>
      %cst_543 = arith.constant 9.900000e-01 : f32
      %1516 = vector.broadcast %cst_543 : f32 to vector<1x128xf32>
      %1517 = arith.mulf %1516, %1511 : vector<1x128xf32>
      %cst_544 = arith.constant 1.000000e-01 : f32
      %1518 = vector.broadcast %cst_544 : f32 to vector<1x128xf32>
      %1519 = arith.mulf %1518, %1513 : vector<1x128xf32>
      %cst_545 = arith.constant -1.000000e-01 : f32
      %1520 = vector.broadcast %cst_545 : f32 to vector<1x128xf32>
      %1521 = arith.mulf %1520, %1511 : vector<1x128xf32>
      %cst_546 = arith.constant 9.900000e-01 : f32
      %1522 = vector.broadcast %cst_546 : f32 to vector<1x128xf32>
      %1523 = arith.mulf %1522, %1513 : vector<1x128xf32>
      %1524 = arith.addf %1517, %1519 : vector<1x128xf32>
      %1525 = arith.select %1515, %1517, %1524 : vector<1x128xi1>, vector<1x128xf32>
      %1526 = arith.addf %1523, %1521 : vector<1x128xf32>
      %1527 = arith.select %1515, %1521, %1526 : vector<1x128xi1>, vector<1x128xf32>
      %cst_547 = arith.constant 0.000000e+00 : f32
      %1528 = vector.broadcast %cst_547 : f32 to vector<1x128xf32>
      %1529 = arith.cmpf ogt, %1525, %1528 : vector<1x128xf32>
      %cst_548 = arith.constant 9.900000e-01 : f32
      %1530 = vector.broadcast %cst_548 : f32 to vector<1x128xf32>
      %1531 = arith.mulf %1530, %1525 : vector<1x128xf32>
      %cst_549 = arith.constant 1.000000e-01 : f32
      %1532 = vector.broadcast %cst_549 : f32 to vector<1x128xf32>
      %1533 = arith.mulf %1532, %1527 : vector<1x128xf32>
      %cst_550 = arith.constant -1.000000e-01 : f32
      %1534 = vector.broadcast %cst_550 : f32 to vector<1x128xf32>
      %1535 = arith.mulf %1534, %1525 : vector<1x128xf32>
      %cst_551 = arith.constant 9.900000e-01 : f32
      %1536 = vector.broadcast %cst_551 : f32 to vector<1x128xf32>
      %1537 = arith.mulf %1536, %1527 : vector<1x128xf32>
      %1538 = arith.addf %1531, %1533 : vector<1x128xf32>
      %1539 = arith.select %1529, %1531, %1538 : vector<1x128xi1>, vector<1x128xf32>
      %1540 = arith.addf %1537, %1535 : vector<1x128xf32>
      %1541 = arith.select %1529, %1535, %1540 : vector<1x128xi1>, vector<1x128xf32>
      %cst_552 = arith.constant 0.000000e+00 : f32
      %1542 = vector.broadcast %cst_552 : f32 to vector<1x128xf32>
      %1543 = arith.cmpf ogt, %1539, %1542 : vector<1x128xf32>
      %cst_553 = arith.constant 9.900000e-01 : f32
      %1544 = vector.broadcast %cst_553 : f32 to vector<1x128xf32>
      %1545 = arith.mulf %1544, %1539 : vector<1x128xf32>
      %cst_554 = arith.constant 1.000000e-01 : f32
      %1546 = vector.broadcast %cst_554 : f32 to vector<1x128xf32>
      %1547 = arith.mulf %1546, %1541 : vector<1x128xf32>
      %cst_555 = arith.constant -1.000000e-01 : f32
      %1548 = vector.broadcast %cst_555 : f32 to vector<1x128xf32>
      %1549 = arith.mulf %1548, %1539 : vector<1x128xf32>
      %cst_556 = arith.constant 9.900000e-01 : f32
      %1550 = vector.broadcast %cst_556 : f32 to vector<1x128xf32>
      %1551 = arith.mulf %1550, %1541 : vector<1x128xf32>
      %1552 = arith.addf %1545, %1547 : vector<1x128xf32>
      %1553 = arith.select %1543, %1545, %1552 : vector<1x128xi1>, vector<1x128xf32>
      %1554 = arith.addf %1551, %1549 : vector<1x128xf32>
      %1555 = arith.select %1543, %1549, %1554 : vector<1x128xi1>, vector<1x128xf32>
      %cst_557 = arith.constant 0.000000e+00 : f32
      %1556 = vector.broadcast %cst_557 : f32 to vector<1x128xf32>
      %1557 = arith.cmpf ogt, %1553, %1556 : vector<1x128xf32>
      %cst_558 = arith.constant 9.900000e-01 : f32
      %1558 = vector.broadcast %cst_558 : f32 to vector<1x128xf32>
      %1559 = arith.mulf %1558, %1553 : vector<1x128xf32>
      %cst_559 = arith.constant 1.000000e-01 : f32
      %1560 = vector.broadcast %cst_559 : f32 to vector<1x128xf32>
      %1561 = arith.mulf %1560, %1555 : vector<1x128xf32>
      %cst_560 = arith.constant -1.000000e-01 : f32
      %1562 = vector.broadcast %cst_560 : f32 to vector<1x128xf32>
      %1563 = arith.mulf %1562, %1553 : vector<1x128xf32>
      %cst_561 = arith.constant 9.900000e-01 : f32
      %1564 = vector.broadcast %cst_561 : f32 to vector<1x128xf32>
      %1565 = arith.mulf %1564, %1555 : vector<1x128xf32>
      %1566 = arith.addf %1559, %1561 : vector<1x128xf32>
      %1567 = arith.select %1557, %1559, %1566 : vector<1x128xi1>, vector<1x128xf32>
      %1568 = arith.addf %1565, %1563 : vector<1x128xf32>
      %1569 = arith.select %1557, %1563, %1568 : vector<1x128xi1>, vector<1x128xf32>
      %cst_562 = arith.constant 0.000000e+00 : f32
      %1570 = vector.broadcast %cst_562 : f32 to vector<1x128xf32>
      %1571 = arith.cmpf ogt, %1567, %1570 : vector<1x128xf32>
      %cst_563 = arith.constant 9.900000e-01 : f32
      %1572 = vector.broadcast %cst_563 : f32 to vector<1x128xf32>
      %1573 = arith.mulf %1572, %1567 : vector<1x128xf32>
      %cst_564 = arith.constant 1.000000e-01 : f32
      %1574 = vector.broadcast %cst_564 : f32 to vector<1x128xf32>
      %1575 = arith.mulf %1574, %1569 : vector<1x128xf32>
      %cst_565 = arith.constant -1.000000e-01 : f32
      %1576 = vector.broadcast %cst_565 : f32 to vector<1x128xf32>
      %1577 = arith.mulf %1576, %1567 : vector<1x128xf32>
      %cst_566 = arith.constant 9.900000e-01 : f32
      %1578 = vector.broadcast %cst_566 : f32 to vector<1x128xf32>
      %1579 = arith.mulf %1578, %1569 : vector<1x128xf32>
      %1580 = arith.addf %1573, %1575 : vector<1x128xf32>
      %1581 = arith.select %1571, %1573, %1580 : vector<1x128xi1>, vector<1x128xf32>
      %1582 = arith.addf %1579, %1577 : vector<1x128xf32>
      %1583 = arith.select %1571, %1577, %1582 : vector<1x128xi1>, vector<1x128xf32>
      %cst_567 = arith.constant 0.000000e+00 : f32
      %1584 = vector.broadcast %cst_567 : f32 to vector<1x128xf32>
      %1585 = arith.cmpf ogt, %1581, %1584 : vector<1x128xf32>
      %cst_568 = arith.constant 9.900000e-01 : f32
      %1586 = vector.broadcast %cst_568 : f32 to vector<1x128xf32>
      %1587 = arith.mulf %1586, %1581 : vector<1x128xf32>
      %cst_569 = arith.constant 1.000000e-01 : f32
      %1588 = vector.broadcast %cst_569 : f32 to vector<1x128xf32>
      %1589 = arith.mulf %1588, %1583 : vector<1x128xf32>
      %cst_570 = arith.constant -1.000000e-01 : f32
      %1590 = vector.broadcast %cst_570 : f32 to vector<1x128xf32>
      %1591 = arith.mulf %1590, %1581 : vector<1x128xf32>
      %cst_571 = arith.constant 9.900000e-01 : f32
      %1592 = vector.broadcast %cst_571 : f32 to vector<1x128xf32>
      %1593 = arith.mulf %1592, %1583 : vector<1x128xf32>
      %1594 = arith.addf %1587, %1589 : vector<1x128xf32>
      %1595 = arith.select %1585, %1587, %1594 : vector<1x128xi1>, vector<1x128xf32>
      %1596 = arith.addf %1593, %1591 : vector<1x128xf32>
      %1597 = arith.select %1585, %1591, %1596 : vector<1x128xi1>, vector<1x128xf32>
      %cst_572 = arith.constant 0.000000e+00 : f32
      %1598 = vector.broadcast %cst_572 : f32 to vector<1x128xf32>
      %1599 = arith.cmpf ogt, %1595, %1598 : vector<1x128xf32>
      %cst_573 = arith.constant 9.900000e-01 : f32
      %1600 = vector.broadcast %cst_573 : f32 to vector<1x128xf32>
      %1601 = arith.mulf %1600, %1595 : vector<1x128xf32>
      %cst_574 = arith.constant 1.000000e-01 : f32
      %1602 = vector.broadcast %cst_574 : f32 to vector<1x128xf32>
      %1603 = arith.mulf %1602, %1597 : vector<1x128xf32>
      %cst_575 = arith.constant -1.000000e-01 : f32
      %1604 = vector.broadcast %cst_575 : f32 to vector<1x128xf32>
      %1605 = arith.mulf %1604, %1595 : vector<1x128xf32>
      %cst_576 = arith.constant 9.900000e-01 : f32
      %1606 = vector.broadcast %cst_576 : f32 to vector<1x128xf32>
      %1607 = arith.mulf %1606, %1597 : vector<1x128xf32>
      %1608 = arith.addf %1601, %1603 : vector<1x128xf32>
      %1609 = arith.select %1599, %1601, %1608 : vector<1x128xi1>, vector<1x128xf32>
      %1610 = arith.addf %1607, %1605 : vector<1x128xf32>
      %1611 = arith.select %1599, %1605, %1610 : vector<1x128xi1>, vector<1x128xf32>
      %cst_577 = arith.constant 0.000000e+00 : f32
      %1612 = vector.broadcast %cst_577 : f32 to vector<1x128xf32>
      %1613 = arith.cmpf ogt, %1609, %1612 : vector<1x128xf32>
      %cst_578 = arith.constant 9.900000e-01 : f32
      %1614 = vector.broadcast %cst_578 : f32 to vector<1x128xf32>
      %1615 = arith.mulf %1614, %1609 : vector<1x128xf32>
      %cst_579 = arith.constant 1.000000e-01 : f32
      %1616 = vector.broadcast %cst_579 : f32 to vector<1x128xf32>
      %1617 = arith.mulf %1616, %1611 : vector<1x128xf32>
      %cst_580 = arith.constant -1.000000e-01 : f32
      %1618 = vector.broadcast %cst_580 : f32 to vector<1x128xf32>
      %1619 = arith.mulf %1618, %1609 : vector<1x128xf32>
      %cst_581 = arith.constant 9.900000e-01 : f32
      %1620 = vector.broadcast %cst_581 : f32 to vector<1x128xf32>
      %1621 = arith.mulf %1620, %1611 : vector<1x128xf32>
      %1622 = arith.addf %1615, %1617 : vector<1x128xf32>
      %1623 = arith.select %1613, %1615, %1622 : vector<1x128xi1>, vector<1x128xf32>
      %1624 = arith.addf %1621, %1619 : vector<1x128xf32>
      %1625 = arith.select %1613, %1619, %1624 : vector<1x128xi1>, vector<1x128xf32>
      %cst_582 = arith.constant 0.000000e+00 : f32
      %1626 = vector.broadcast %cst_582 : f32 to vector<1x128xf32>
      %1627 = arith.cmpf ogt, %1623, %1626 : vector<1x128xf32>
      %cst_583 = arith.constant 9.900000e-01 : f32
      %1628 = vector.broadcast %cst_583 : f32 to vector<1x128xf32>
      %1629 = arith.mulf %1628, %1623 : vector<1x128xf32>
      %cst_584 = arith.constant 1.000000e-01 : f32
      %1630 = vector.broadcast %cst_584 : f32 to vector<1x128xf32>
      %1631 = arith.mulf %1630, %1625 : vector<1x128xf32>
      %cst_585 = arith.constant -1.000000e-01 : f32
      %1632 = vector.broadcast %cst_585 : f32 to vector<1x128xf32>
      %1633 = arith.mulf %1632, %1623 : vector<1x128xf32>
      %cst_586 = arith.constant 9.900000e-01 : f32
      %1634 = vector.broadcast %cst_586 : f32 to vector<1x128xf32>
      %1635 = arith.mulf %1634, %1625 : vector<1x128xf32>
      %1636 = arith.addf %1629, %1631 : vector<1x128xf32>
      %1637 = arith.select %1627, %1629, %1636 : vector<1x128xi1>, vector<1x128xf32>
      %1638 = arith.addf %1635, %1633 : vector<1x128xf32>
      %1639 = arith.select %1627, %1633, %1638 : vector<1x128xi1>, vector<1x128xf32>
      %cst_587 = arith.constant 0.000000e+00 : f32
      %1640 = vector.broadcast %cst_587 : f32 to vector<1x128xf32>
      %1641 = arith.cmpf ogt, %1637, %1640 : vector<1x128xf32>
      %cst_588 = arith.constant 9.900000e-01 : f32
      %1642 = vector.broadcast %cst_588 : f32 to vector<1x128xf32>
      %1643 = arith.mulf %1642, %1637 : vector<1x128xf32>
      %cst_589 = arith.constant 1.000000e-01 : f32
      %1644 = vector.broadcast %cst_589 : f32 to vector<1x128xf32>
      %1645 = arith.mulf %1644, %1639 : vector<1x128xf32>
      %cst_590 = arith.constant -1.000000e-01 : f32
      %1646 = vector.broadcast %cst_590 : f32 to vector<1x128xf32>
      %1647 = arith.mulf %1646, %1637 : vector<1x128xf32>
      %cst_591 = arith.constant 9.900000e-01 : f32
      %1648 = vector.broadcast %cst_591 : f32 to vector<1x128xf32>
      %1649 = arith.mulf %1648, %1639 : vector<1x128xf32>
      %1650 = arith.addf %1643, %1645 : vector<1x128xf32>
      %1651 = arith.select %1641, %1643, %1650 : vector<1x128xi1>, vector<1x128xf32>
      %1652 = arith.addf %1649, %1647 : vector<1x128xf32>
      %1653 = arith.select %1641, %1647, %1652 : vector<1x128xi1>, vector<1x128xf32>
      %cst_592 = arith.constant 0.000000e+00 : f32
      %1654 = vector.broadcast %cst_592 : f32 to vector<1x128xf32>
      %1655 = arith.cmpf ogt, %1651, %1654 : vector<1x128xf32>
      %cst_593 = arith.constant 9.900000e-01 : f32
      %1656 = vector.broadcast %cst_593 : f32 to vector<1x128xf32>
      %1657 = arith.mulf %1656, %1651 : vector<1x128xf32>
      %cst_594 = arith.constant 1.000000e-01 : f32
      %1658 = vector.broadcast %cst_594 : f32 to vector<1x128xf32>
      %1659 = arith.mulf %1658, %1653 : vector<1x128xf32>
      %cst_595 = arith.constant -1.000000e-01 : f32
      %1660 = vector.broadcast %cst_595 : f32 to vector<1x128xf32>
      %1661 = arith.mulf %1660, %1651 : vector<1x128xf32>
      %cst_596 = arith.constant 9.900000e-01 : f32
      %1662 = vector.broadcast %cst_596 : f32 to vector<1x128xf32>
      %1663 = arith.mulf %1662, %1653 : vector<1x128xf32>
      %1664 = arith.addf %1657, %1659 : vector<1x128xf32>
      %1665 = arith.select %1655, %1657, %1664 : vector<1x128xi1>, vector<1x128xf32>
      %1666 = arith.addf %1663, %1661 : vector<1x128xf32>
      %1667 = arith.select %1655, %1661, %1666 : vector<1x128xi1>, vector<1x128xf32>
      %cst_597 = arith.constant 0.000000e+00 : f32
      %1668 = vector.broadcast %cst_597 : f32 to vector<1x128xf32>
      %1669 = arith.cmpf ogt, %1665, %1668 : vector<1x128xf32>
      %cst_598 = arith.constant 9.900000e-01 : f32
      %1670 = vector.broadcast %cst_598 : f32 to vector<1x128xf32>
      %1671 = arith.mulf %1670, %1665 : vector<1x128xf32>
      %cst_599 = arith.constant 1.000000e-01 : f32
      %1672 = vector.broadcast %cst_599 : f32 to vector<1x128xf32>
      %1673 = arith.mulf %1672, %1667 : vector<1x128xf32>
      %cst_600 = arith.constant -1.000000e-01 : f32
      %1674 = vector.broadcast %cst_600 : f32 to vector<1x128xf32>
      %1675 = arith.mulf %1674, %1665 : vector<1x128xf32>
      %cst_601 = arith.constant 9.900000e-01 : f32
      %1676 = vector.broadcast %cst_601 : f32 to vector<1x128xf32>
      %1677 = arith.mulf %1676, %1667 : vector<1x128xf32>
      %1678 = arith.addf %1671, %1673 : vector<1x128xf32>
      %1679 = arith.select %1669, %1671, %1678 : vector<1x128xi1>, vector<1x128xf32>
      %1680 = arith.addf %1677, %1675 : vector<1x128xf32>
      %1681 = arith.select %1669, %1675, %1680 : vector<1x128xi1>, vector<1x128xf32>
      %cst_602 = arith.constant 0.000000e+00 : f32
      %1682 = vector.broadcast %cst_602 : f32 to vector<1x128xf32>
      %1683 = arith.cmpf ogt, %1679, %1682 : vector<1x128xf32>
      %cst_603 = arith.constant 9.900000e-01 : f32
      %1684 = vector.broadcast %cst_603 : f32 to vector<1x128xf32>
      %1685 = arith.mulf %1684, %1679 : vector<1x128xf32>
      %cst_604 = arith.constant 1.000000e-01 : f32
      %1686 = vector.broadcast %cst_604 : f32 to vector<1x128xf32>
      %1687 = arith.mulf %1686, %1681 : vector<1x128xf32>
      %cst_605 = arith.constant -1.000000e-01 : f32
      %1688 = vector.broadcast %cst_605 : f32 to vector<1x128xf32>
      %1689 = arith.mulf %1688, %1679 : vector<1x128xf32>
      %cst_606 = arith.constant 9.900000e-01 : f32
      %1690 = vector.broadcast %cst_606 : f32 to vector<1x128xf32>
      %1691 = arith.mulf %1690, %1681 : vector<1x128xf32>
      %1692 = arith.addf %1685, %1687 : vector<1x128xf32>
      %1693 = arith.select %1683, %1685, %1692 : vector<1x128xi1>, vector<1x128xf32>
      %1694 = arith.addf %1691, %1689 : vector<1x128xf32>
      %1695 = arith.select %1683, %1689, %1694 : vector<1x128xi1>, vector<1x128xf32>
      %cst_607 = arith.constant 0.000000e+00 : f32
      %1696 = vector.broadcast %cst_607 : f32 to vector<1x128xf32>
      %1697 = arith.cmpf ogt, %1693, %1696 : vector<1x128xf32>
      %cst_608 = arith.constant 9.900000e-01 : f32
      %1698 = vector.broadcast %cst_608 : f32 to vector<1x128xf32>
      %1699 = arith.mulf %1698, %1693 : vector<1x128xf32>
      %cst_609 = arith.constant 1.000000e-01 : f32
      %1700 = vector.broadcast %cst_609 : f32 to vector<1x128xf32>
      %1701 = arith.mulf %1700, %1695 : vector<1x128xf32>
      %cst_610 = arith.constant -1.000000e-01 : f32
      %1702 = vector.broadcast %cst_610 : f32 to vector<1x128xf32>
      %1703 = arith.mulf %1702, %1693 : vector<1x128xf32>
      %cst_611 = arith.constant 9.900000e-01 : f32
      %1704 = vector.broadcast %cst_611 : f32 to vector<1x128xf32>
      %1705 = arith.mulf %1704, %1695 : vector<1x128xf32>
      %1706 = arith.addf %1699, %1701 : vector<1x128xf32>
      %1707 = arith.select %1697, %1699, %1706 : vector<1x128xi1>, vector<1x128xf32>
      %1708 = arith.addf %1705, %1703 : vector<1x128xf32>
      %1709 = arith.select %1697, %1703, %1708 : vector<1x128xi1>, vector<1x128xf32>
      %cst_612 = arith.constant 0.000000e+00 : f32
      %1710 = vector.broadcast %cst_612 : f32 to vector<1x128xf32>
      %1711 = arith.cmpf ogt, %1707, %1710 : vector<1x128xf32>
      %cst_613 = arith.constant 9.900000e-01 : f32
      %1712 = vector.broadcast %cst_613 : f32 to vector<1x128xf32>
      %1713 = arith.mulf %1712, %1707 : vector<1x128xf32>
      %cst_614 = arith.constant 1.000000e-01 : f32
      %1714 = vector.broadcast %cst_614 : f32 to vector<1x128xf32>
      %1715 = arith.mulf %1714, %1709 : vector<1x128xf32>
      %cst_615 = arith.constant -1.000000e-01 : f32
      %1716 = vector.broadcast %cst_615 : f32 to vector<1x128xf32>
      %1717 = arith.mulf %1716, %1707 : vector<1x128xf32>
      %cst_616 = arith.constant 9.900000e-01 : f32
      %1718 = vector.broadcast %cst_616 : f32 to vector<1x128xf32>
      %1719 = arith.mulf %1718, %1709 : vector<1x128xf32>
      %1720 = arith.addf %1713, %1715 : vector<1x128xf32>
      %1721 = arith.select %1711, %1713, %1720 : vector<1x128xi1>, vector<1x128xf32>
      %1722 = arith.addf %1719, %1717 : vector<1x128xf32>
      %1723 = arith.select %1711, %1717, %1722 : vector<1x128xi1>, vector<1x128xf32>
      %cst_617 = arith.constant 0.000000e+00 : f32
      %1724 = vector.broadcast %cst_617 : f32 to vector<1x128xf32>
      %1725 = arith.cmpf ogt, %1721, %1724 : vector<1x128xf32>
      %cst_618 = arith.constant 9.900000e-01 : f32
      %1726 = vector.broadcast %cst_618 : f32 to vector<1x128xf32>
      %1727 = arith.mulf %1726, %1721 : vector<1x128xf32>
      %cst_619 = arith.constant 1.000000e-01 : f32
      %1728 = vector.broadcast %cst_619 : f32 to vector<1x128xf32>
      %1729 = arith.mulf %1728, %1723 : vector<1x128xf32>
      %cst_620 = arith.constant -1.000000e-01 : f32
      %1730 = vector.broadcast %cst_620 : f32 to vector<1x128xf32>
      %1731 = arith.mulf %1730, %1721 : vector<1x128xf32>
      %cst_621 = arith.constant 9.900000e-01 : f32
      %1732 = vector.broadcast %cst_621 : f32 to vector<1x128xf32>
      %1733 = arith.mulf %1732, %1723 : vector<1x128xf32>
      %1734 = arith.addf %1727, %1729 : vector<1x128xf32>
      %1735 = arith.select %1725, %1727, %1734 : vector<1x128xi1>, vector<1x128xf32>
      %1736 = arith.addf %1733, %1731 : vector<1x128xf32>
      %1737 = arith.select %1725, %1731, %1736 : vector<1x128xi1>, vector<1x128xf32>
      %cst_622 = arith.constant 0.000000e+00 : f32
      %1738 = vector.broadcast %cst_622 : f32 to vector<1x128xf32>
      %1739 = arith.cmpf ogt, %1735, %1738 : vector<1x128xf32>
      %cst_623 = arith.constant 9.900000e-01 : f32
      %1740 = vector.broadcast %cst_623 : f32 to vector<1x128xf32>
      %1741 = arith.mulf %1740, %1735 : vector<1x128xf32>
      %cst_624 = arith.constant 1.000000e-01 : f32
      %1742 = vector.broadcast %cst_624 : f32 to vector<1x128xf32>
      %1743 = arith.mulf %1742, %1737 : vector<1x128xf32>
      %cst_625 = arith.constant -1.000000e-01 : f32
      %1744 = vector.broadcast %cst_625 : f32 to vector<1x128xf32>
      %1745 = arith.mulf %1744, %1735 : vector<1x128xf32>
      %cst_626 = arith.constant 9.900000e-01 : f32
      %1746 = vector.broadcast %cst_626 : f32 to vector<1x128xf32>
      %1747 = arith.mulf %1746, %1737 : vector<1x128xf32>
      %1748 = arith.addf %1741, %1743 : vector<1x128xf32>
      %1749 = arith.select %1739, %1741, %1748 : vector<1x128xi1>, vector<1x128xf32>
      %1750 = arith.addf %1747, %1745 : vector<1x128xf32>
      %1751 = arith.select %1739, %1745, %1750 : vector<1x128xi1>, vector<1x128xf32>
      %cst_627 = arith.constant 0.000000e+00 : f32
      %1752 = vector.broadcast %cst_627 : f32 to vector<1x128xf32>
      %1753 = arith.cmpf ogt, %1749, %1752 : vector<1x128xf32>
      %cst_628 = arith.constant 9.900000e-01 : f32
      %1754 = vector.broadcast %cst_628 : f32 to vector<1x128xf32>
      %1755 = arith.mulf %1754, %1749 : vector<1x128xf32>
      %cst_629 = arith.constant 1.000000e-01 : f32
      %1756 = vector.broadcast %cst_629 : f32 to vector<1x128xf32>
      %1757 = arith.mulf %1756, %1751 : vector<1x128xf32>
      %cst_630 = arith.constant -1.000000e-01 : f32
      %1758 = vector.broadcast %cst_630 : f32 to vector<1x128xf32>
      %1759 = arith.mulf %1758, %1749 : vector<1x128xf32>
      %cst_631 = arith.constant 9.900000e-01 : f32
      %1760 = vector.broadcast %cst_631 : f32 to vector<1x128xf32>
      %1761 = arith.mulf %1760, %1751 : vector<1x128xf32>
      %1762 = arith.addf %1755, %1757 : vector<1x128xf32>
      %1763 = arith.select %1753, %1755, %1762 : vector<1x128xi1>, vector<1x128xf32>
      %1764 = arith.addf %1761, %1759 : vector<1x128xf32>
      %1765 = arith.select %1753, %1759, %1764 : vector<1x128xi1>, vector<1x128xf32>
      %cst_632 = arith.constant 0.000000e+00 : f32
      %1766 = vector.broadcast %cst_632 : f32 to vector<1x128xf32>
      %1767 = arith.cmpf ogt, %1763, %1766 : vector<1x128xf32>
      %cst_633 = arith.constant 9.900000e-01 : f32
      %1768 = vector.broadcast %cst_633 : f32 to vector<1x128xf32>
      %1769 = arith.mulf %1768, %1763 : vector<1x128xf32>
      %cst_634 = arith.constant 1.000000e-01 : f32
      %1770 = vector.broadcast %cst_634 : f32 to vector<1x128xf32>
      %1771 = arith.mulf %1770, %1765 : vector<1x128xf32>
      %cst_635 = arith.constant -1.000000e-01 : f32
      %1772 = vector.broadcast %cst_635 : f32 to vector<1x128xf32>
      %1773 = arith.mulf %1772, %1763 : vector<1x128xf32>
      %cst_636 = arith.constant 9.900000e-01 : f32
      %1774 = vector.broadcast %cst_636 : f32 to vector<1x128xf32>
      %1775 = arith.mulf %1774, %1765 : vector<1x128xf32>
      %1776 = arith.addf %1769, %1771 : vector<1x128xf32>
      %1777 = arith.select %1767, %1769, %1776 : vector<1x128xi1>, vector<1x128xf32>
      %1778 = arith.addf %1775, %1773 : vector<1x128xf32>
      %1779 = arith.select %1767, %1773, %1778 : vector<1x128xi1>, vector<1x128xf32>
      %cst_637 = arith.constant 0.000000e+00 : f32
      %1780 = vector.broadcast %cst_637 : f32 to vector<1x128xf32>
      %1781 = arith.cmpf ogt, %1777, %1780 : vector<1x128xf32>
      %cst_638 = arith.constant 9.900000e-01 : f32
      %1782 = vector.broadcast %cst_638 : f32 to vector<1x128xf32>
      %1783 = arith.mulf %1782, %1777 : vector<1x128xf32>
      %cst_639 = arith.constant 1.000000e-01 : f32
      %1784 = vector.broadcast %cst_639 : f32 to vector<1x128xf32>
      %1785 = arith.mulf %1784, %1779 : vector<1x128xf32>
      %cst_640 = arith.constant -1.000000e-01 : f32
      %1786 = vector.broadcast %cst_640 : f32 to vector<1x128xf32>
      %1787 = arith.mulf %1786, %1777 : vector<1x128xf32>
      %cst_641 = arith.constant 9.900000e-01 : f32
      %1788 = vector.broadcast %cst_641 : f32 to vector<1x128xf32>
      %1789 = arith.mulf %1788, %1779 : vector<1x128xf32>
      %1790 = arith.addf %1783, %1785 : vector<1x128xf32>
      %1791 = arith.select %1781, %1783, %1790 : vector<1x128xi1>, vector<1x128xf32>
      %1792 = arith.addf %1789, %1787 : vector<1x128xf32>
      %1793 = arith.select %1781, %1787, %1792 : vector<1x128xi1>, vector<1x128xf32>
      %cst_642 = arith.constant 0.000000e+00 : f32
      %1794 = vector.broadcast %cst_642 : f32 to vector<1x128xf32>
      %1795 = arith.cmpf ogt, %1791, %1794 : vector<1x128xf32>
      %cst_643 = arith.constant 9.900000e-01 : f32
      %1796 = vector.broadcast %cst_643 : f32 to vector<1x128xf32>
      %1797 = arith.mulf %1796, %1791 : vector<1x128xf32>
      %cst_644 = arith.constant 1.000000e-01 : f32
      %1798 = vector.broadcast %cst_644 : f32 to vector<1x128xf32>
      %1799 = arith.mulf %1798, %1793 : vector<1x128xf32>
      %cst_645 = arith.constant -1.000000e-01 : f32
      %1800 = vector.broadcast %cst_645 : f32 to vector<1x128xf32>
      %1801 = arith.mulf %1800, %1791 : vector<1x128xf32>
      %cst_646 = arith.constant 9.900000e-01 : f32
      %1802 = vector.broadcast %cst_646 : f32 to vector<1x128xf32>
      %1803 = arith.mulf %1802, %1793 : vector<1x128xf32>
      %1804 = arith.addf %1797, %1799 : vector<1x128xf32>
      %1805 = arith.select %1795, %1797, %1804 : vector<1x128xi1>, vector<1x128xf32>
      %1806 = arith.addf %1803, %1801 : vector<1x128xf32>
      %1807 = arith.select %1795, %1801, %1806 : vector<1x128xi1>, vector<1x128xf32>
      %cst_647 = arith.constant 0.000000e+00 : f32
      %1808 = vector.broadcast %cst_647 : f32 to vector<1x128xf32>
      %1809 = arith.cmpf ogt, %1805, %1808 : vector<1x128xf32>
      %cst_648 = arith.constant 9.900000e-01 : f32
      %1810 = vector.broadcast %cst_648 : f32 to vector<1x128xf32>
      %1811 = arith.mulf %1810, %1805 : vector<1x128xf32>
      %cst_649 = arith.constant 1.000000e-01 : f32
      %1812 = vector.broadcast %cst_649 : f32 to vector<1x128xf32>
      %1813 = arith.mulf %1812, %1807 : vector<1x128xf32>
      %cst_650 = arith.constant -1.000000e-01 : f32
      %1814 = vector.broadcast %cst_650 : f32 to vector<1x128xf32>
      %1815 = arith.mulf %1814, %1805 : vector<1x128xf32>
      %cst_651 = arith.constant 9.900000e-01 : f32
      %1816 = vector.broadcast %cst_651 : f32 to vector<1x128xf32>
      %1817 = arith.mulf %1816, %1807 : vector<1x128xf32>
      %1818 = arith.addf %1811, %1813 : vector<1x128xf32>
      %1819 = arith.select %1809, %1811, %1818 : vector<1x128xi1>, vector<1x128xf32>
      %1820 = arith.addf %1817, %1815 : vector<1x128xf32>
      %1821 = arith.select %1809, %1815, %1820 : vector<1x128xi1>, vector<1x128xf32>
      %cst_652 = arith.constant 0.000000e+00 : f32
      %1822 = vector.broadcast %cst_652 : f32 to vector<1x128xf32>
      %1823 = arith.cmpf ogt, %1819, %1822 : vector<1x128xf32>
      %cst_653 = arith.constant 9.900000e-01 : f32
      %1824 = vector.broadcast %cst_653 : f32 to vector<1x128xf32>
      %1825 = arith.mulf %1824, %1819 : vector<1x128xf32>
      %cst_654 = arith.constant 1.000000e-01 : f32
      %1826 = vector.broadcast %cst_654 : f32 to vector<1x128xf32>
      %1827 = arith.mulf %1826, %1821 : vector<1x128xf32>
      %cst_655 = arith.constant -1.000000e-01 : f32
      %1828 = vector.broadcast %cst_655 : f32 to vector<1x128xf32>
      %1829 = arith.mulf %1828, %1819 : vector<1x128xf32>
      %cst_656 = arith.constant 9.900000e-01 : f32
      %1830 = vector.broadcast %cst_656 : f32 to vector<1x128xf32>
      %1831 = arith.mulf %1830, %1821 : vector<1x128xf32>
      %1832 = arith.addf %1825, %1827 : vector<1x128xf32>
      %1833 = arith.select %1823, %1825, %1832 : vector<1x128xi1>, vector<1x128xf32>
      %1834 = arith.addf %1831, %1829 : vector<1x128xf32>
      %1835 = arith.select %1823, %1829, %1834 : vector<1x128xi1>, vector<1x128xf32>
      %cst_657 = arith.constant 0.000000e+00 : f32
      %1836 = vector.broadcast %cst_657 : f32 to vector<1x128xf32>
      %1837 = arith.cmpf ogt, %1833, %1836 : vector<1x128xf32>
      %cst_658 = arith.constant 9.900000e-01 : f32
      %1838 = vector.broadcast %cst_658 : f32 to vector<1x128xf32>
      %1839 = arith.mulf %1838, %1833 : vector<1x128xf32>
      %cst_659 = arith.constant 1.000000e-01 : f32
      %1840 = vector.broadcast %cst_659 : f32 to vector<1x128xf32>
      %1841 = arith.mulf %1840, %1835 : vector<1x128xf32>
      %cst_660 = arith.constant -1.000000e-01 : f32
      %1842 = vector.broadcast %cst_660 : f32 to vector<1x128xf32>
      %1843 = arith.mulf %1842, %1833 : vector<1x128xf32>
      %cst_661 = arith.constant 9.900000e-01 : f32
      %1844 = vector.broadcast %cst_661 : f32 to vector<1x128xf32>
      %1845 = arith.mulf %1844, %1835 : vector<1x128xf32>
      %1846 = arith.addf %1839, %1841 : vector<1x128xf32>
      %1847 = arith.select %1837, %1839, %1846 : vector<1x128xi1>, vector<1x128xf32>
      %1848 = arith.addf %1845, %1843 : vector<1x128xf32>
      %1849 = arith.select %1837, %1843, %1848 : vector<1x128xi1>, vector<1x128xf32>
      %cst_662 = arith.constant 0.000000e+00 : f32
      %1850 = vector.broadcast %cst_662 : f32 to vector<1x128xf32>
      %1851 = arith.cmpf ogt, %1847, %1850 : vector<1x128xf32>
      %cst_663 = arith.constant 9.900000e-01 : f32
      %1852 = vector.broadcast %cst_663 : f32 to vector<1x128xf32>
      %1853 = arith.mulf %1852, %1847 : vector<1x128xf32>
      %cst_664 = arith.constant 1.000000e-01 : f32
      %1854 = vector.broadcast %cst_664 : f32 to vector<1x128xf32>
      %1855 = arith.mulf %1854, %1849 : vector<1x128xf32>
      %cst_665 = arith.constant -1.000000e-01 : f32
      %1856 = vector.broadcast %cst_665 : f32 to vector<1x128xf32>
      %1857 = arith.mulf %1856, %1847 : vector<1x128xf32>
      %cst_666 = arith.constant 9.900000e-01 : f32
      %1858 = vector.broadcast %cst_666 : f32 to vector<1x128xf32>
      %1859 = arith.mulf %1858, %1849 : vector<1x128xf32>
      %1860 = arith.addf %1853, %1855 : vector<1x128xf32>
      %1861 = arith.select %1851, %1853, %1860 : vector<1x128xi1>, vector<1x128xf32>
      %1862 = arith.addf %1859, %1857 : vector<1x128xf32>
      %1863 = arith.select %1851, %1857, %1862 : vector<1x128xi1>, vector<1x128xf32>
      %cst_667 = arith.constant 0.000000e+00 : f32
      %1864 = vector.broadcast %cst_667 : f32 to vector<1x128xf32>
      %1865 = arith.cmpf ogt, %1861, %1864 : vector<1x128xf32>
      %cst_668 = arith.constant 9.900000e-01 : f32
      %1866 = vector.broadcast %cst_668 : f32 to vector<1x128xf32>
      %1867 = arith.mulf %1866, %1861 : vector<1x128xf32>
      %cst_669 = arith.constant 1.000000e-01 : f32
      %1868 = vector.broadcast %cst_669 : f32 to vector<1x128xf32>
      %1869 = arith.mulf %1868, %1863 : vector<1x128xf32>
      %cst_670 = arith.constant -1.000000e-01 : f32
      %1870 = vector.broadcast %cst_670 : f32 to vector<1x128xf32>
      %1871 = arith.mulf %1870, %1861 : vector<1x128xf32>
      %cst_671 = arith.constant 9.900000e-01 : f32
      %1872 = vector.broadcast %cst_671 : f32 to vector<1x128xf32>
      %1873 = arith.mulf %1872, %1863 : vector<1x128xf32>
      %1874 = arith.addf %1867, %1869 : vector<1x128xf32>
      %1875 = arith.select %1865, %1867, %1874 : vector<1x128xi1>, vector<1x128xf32>
      %1876 = arith.addf %1873, %1871 : vector<1x128xf32>
      %1877 = arith.select %1865, %1871, %1876 : vector<1x128xi1>, vector<1x128xf32>
      %cst_672 = arith.constant 0.000000e+00 : f32
      %1878 = vector.broadcast %cst_672 : f32 to vector<1x128xf32>
      %1879 = arith.cmpf ogt, %1875, %1878 : vector<1x128xf32>
      %cst_673 = arith.constant 9.900000e-01 : f32
      %1880 = vector.broadcast %cst_673 : f32 to vector<1x128xf32>
      %1881 = arith.mulf %1880, %1875 : vector<1x128xf32>
      %cst_674 = arith.constant 1.000000e-01 : f32
      %1882 = vector.broadcast %cst_674 : f32 to vector<1x128xf32>
      %1883 = arith.mulf %1882, %1877 : vector<1x128xf32>
      %cst_675 = arith.constant -1.000000e-01 : f32
      %1884 = vector.broadcast %cst_675 : f32 to vector<1x128xf32>
      %1885 = arith.mulf %1884, %1875 : vector<1x128xf32>
      %cst_676 = arith.constant 9.900000e-01 : f32
      %1886 = vector.broadcast %cst_676 : f32 to vector<1x128xf32>
      %1887 = arith.mulf %1886, %1877 : vector<1x128xf32>
      %1888 = arith.addf %1881, %1883 : vector<1x128xf32>
      %1889 = arith.select %1879, %1881, %1888 : vector<1x128xi1>, vector<1x128xf32>
      %1890 = arith.addf %1887, %1885 : vector<1x128xf32>
      %1891 = arith.select %1879, %1885, %1890 : vector<1x128xi1>, vector<1x128xf32>
      %cst_677 = arith.constant 0.000000e+00 : f32
      %1892 = vector.broadcast %cst_677 : f32 to vector<1x128xf32>
      %1893 = arith.cmpf ogt, %1889, %1892 : vector<1x128xf32>
      %cst_678 = arith.constant 9.900000e-01 : f32
      %1894 = vector.broadcast %cst_678 : f32 to vector<1x128xf32>
      %1895 = arith.mulf %1894, %1889 : vector<1x128xf32>
      %cst_679 = arith.constant 1.000000e-01 : f32
      %1896 = vector.broadcast %cst_679 : f32 to vector<1x128xf32>
      %1897 = arith.mulf %1896, %1891 : vector<1x128xf32>
      %cst_680 = arith.constant -1.000000e-01 : f32
      %1898 = vector.broadcast %cst_680 : f32 to vector<1x128xf32>
      %1899 = arith.mulf %1898, %1889 : vector<1x128xf32>
      %cst_681 = arith.constant 9.900000e-01 : f32
      %1900 = vector.broadcast %cst_681 : f32 to vector<1x128xf32>
      %1901 = arith.mulf %1900, %1891 : vector<1x128xf32>
      %1902 = arith.addf %1895, %1897 : vector<1x128xf32>
      %1903 = arith.select %1893, %1895, %1902 : vector<1x128xi1>, vector<1x128xf32>
      %1904 = arith.addf %1901, %1899 : vector<1x128xf32>
      %1905 = arith.select %1893, %1899, %1904 : vector<1x128xi1>, vector<1x128xf32>
      %cst_682 = arith.constant 0.000000e+00 : f32
      %1906 = vector.broadcast %cst_682 : f32 to vector<1x128xf32>
      %1907 = arith.cmpf ogt, %1903, %1906 : vector<1x128xf32>
      %cst_683 = arith.constant 9.900000e-01 : f32
      %1908 = vector.broadcast %cst_683 : f32 to vector<1x128xf32>
      %1909 = arith.mulf %1908, %1903 : vector<1x128xf32>
      %cst_684 = arith.constant 1.000000e-01 : f32
      %1910 = vector.broadcast %cst_684 : f32 to vector<1x128xf32>
      %1911 = arith.mulf %1910, %1905 : vector<1x128xf32>
      %cst_685 = arith.constant -1.000000e-01 : f32
      %1912 = vector.broadcast %cst_685 : f32 to vector<1x128xf32>
      %1913 = arith.mulf %1912, %1903 : vector<1x128xf32>
      %cst_686 = arith.constant 9.900000e-01 : f32
      %1914 = vector.broadcast %cst_686 : f32 to vector<1x128xf32>
      %1915 = arith.mulf %1914, %1905 : vector<1x128xf32>
      %1916 = arith.addf %1909, %1911 : vector<1x128xf32>
      %1917 = arith.select %1907, %1909, %1916 : vector<1x128xi1>, vector<1x128xf32>
      %1918 = arith.addf %1915, %1913 : vector<1x128xf32>
      %1919 = arith.select %1907, %1913, %1918 : vector<1x128xi1>, vector<1x128xf32>
      %cst_687 = arith.constant 0.000000e+00 : f32
      %1920 = vector.broadcast %cst_687 : f32 to vector<1x128xf32>
      %1921 = arith.cmpf ogt, %1917, %1920 : vector<1x128xf32>
      %cst_688 = arith.constant 9.900000e-01 : f32
      %1922 = vector.broadcast %cst_688 : f32 to vector<1x128xf32>
      %1923 = arith.mulf %1922, %1917 : vector<1x128xf32>
      %cst_689 = arith.constant 1.000000e-01 : f32
      %1924 = vector.broadcast %cst_689 : f32 to vector<1x128xf32>
      %1925 = arith.mulf %1924, %1919 : vector<1x128xf32>
      %cst_690 = arith.constant -1.000000e-01 : f32
      %1926 = vector.broadcast %cst_690 : f32 to vector<1x128xf32>
      %1927 = arith.mulf %1926, %1917 : vector<1x128xf32>
      %cst_691 = arith.constant 9.900000e-01 : f32
      %1928 = vector.broadcast %cst_691 : f32 to vector<1x128xf32>
      %1929 = arith.mulf %1928, %1919 : vector<1x128xf32>
      %1930 = arith.addf %1923, %1925 : vector<1x128xf32>
      %1931 = arith.select %1921, %1923, %1930 : vector<1x128xi1>, vector<1x128xf32>
      %1932 = arith.addf %1929, %1927 : vector<1x128xf32>
      %1933 = arith.select %1921, %1927, %1932 : vector<1x128xi1>, vector<1x128xf32>
      scf.yield %1933, %1931 : vector<1x128xf32>, vector<1x128xf32>
    }
    %cst_172 = arith.constant 0.000000e+00 : f32
    %479 = vector.broadcast %cst_172 : f32 to vector<1x128xf32>
    %480 = arith.cmpf ogt, %478#1, %479 : vector<1x128xf32>
    %cst_173 = arith.constant 9.900000e-01 : f32
    %481 = vector.broadcast %cst_173 : f32 to vector<1x128xf32>
    %482 = arith.mulf %481, %478#1 : vector<1x128xf32>
    %cst_174 = arith.constant 1.000000e-01 : f32
    %483 = vector.broadcast %cst_174 : f32 to vector<1x128xf32>
    %484 = arith.mulf %483, %478#0 : vector<1x128xf32>
    %cst_175 = arith.constant -1.000000e-01 : f32
    %485 = vector.broadcast %cst_175 : f32 to vector<1x128xf32>
    %486 = arith.mulf %485, %478#1 : vector<1x128xf32>
    %cst_176 = arith.constant 9.900000e-01 : f32
    %487 = vector.broadcast %cst_176 : f32 to vector<1x128xf32>
    %488 = arith.mulf %487, %478#0 : vector<1x128xf32>
    %489 = arith.addf %482, %484 : vector<1x128xf32>
    %490 = arith.select %480, %482, %489 : vector<1x128xi1>, vector<1x128xf32>
    %491 = arith.addf %488, %486 : vector<1x128xf32>
    %492 = arith.select %480, %486, %491 : vector<1x128xi1>, vector<1x128xf32>
    %493 = arith.addf %492, %26 : vector<1x128xf32>
    %cst_177 = arith.constant 0.000000e+00 : f32
    %494 = vector.broadcast %cst_177 : f32 to vector<1x128xf32>
    %495 = arith.cmpf ogt, %490, %494 : vector<1x128xf32>
    %cst_178 = arith.constant 9.900000e-01 : f32
    %496 = vector.broadcast %cst_178 : f32 to vector<1x128xf32>
    %497 = arith.mulf %496, %490 : vector<1x128xf32>
    %cst_179 = arith.constant 1.000000e-01 : f32
    %498 = vector.broadcast %cst_179 : f32 to vector<1x128xf32>
    %499 = arith.mulf %498, %493 : vector<1x128xf32>
    %cst_180 = arith.constant -1.000000e-01 : f32
    %500 = vector.broadcast %cst_180 : f32 to vector<1x128xf32>
    %501 = arith.mulf %500, %490 : vector<1x128xf32>
    %cst_181 = arith.constant 9.900000e-01 : f32
    %502 = vector.broadcast %cst_181 : f32 to vector<1x128xf32>
    %503 = arith.mulf %502, %493 : vector<1x128xf32>
    %504 = arith.addf %497, %499 : vector<1x128xf32>
    %505 = arith.select %495, %497, %504 : vector<1x128xi1>, vector<1x128xf32>
    %506 = arith.addf %503, %501 : vector<1x128xf32>
    %507 = arith.select %495, %501, %506 : vector<1x128xi1>, vector<1x128xf32>
    %cst_182 = arith.constant 0.000000e+00 : f32
    %508 = vector.broadcast %cst_182 : f32 to vector<1x128xf32>
    %509 = arith.cmpf ogt, %505, %508 : vector<1x128xf32>
    %cst_183 = arith.constant 9.900000e-01 : f32
    %510 = vector.broadcast %cst_183 : f32 to vector<1x128xf32>
    %511 = arith.mulf %510, %505 : vector<1x128xf32>
    %cst_184 = arith.constant 1.000000e-01 : f32
    %512 = vector.broadcast %cst_184 : f32 to vector<1x128xf32>
    %513 = arith.mulf %512, %507 : vector<1x128xf32>
    %cst_185 = arith.constant -1.000000e-01 : f32
    %514 = vector.broadcast %cst_185 : f32 to vector<1x128xf32>
    %515 = arith.mulf %514, %505 : vector<1x128xf32>
    %cst_186 = arith.constant 9.900000e-01 : f32
    %516 = vector.broadcast %cst_186 : f32 to vector<1x128xf32>
    %517 = arith.mulf %516, %507 : vector<1x128xf32>
    %518 = arith.addf %511, %513 : vector<1x128xf32>
    %519 = arith.select %509, %511, %518 : vector<1x128xi1>, vector<1x128xf32>
    %520 = arith.addf %517, %515 : vector<1x128xf32>
    %521 = arith.select %509, %515, %520 : vector<1x128xi1>, vector<1x128xf32>
    %cst_187 = arith.constant 0.000000e+00 : f32
    %522 = vector.broadcast %cst_187 : f32 to vector<1x128xf32>
    %523 = arith.cmpf ogt, %519, %522 : vector<1x128xf32>
    %cst_188 = arith.constant 9.900000e-01 : f32
    %524 = vector.broadcast %cst_188 : f32 to vector<1x128xf32>
    %525 = arith.mulf %524, %519 : vector<1x128xf32>
    %cst_189 = arith.constant 1.000000e-01 : f32
    %526 = vector.broadcast %cst_189 : f32 to vector<1x128xf32>
    %527 = arith.mulf %526, %521 : vector<1x128xf32>
    %cst_190 = arith.constant -1.000000e-01 : f32
    %528 = vector.broadcast %cst_190 : f32 to vector<1x128xf32>
    %529 = arith.mulf %528, %519 : vector<1x128xf32>
    %cst_191 = arith.constant 9.900000e-01 : f32
    %530 = vector.broadcast %cst_191 : f32 to vector<1x128xf32>
    %531 = arith.mulf %530, %521 : vector<1x128xf32>
    %532 = arith.addf %525, %527 : vector<1x128xf32>
    %533 = arith.select %523, %525, %532 : vector<1x128xi1>, vector<1x128xf32>
    %534 = arith.addf %531, %529 : vector<1x128xf32>
    %535 = arith.select %523, %529, %534 : vector<1x128xi1>, vector<1x128xf32>
    %cst_192 = arith.constant 0.000000e+00 : f32
    %536 = vector.broadcast %cst_192 : f32 to vector<1x128xf32>
    %537 = arith.cmpf ogt, %533, %536 : vector<1x128xf32>
    %cst_193 = arith.constant 9.900000e-01 : f32
    %538 = vector.broadcast %cst_193 : f32 to vector<1x128xf32>
    %539 = arith.mulf %538, %533 : vector<1x128xf32>
    %cst_194 = arith.constant 1.000000e-01 : f32
    %540 = vector.broadcast %cst_194 : f32 to vector<1x128xf32>
    %541 = arith.mulf %540, %535 : vector<1x128xf32>
    %cst_195 = arith.constant -1.000000e-01 : f32
    %542 = vector.broadcast %cst_195 : f32 to vector<1x128xf32>
    %543 = arith.mulf %542, %533 : vector<1x128xf32>
    %cst_196 = arith.constant 9.900000e-01 : f32
    %544 = vector.broadcast %cst_196 : f32 to vector<1x128xf32>
    %545 = arith.mulf %544, %535 : vector<1x128xf32>
    %546 = arith.addf %539, %541 : vector<1x128xf32>
    %547 = arith.select %537, %539, %546 : vector<1x128xi1>, vector<1x128xf32>
    %548 = arith.addf %545, %543 : vector<1x128xf32>
    %549 = arith.select %537, %543, %548 : vector<1x128xi1>, vector<1x128xf32>
    %cst_197 = arith.constant 0.000000e+00 : f32
    %550 = vector.broadcast %cst_197 : f32 to vector<1x128xf32>
    %551 = arith.cmpf ogt, %547, %550 : vector<1x128xf32>
    %cst_198 = arith.constant 9.900000e-01 : f32
    %552 = vector.broadcast %cst_198 : f32 to vector<1x128xf32>
    %553 = arith.mulf %552, %547 : vector<1x128xf32>
    %cst_199 = arith.constant 1.000000e-01 : f32
    %554 = vector.broadcast %cst_199 : f32 to vector<1x128xf32>
    %555 = arith.mulf %554, %549 : vector<1x128xf32>
    %cst_200 = arith.constant -1.000000e-01 : f32
    %556 = vector.broadcast %cst_200 : f32 to vector<1x128xf32>
    %557 = arith.mulf %556, %547 : vector<1x128xf32>
    %cst_201 = arith.constant 9.900000e-01 : f32
    %558 = vector.broadcast %cst_201 : f32 to vector<1x128xf32>
    %559 = arith.mulf %558, %549 : vector<1x128xf32>
    %560 = arith.addf %553, %555 : vector<1x128xf32>
    %561 = arith.select %551, %553, %560 : vector<1x128xi1>, vector<1x128xf32>
    %562 = arith.addf %559, %557 : vector<1x128xf32>
    %563 = arith.select %551, %557, %562 : vector<1x128xi1>, vector<1x128xf32>
    %cst_202 = arith.constant 0.000000e+00 : f32
    %564 = vector.broadcast %cst_202 : f32 to vector<1x128xf32>
    %565 = arith.cmpf ogt, %561, %564 : vector<1x128xf32>
    %cst_203 = arith.constant 9.900000e-01 : f32
    %566 = vector.broadcast %cst_203 : f32 to vector<1x128xf32>
    %567 = arith.mulf %566, %561 : vector<1x128xf32>
    %cst_204 = arith.constant 1.000000e-01 : f32
    %568 = vector.broadcast %cst_204 : f32 to vector<1x128xf32>
    %569 = arith.mulf %568, %563 : vector<1x128xf32>
    %cst_205 = arith.constant -1.000000e-01 : f32
    %570 = vector.broadcast %cst_205 : f32 to vector<1x128xf32>
    %571 = arith.mulf %570, %561 : vector<1x128xf32>
    %cst_206 = arith.constant 9.900000e-01 : f32
    %572 = vector.broadcast %cst_206 : f32 to vector<1x128xf32>
    %573 = arith.mulf %572, %563 : vector<1x128xf32>
    %574 = arith.addf %567, %569 : vector<1x128xf32>
    %575 = arith.select %565, %567, %574 : vector<1x128xi1>, vector<1x128xf32>
    %576 = arith.addf %573, %571 : vector<1x128xf32>
    %577 = arith.select %565, %571, %576 : vector<1x128xi1>, vector<1x128xf32>
    %cst_207 = arith.constant 0.000000e+00 : f32
    %578 = vector.broadcast %cst_207 : f32 to vector<1x128xf32>
    %579 = arith.cmpf ogt, %575, %578 : vector<1x128xf32>
    %cst_208 = arith.constant 9.900000e-01 : f32
    %580 = vector.broadcast %cst_208 : f32 to vector<1x128xf32>
    %581 = arith.mulf %580, %575 : vector<1x128xf32>
    %cst_209 = arith.constant 1.000000e-01 : f32
    %582 = vector.broadcast %cst_209 : f32 to vector<1x128xf32>
    %583 = arith.mulf %582, %577 : vector<1x128xf32>
    %cst_210 = arith.constant -1.000000e-01 : f32
    %584 = vector.broadcast %cst_210 : f32 to vector<1x128xf32>
    %585 = arith.mulf %584, %575 : vector<1x128xf32>
    %cst_211 = arith.constant 9.900000e-01 : f32
    %586 = vector.broadcast %cst_211 : f32 to vector<1x128xf32>
    %587 = arith.mulf %586, %577 : vector<1x128xf32>
    %588 = arith.addf %581, %583 : vector<1x128xf32>
    %589 = arith.select %579, %581, %588 : vector<1x128xi1>, vector<1x128xf32>
    %590 = arith.addf %587, %585 : vector<1x128xf32>
    %591 = arith.select %579, %585, %590 : vector<1x128xi1>, vector<1x128xf32>
    %cst_212 = arith.constant 0.000000e+00 : f32
    %592 = vector.broadcast %cst_212 : f32 to vector<1x128xf32>
    %593 = arith.cmpf ogt, %589, %592 : vector<1x128xf32>
    %cst_213 = arith.constant 9.900000e-01 : f32
    %594 = vector.broadcast %cst_213 : f32 to vector<1x128xf32>
    %595 = arith.mulf %594, %589 : vector<1x128xf32>
    %cst_214 = arith.constant 1.000000e-01 : f32
    %596 = vector.broadcast %cst_214 : f32 to vector<1x128xf32>
    %597 = arith.mulf %596, %591 : vector<1x128xf32>
    %cst_215 = arith.constant -1.000000e-01 : f32
    %598 = vector.broadcast %cst_215 : f32 to vector<1x128xf32>
    %599 = arith.mulf %598, %589 : vector<1x128xf32>
    %cst_216 = arith.constant 9.900000e-01 : f32
    %600 = vector.broadcast %cst_216 : f32 to vector<1x128xf32>
    %601 = arith.mulf %600, %591 : vector<1x128xf32>
    %602 = arith.addf %595, %597 : vector<1x128xf32>
    %603 = arith.select %593, %595, %602 : vector<1x128xi1>, vector<1x128xf32>
    %604 = arith.addf %601, %599 : vector<1x128xf32>
    %605 = arith.select %593, %599, %604 : vector<1x128xi1>, vector<1x128xf32>
    %cst_217 = arith.constant 0.000000e+00 : f32
    %606 = vector.broadcast %cst_217 : f32 to vector<1x128xf32>
    %607 = arith.cmpf ogt, %603, %606 : vector<1x128xf32>
    %cst_218 = arith.constant 9.900000e-01 : f32
    %608 = vector.broadcast %cst_218 : f32 to vector<1x128xf32>
    %609 = arith.mulf %608, %603 : vector<1x128xf32>
    %cst_219 = arith.constant 1.000000e-01 : f32
    %610 = vector.broadcast %cst_219 : f32 to vector<1x128xf32>
    %611 = arith.mulf %610, %605 : vector<1x128xf32>
    %cst_220 = arith.constant -1.000000e-01 : f32
    %612 = vector.broadcast %cst_220 : f32 to vector<1x128xf32>
    %613 = arith.mulf %612, %603 : vector<1x128xf32>
    %cst_221 = arith.constant 9.900000e-01 : f32
    %614 = vector.broadcast %cst_221 : f32 to vector<1x128xf32>
    %615 = arith.mulf %614, %605 : vector<1x128xf32>
    %616 = arith.addf %609, %611 : vector<1x128xf32>
    %617 = arith.select %607, %609, %616 : vector<1x128xi1>, vector<1x128xf32>
    %618 = arith.addf %615, %613 : vector<1x128xf32>
    %619 = arith.select %607, %613, %618 : vector<1x128xi1>, vector<1x128xf32>
    %cst_222 = arith.constant 0.000000e+00 : f32
    %620 = vector.broadcast %cst_222 : f32 to vector<1x128xf32>
    %621 = arith.cmpf ogt, %617, %620 : vector<1x128xf32>
    %cst_223 = arith.constant 9.900000e-01 : f32
    %622 = vector.broadcast %cst_223 : f32 to vector<1x128xf32>
    %623 = arith.mulf %622, %617 : vector<1x128xf32>
    %cst_224 = arith.constant 1.000000e-01 : f32
    %624 = vector.broadcast %cst_224 : f32 to vector<1x128xf32>
    %625 = arith.mulf %624, %619 : vector<1x128xf32>
    %cst_225 = arith.constant -1.000000e-01 : f32
    %626 = vector.broadcast %cst_225 : f32 to vector<1x128xf32>
    %627 = arith.mulf %626, %617 : vector<1x128xf32>
    %cst_226 = arith.constant 9.900000e-01 : f32
    %628 = vector.broadcast %cst_226 : f32 to vector<1x128xf32>
    %629 = arith.mulf %628, %619 : vector<1x128xf32>
    %630 = arith.addf %623, %625 : vector<1x128xf32>
    %631 = arith.select %621, %623, %630 : vector<1x128xi1>, vector<1x128xf32>
    %632 = arith.addf %629, %627 : vector<1x128xf32>
    %633 = arith.select %621, %627, %632 : vector<1x128xi1>, vector<1x128xf32>
    %cst_227 = arith.constant 0.000000e+00 : f32
    %634 = vector.broadcast %cst_227 : f32 to vector<1x128xf32>
    %635 = arith.cmpf ogt, %631, %634 : vector<1x128xf32>
    %cst_228 = arith.constant 9.900000e-01 : f32
    %636 = vector.broadcast %cst_228 : f32 to vector<1x128xf32>
    %637 = arith.mulf %636, %631 : vector<1x128xf32>
    %cst_229 = arith.constant 1.000000e-01 : f32
    %638 = vector.broadcast %cst_229 : f32 to vector<1x128xf32>
    %639 = arith.mulf %638, %633 : vector<1x128xf32>
    %cst_230 = arith.constant -1.000000e-01 : f32
    %640 = vector.broadcast %cst_230 : f32 to vector<1x128xf32>
    %641 = arith.mulf %640, %631 : vector<1x128xf32>
    %cst_231 = arith.constant 9.900000e-01 : f32
    %642 = vector.broadcast %cst_231 : f32 to vector<1x128xf32>
    %643 = arith.mulf %642, %633 : vector<1x128xf32>
    %644 = arith.addf %637, %639 : vector<1x128xf32>
    %645 = arith.select %635, %637, %644 : vector<1x128xi1>, vector<1x128xf32>
    %646 = arith.addf %643, %641 : vector<1x128xf32>
    %647 = arith.select %635, %641, %646 : vector<1x128xi1>, vector<1x128xf32>
    %cst_232 = arith.constant 0.000000e+00 : f32
    %648 = vector.broadcast %cst_232 : f32 to vector<1x128xf32>
    %649 = arith.cmpf ogt, %645, %648 : vector<1x128xf32>
    %cst_233 = arith.constant 9.900000e-01 : f32
    %650 = vector.broadcast %cst_233 : f32 to vector<1x128xf32>
    %651 = arith.mulf %650, %645 : vector<1x128xf32>
    %cst_234 = arith.constant 1.000000e-01 : f32
    %652 = vector.broadcast %cst_234 : f32 to vector<1x128xf32>
    %653 = arith.mulf %652, %647 : vector<1x128xf32>
    %cst_235 = arith.constant -1.000000e-01 : f32
    %654 = vector.broadcast %cst_235 : f32 to vector<1x128xf32>
    %655 = arith.mulf %654, %645 : vector<1x128xf32>
    %cst_236 = arith.constant 9.900000e-01 : f32
    %656 = vector.broadcast %cst_236 : f32 to vector<1x128xf32>
    %657 = arith.mulf %656, %647 : vector<1x128xf32>
    %658 = arith.addf %651, %653 : vector<1x128xf32>
    %659 = arith.select %649, %651, %658 : vector<1x128xi1>, vector<1x128xf32>
    %660 = arith.addf %657, %655 : vector<1x128xf32>
    %661 = arith.select %649, %655, %660 : vector<1x128xi1>, vector<1x128xf32>
    %cst_237 = arith.constant 0.000000e+00 : f32
    %662 = vector.broadcast %cst_237 : f32 to vector<1x128xf32>
    %663 = arith.cmpf ogt, %659, %662 : vector<1x128xf32>
    %cst_238 = arith.constant 9.900000e-01 : f32
    %664 = vector.broadcast %cst_238 : f32 to vector<1x128xf32>
    %665 = arith.mulf %664, %659 : vector<1x128xf32>
    %cst_239 = arith.constant 1.000000e-01 : f32
    %666 = vector.broadcast %cst_239 : f32 to vector<1x128xf32>
    %667 = arith.mulf %666, %661 : vector<1x128xf32>
    %cst_240 = arith.constant -1.000000e-01 : f32
    %668 = vector.broadcast %cst_240 : f32 to vector<1x128xf32>
    %669 = arith.mulf %668, %659 : vector<1x128xf32>
    %cst_241 = arith.constant 9.900000e-01 : f32
    %670 = vector.broadcast %cst_241 : f32 to vector<1x128xf32>
    %671 = arith.mulf %670, %661 : vector<1x128xf32>
    %672 = arith.addf %665, %667 : vector<1x128xf32>
    %673 = arith.select %663, %665, %672 : vector<1x128xi1>, vector<1x128xf32>
    %674 = arith.addf %671, %669 : vector<1x128xf32>
    %675 = arith.select %663, %669, %674 : vector<1x128xi1>, vector<1x128xf32>
    %cst_242 = arith.constant 0.000000e+00 : f32
    %676 = vector.broadcast %cst_242 : f32 to vector<1x128xf32>
    %677 = arith.cmpf ogt, %673, %676 : vector<1x128xf32>
    %cst_243 = arith.constant 9.900000e-01 : f32
    %678 = vector.broadcast %cst_243 : f32 to vector<1x128xf32>
    %679 = arith.mulf %678, %673 : vector<1x128xf32>
    %cst_244 = arith.constant 1.000000e-01 : f32
    %680 = vector.broadcast %cst_244 : f32 to vector<1x128xf32>
    %681 = arith.mulf %680, %675 : vector<1x128xf32>
    %cst_245 = arith.constant -1.000000e-01 : f32
    %682 = vector.broadcast %cst_245 : f32 to vector<1x128xf32>
    %683 = arith.mulf %682, %673 : vector<1x128xf32>
    %cst_246 = arith.constant 9.900000e-01 : f32
    %684 = vector.broadcast %cst_246 : f32 to vector<1x128xf32>
    %685 = arith.mulf %684, %675 : vector<1x128xf32>
    %686 = arith.addf %679, %681 : vector<1x128xf32>
    %687 = arith.select %677, %679, %686 : vector<1x128xi1>, vector<1x128xf32>
    %688 = arith.addf %685, %683 : vector<1x128xf32>
    %689 = arith.select %677, %683, %688 : vector<1x128xi1>, vector<1x128xf32>
    %cst_247 = arith.constant 0.000000e+00 : f32
    %690 = vector.broadcast %cst_247 : f32 to vector<1x128xf32>
    %691 = arith.cmpf ogt, %687, %690 : vector<1x128xf32>
    %cst_248 = arith.constant 9.900000e-01 : f32
    %692 = vector.broadcast %cst_248 : f32 to vector<1x128xf32>
    %693 = arith.mulf %692, %687 : vector<1x128xf32>
    %cst_249 = arith.constant 1.000000e-01 : f32
    %694 = vector.broadcast %cst_249 : f32 to vector<1x128xf32>
    %695 = arith.mulf %694, %689 : vector<1x128xf32>
    %cst_250 = arith.constant -1.000000e-01 : f32
    %696 = vector.broadcast %cst_250 : f32 to vector<1x128xf32>
    %697 = arith.mulf %696, %687 : vector<1x128xf32>
    %cst_251 = arith.constant 9.900000e-01 : f32
    %698 = vector.broadcast %cst_251 : f32 to vector<1x128xf32>
    %699 = arith.mulf %698, %689 : vector<1x128xf32>
    %700 = arith.addf %693, %695 : vector<1x128xf32>
    %701 = arith.select %691, %693, %700 : vector<1x128xi1>, vector<1x128xf32>
    %702 = arith.addf %699, %697 : vector<1x128xf32>
    %703 = arith.select %691, %697, %702 : vector<1x128xi1>, vector<1x128xf32>
    %cst_252 = arith.constant 0.000000e+00 : f32
    %704 = vector.broadcast %cst_252 : f32 to vector<1x128xf32>
    %705 = arith.cmpf ogt, %701, %704 : vector<1x128xf32>
    %cst_253 = arith.constant 9.900000e-01 : f32
    %706 = vector.broadcast %cst_253 : f32 to vector<1x128xf32>
    %707 = arith.mulf %706, %701 : vector<1x128xf32>
    %cst_254 = arith.constant 1.000000e-01 : f32
    %708 = vector.broadcast %cst_254 : f32 to vector<1x128xf32>
    %709 = arith.mulf %708, %703 : vector<1x128xf32>
    %cst_255 = arith.constant -1.000000e-01 : f32
    %710 = vector.broadcast %cst_255 : f32 to vector<1x128xf32>
    %711 = arith.mulf %710, %701 : vector<1x128xf32>
    %cst_256 = arith.constant 9.900000e-01 : f32
    %712 = vector.broadcast %cst_256 : f32 to vector<1x128xf32>
    %713 = arith.mulf %712, %703 : vector<1x128xf32>
    %714 = arith.addf %707, %709 : vector<1x128xf32>
    %715 = arith.select %705, %707, %714 : vector<1x128xi1>, vector<1x128xf32>
    %716 = arith.addf %713, %711 : vector<1x128xf32>
    %717 = arith.select %705, %711, %716 : vector<1x128xi1>, vector<1x128xf32>
    %cst_257 = arith.constant 0.000000e+00 : f32
    %718 = vector.broadcast %cst_257 : f32 to vector<1x128xf32>
    %719 = arith.cmpf ogt, %715, %718 : vector<1x128xf32>
    %cst_258 = arith.constant 9.900000e-01 : f32
    %720 = vector.broadcast %cst_258 : f32 to vector<1x128xf32>
    %721 = arith.mulf %720, %715 : vector<1x128xf32>
    %cst_259 = arith.constant 1.000000e-01 : f32
    %722 = vector.broadcast %cst_259 : f32 to vector<1x128xf32>
    %723 = arith.mulf %722, %717 : vector<1x128xf32>
    %cst_260 = arith.constant -1.000000e-01 : f32
    %724 = vector.broadcast %cst_260 : f32 to vector<1x128xf32>
    %725 = arith.mulf %724, %715 : vector<1x128xf32>
    %cst_261 = arith.constant 9.900000e-01 : f32
    %726 = vector.broadcast %cst_261 : f32 to vector<1x128xf32>
    %727 = arith.mulf %726, %717 : vector<1x128xf32>
    %728 = arith.addf %721, %723 : vector<1x128xf32>
    %729 = arith.select %719, %721, %728 : vector<1x128xi1>, vector<1x128xf32>
    %730 = arith.addf %727, %725 : vector<1x128xf32>
    %731 = arith.select %719, %725, %730 : vector<1x128xi1>, vector<1x128xf32>
    %cst_262 = arith.constant 0.000000e+00 : f32
    %732 = vector.broadcast %cst_262 : f32 to vector<1x128xf32>
    %733 = arith.cmpf ogt, %729, %732 : vector<1x128xf32>
    %cst_263 = arith.constant 9.900000e-01 : f32
    %734 = vector.broadcast %cst_263 : f32 to vector<1x128xf32>
    %735 = arith.mulf %734, %729 : vector<1x128xf32>
    %cst_264 = arith.constant 1.000000e-01 : f32
    %736 = vector.broadcast %cst_264 : f32 to vector<1x128xf32>
    %737 = arith.mulf %736, %731 : vector<1x128xf32>
    %cst_265 = arith.constant -1.000000e-01 : f32
    %738 = vector.broadcast %cst_265 : f32 to vector<1x128xf32>
    %739 = arith.mulf %738, %729 : vector<1x128xf32>
    %cst_266 = arith.constant 9.900000e-01 : f32
    %740 = vector.broadcast %cst_266 : f32 to vector<1x128xf32>
    %741 = arith.mulf %740, %731 : vector<1x128xf32>
    %742 = arith.addf %735, %737 : vector<1x128xf32>
    %743 = arith.select %733, %735, %742 : vector<1x128xi1>, vector<1x128xf32>
    %744 = arith.addf %741, %739 : vector<1x128xf32>
    %745 = arith.select %733, %739, %744 : vector<1x128xi1>, vector<1x128xf32>
    %cst_267 = arith.constant 0.000000e+00 : f32
    %746 = vector.broadcast %cst_267 : f32 to vector<1x128xf32>
    %747 = arith.cmpf ogt, %743, %746 : vector<1x128xf32>
    %cst_268 = arith.constant 9.900000e-01 : f32
    %748 = vector.broadcast %cst_268 : f32 to vector<1x128xf32>
    %749 = arith.mulf %748, %743 : vector<1x128xf32>
    %cst_269 = arith.constant 1.000000e-01 : f32
    %750 = vector.broadcast %cst_269 : f32 to vector<1x128xf32>
    %751 = arith.mulf %750, %745 : vector<1x128xf32>
    %cst_270 = arith.constant -1.000000e-01 : f32
    %752 = vector.broadcast %cst_270 : f32 to vector<1x128xf32>
    %753 = arith.mulf %752, %743 : vector<1x128xf32>
    %cst_271 = arith.constant 9.900000e-01 : f32
    %754 = vector.broadcast %cst_271 : f32 to vector<1x128xf32>
    %755 = arith.mulf %754, %745 : vector<1x128xf32>
    %756 = arith.addf %749, %751 : vector<1x128xf32>
    %757 = arith.select %747, %749, %756 : vector<1x128xi1>, vector<1x128xf32>
    %758 = arith.addf %755, %753 : vector<1x128xf32>
    %759 = arith.select %747, %753, %758 : vector<1x128xi1>, vector<1x128xf32>
    %cst_272 = arith.constant 0.000000e+00 : f32
    %760 = vector.broadcast %cst_272 : f32 to vector<1x128xf32>
    %761 = arith.cmpf ogt, %757, %760 : vector<1x128xf32>
    %cst_273 = arith.constant 9.900000e-01 : f32
    %762 = vector.broadcast %cst_273 : f32 to vector<1x128xf32>
    %763 = arith.mulf %762, %757 : vector<1x128xf32>
    %cst_274 = arith.constant 1.000000e-01 : f32
    %764 = vector.broadcast %cst_274 : f32 to vector<1x128xf32>
    %765 = arith.mulf %764, %759 : vector<1x128xf32>
    %cst_275 = arith.constant -1.000000e-01 : f32
    %766 = vector.broadcast %cst_275 : f32 to vector<1x128xf32>
    %767 = arith.mulf %766, %757 : vector<1x128xf32>
    %cst_276 = arith.constant 9.900000e-01 : f32
    %768 = vector.broadcast %cst_276 : f32 to vector<1x128xf32>
    %769 = arith.mulf %768, %759 : vector<1x128xf32>
    %770 = arith.addf %763, %765 : vector<1x128xf32>
    %771 = arith.select %761, %763, %770 : vector<1x128xi1>, vector<1x128xf32>
    %772 = arith.addf %769, %767 : vector<1x128xf32>
    %773 = arith.select %761, %767, %772 : vector<1x128xi1>, vector<1x128xf32>
    %cst_277 = arith.constant 0.000000e+00 : f32
    %774 = vector.broadcast %cst_277 : f32 to vector<1x128xf32>
    %775 = arith.cmpf ogt, %771, %774 : vector<1x128xf32>
    %cst_278 = arith.constant 9.900000e-01 : f32
    %776 = vector.broadcast %cst_278 : f32 to vector<1x128xf32>
    %777 = arith.mulf %776, %771 : vector<1x128xf32>
    %cst_279 = arith.constant 1.000000e-01 : f32
    %778 = vector.broadcast %cst_279 : f32 to vector<1x128xf32>
    %779 = arith.mulf %778, %773 : vector<1x128xf32>
    %cst_280 = arith.constant -1.000000e-01 : f32
    %780 = vector.broadcast %cst_280 : f32 to vector<1x128xf32>
    %781 = arith.mulf %780, %771 : vector<1x128xf32>
    %cst_281 = arith.constant 9.900000e-01 : f32
    %782 = vector.broadcast %cst_281 : f32 to vector<1x128xf32>
    %783 = arith.mulf %782, %773 : vector<1x128xf32>
    %784 = arith.addf %777, %779 : vector<1x128xf32>
    %785 = arith.select %775, %777, %784 : vector<1x128xi1>, vector<1x128xf32>
    %786 = arith.addf %783, %781 : vector<1x128xf32>
    %787 = arith.select %775, %781, %786 : vector<1x128xi1>, vector<1x128xf32>
    %cst_282 = arith.constant 0.000000e+00 : f32
    %788 = vector.broadcast %cst_282 : f32 to vector<1x128xf32>
    %789 = arith.cmpf ogt, %785, %788 : vector<1x128xf32>
    %cst_283 = arith.constant 9.900000e-01 : f32
    %790 = vector.broadcast %cst_283 : f32 to vector<1x128xf32>
    %791 = arith.mulf %790, %785 : vector<1x128xf32>
    %cst_284 = arith.constant 1.000000e-01 : f32
    %792 = vector.broadcast %cst_284 : f32 to vector<1x128xf32>
    %793 = arith.mulf %792, %787 : vector<1x128xf32>
    %cst_285 = arith.constant -1.000000e-01 : f32
    %794 = vector.broadcast %cst_285 : f32 to vector<1x128xf32>
    %795 = arith.mulf %794, %785 : vector<1x128xf32>
    %cst_286 = arith.constant 9.900000e-01 : f32
    %796 = vector.broadcast %cst_286 : f32 to vector<1x128xf32>
    %797 = arith.mulf %796, %787 : vector<1x128xf32>
    %798 = arith.addf %791, %793 : vector<1x128xf32>
    %799 = arith.select %789, %791, %798 : vector<1x128xi1>, vector<1x128xf32>
    %800 = arith.addf %797, %795 : vector<1x128xf32>
    %801 = arith.select %789, %795, %800 : vector<1x128xi1>, vector<1x128xf32>
    %cst_287 = arith.constant 0.000000e+00 : f32
    %802 = vector.broadcast %cst_287 : f32 to vector<1x128xf32>
    %803 = arith.cmpf ogt, %799, %802 : vector<1x128xf32>
    %cst_288 = arith.constant 9.900000e-01 : f32
    %804 = vector.broadcast %cst_288 : f32 to vector<1x128xf32>
    %805 = arith.mulf %804, %799 : vector<1x128xf32>
    %cst_289 = arith.constant 1.000000e-01 : f32
    %806 = vector.broadcast %cst_289 : f32 to vector<1x128xf32>
    %807 = arith.mulf %806, %801 : vector<1x128xf32>
    %cst_290 = arith.constant -1.000000e-01 : f32
    %808 = vector.broadcast %cst_290 : f32 to vector<1x128xf32>
    %809 = arith.mulf %808, %799 : vector<1x128xf32>
    %cst_291 = arith.constant 9.900000e-01 : f32
    %810 = vector.broadcast %cst_291 : f32 to vector<1x128xf32>
    %811 = arith.mulf %810, %801 : vector<1x128xf32>
    %812 = arith.addf %805, %807 : vector<1x128xf32>
    %813 = arith.select %803, %805, %812 : vector<1x128xi1>, vector<1x128xf32>
    %814 = arith.addf %811, %809 : vector<1x128xf32>
    %815 = arith.select %803, %809, %814 : vector<1x128xi1>, vector<1x128xf32>
    %cst_292 = arith.constant 0.000000e+00 : f32
    %816 = vector.broadcast %cst_292 : f32 to vector<1x128xf32>
    %817 = arith.cmpf ogt, %813, %816 : vector<1x128xf32>
    %cst_293 = arith.constant 9.900000e-01 : f32
    %818 = vector.broadcast %cst_293 : f32 to vector<1x128xf32>
    %819 = arith.mulf %818, %813 : vector<1x128xf32>
    %cst_294 = arith.constant 1.000000e-01 : f32
    %820 = vector.broadcast %cst_294 : f32 to vector<1x128xf32>
    %821 = arith.mulf %820, %815 : vector<1x128xf32>
    %cst_295 = arith.constant -1.000000e-01 : f32
    %822 = vector.broadcast %cst_295 : f32 to vector<1x128xf32>
    %823 = arith.mulf %822, %813 : vector<1x128xf32>
    %cst_296 = arith.constant 9.900000e-01 : f32
    %824 = vector.broadcast %cst_296 : f32 to vector<1x128xf32>
    %825 = arith.mulf %824, %815 : vector<1x128xf32>
    %826 = arith.addf %819, %821 : vector<1x128xf32>
    %827 = arith.select %817, %819, %826 : vector<1x128xi1>, vector<1x128xf32>
    %828 = arith.addf %825, %823 : vector<1x128xf32>
    %829 = arith.select %817, %823, %828 : vector<1x128xi1>, vector<1x128xf32>
    %cst_297 = arith.constant 0.000000e+00 : f32
    %830 = vector.broadcast %cst_297 : f32 to vector<1x128xf32>
    %831 = arith.cmpf ogt, %827, %830 : vector<1x128xf32>
    %cst_298 = arith.constant 9.900000e-01 : f32
    %832 = vector.broadcast %cst_298 : f32 to vector<1x128xf32>
    %833 = arith.mulf %832, %827 : vector<1x128xf32>
    %cst_299 = arith.constant 1.000000e-01 : f32
    %834 = vector.broadcast %cst_299 : f32 to vector<1x128xf32>
    %835 = arith.mulf %834, %829 : vector<1x128xf32>
    %cst_300 = arith.constant -1.000000e-01 : f32
    %836 = vector.broadcast %cst_300 : f32 to vector<1x128xf32>
    %837 = arith.mulf %836, %827 : vector<1x128xf32>
    %cst_301 = arith.constant 9.900000e-01 : f32
    %838 = vector.broadcast %cst_301 : f32 to vector<1x128xf32>
    %839 = arith.mulf %838, %829 : vector<1x128xf32>
    %840 = arith.addf %833, %835 : vector<1x128xf32>
    %841 = arith.select %831, %833, %840 : vector<1x128xi1>, vector<1x128xf32>
    %842 = arith.addf %839, %837 : vector<1x128xf32>
    %843 = arith.select %831, %837, %842 : vector<1x128xi1>, vector<1x128xf32>
    %cst_302 = arith.constant 0.000000e+00 : f32
    %844 = vector.broadcast %cst_302 : f32 to vector<1x128xf32>
    %845 = arith.cmpf ogt, %841, %844 : vector<1x128xf32>
    %cst_303 = arith.constant 9.900000e-01 : f32
    %846 = vector.broadcast %cst_303 : f32 to vector<1x128xf32>
    %847 = arith.mulf %846, %841 : vector<1x128xf32>
    %cst_304 = arith.constant 1.000000e-01 : f32
    %848 = vector.broadcast %cst_304 : f32 to vector<1x128xf32>
    %849 = arith.mulf %848, %843 : vector<1x128xf32>
    %cst_305 = arith.constant -1.000000e-01 : f32
    %850 = vector.broadcast %cst_305 : f32 to vector<1x128xf32>
    %851 = arith.mulf %850, %841 : vector<1x128xf32>
    %cst_306 = arith.constant 9.900000e-01 : f32
    %852 = vector.broadcast %cst_306 : f32 to vector<1x128xf32>
    %853 = arith.mulf %852, %843 : vector<1x128xf32>
    %854 = arith.addf %847, %849 : vector<1x128xf32>
    %855 = arith.select %845, %847, %854 : vector<1x128xi1>, vector<1x128xf32>
    %856 = arith.addf %853, %851 : vector<1x128xf32>
    %857 = arith.select %845, %851, %856 : vector<1x128xi1>, vector<1x128xf32>
    %cst_307 = arith.constant 0.000000e+00 : f32
    %858 = vector.broadcast %cst_307 : f32 to vector<1x128xf32>
    %859 = arith.cmpf ogt, %855, %858 : vector<1x128xf32>
    %cst_308 = arith.constant 9.900000e-01 : f32
    %860 = vector.broadcast %cst_308 : f32 to vector<1x128xf32>
    %861 = arith.mulf %860, %855 : vector<1x128xf32>
    %cst_309 = arith.constant 1.000000e-01 : f32
    %862 = vector.broadcast %cst_309 : f32 to vector<1x128xf32>
    %863 = arith.mulf %862, %857 : vector<1x128xf32>
    %cst_310 = arith.constant -1.000000e-01 : f32
    %864 = vector.broadcast %cst_310 : f32 to vector<1x128xf32>
    %865 = arith.mulf %864, %855 : vector<1x128xf32>
    %cst_311 = arith.constant 9.900000e-01 : f32
    %866 = vector.broadcast %cst_311 : f32 to vector<1x128xf32>
    %867 = arith.mulf %866, %857 : vector<1x128xf32>
    %868 = arith.addf %861, %863 : vector<1x128xf32>
    %869 = arith.select %859, %861, %868 : vector<1x128xi1>, vector<1x128xf32>
    %870 = arith.addf %867, %865 : vector<1x128xf32>
    %871 = arith.select %859, %865, %870 : vector<1x128xi1>, vector<1x128xf32>
    %cst_312 = arith.constant 0.000000e+00 : f32
    %872 = vector.broadcast %cst_312 : f32 to vector<1x128xf32>
    %873 = arith.cmpf ogt, %869, %872 : vector<1x128xf32>
    %cst_313 = arith.constant 9.900000e-01 : f32
    %874 = vector.broadcast %cst_313 : f32 to vector<1x128xf32>
    %875 = arith.mulf %874, %869 : vector<1x128xf32>
    %cst_314 = arith.constant 1.000000e-01 : f32
    %876 = vector.broadcast %cst_314 : f32 to vector<1x128xf32>
    %877 = arith.mulf %876, %871 : vector<1x128xf32>
    %cst_315 = arith.constant -1.000000e-01 : f32
    %878 = vector.broadcast %cst_315 : f32 to vector<1x128xf32>
    %879 = arith.mulf %878, %869 : vector<1x128xf32>
    %cst_316 = arith.constant 9.900000e-01 : f32
    %880 = vector.broadcast %cst_316 : f32 to vector<1x128xf32>
    %881 = arith.mulf %880, %871 : vector<1x128xf32>
    %882 = arith.addf %875, %877 : vector<1x128xf32>
    %883 = arith.select %873, %875, %882 : vector<1x128xi1>, vector<1x128xf32>
    %884 = arith.addf %881, %879 : vector<1x128xf32>
    %885 = arith.select %873, %879, %884 : vector<1x128xi1>, vector<1x128xf32>
    %cst_317 = arith.constant 0.000000e+00 : f32
    %886 = vector.broadcast %cst_317 : f32 to vector<1x128xf32>
    %887 = arith.cmpf ogt, %883, %886 : vector<1x128xf32>
    %cst_318 = arith.constant 9.900000e-01 : f32
    %888 = vector.broadcast %cst_318 : f32 to vector<1x128xf32>
    %889 = arith.mulf %888, %883 : vector<1x128xf32>
    %cst_319 = arith.constant 1.000000e-01 : f32
    %890 = vector.broadcast %cst_319 : f32 to vector<1x128xf32>
    %891 = arith.mulf %890, %885 : vector<1x128xf32>
    %cst_320 = arith.constant -1.000000e-01 : f32
    %892 = vector.broadcast %cst_320 : f32 to vector<1x128xf32>
    %893 = arith.mulf %892, %883 : vector<1x128xf32>
    %cst_321 = arith.constant 9.900000e-01 : f32
    %894 = vector.broadcast %cst_321 : f32 to vector<1x128xf32>
    %895 = arith.mulf %894, %885 : vector<1x128xf32>
    %896 = arith.addf %889, %891 : vector<1x128xf32>
    %897 = arith.select %887, %889, %896 : vector<1x128xi1>, vector<1x128xf32>
    %898 = arith.addf %895, %893 : vector<1x128xf32>
    %899 = arith.select %887, %893, %898 : vector<1x128xi1>, vector<1x128xf32>
    %cst_322 = arith.constant 0.000000e+00 : f32
    %900 = vector.broadcast %cst_322 : f32 to vector<1x128xf32>
    %901 = arith.cmpf ogt, %897, %900 : vector<1x128xf32>
    %cst_323 = arith.constant 9.900000e-01 : f32
    %902 = vector.broadcast %cst_323 : f32 to vector<1x128xf32>
    %903 = arith.mulf %902, %897 : vector<1x128xf32>
    %cst_324 = arith.constant 1.000000e-01 : f32
    %904 = vector.broadcast %cst_324 : f32 to vector<1x128xf32>
    %905 = arith.mulf %904, %899 : vector<1x128xf32>
    %cst_325 = arith.constant -1.000000e-01 : f32
    %906 = vector.broadcast %cst_325 : f32 to vector<1x128xf32>
    %907 = arith.mulf %906, %897 : vector<1x128xf32>
    %cst_326 = arith.constant 9.900000e-01 : f32
    %908 = vector.broadcast %cst_326 : f32 to vector<1x128xf32>
    %909 = arith.mulf %908, %899 : vector<1x128xf32>
    %910 = arith.addf %903, %905 : vector<1x128xf32>
    %911 = arith.select %901, %903, %910 : vector<1x128xi1>, vector<1x128xf32>
    %912 = arith.addf %909, %907 : vector<1x128xf32>
    %913 = arith.select %901, %907, %912 : vector<1x128xi1>, vector<1x128xf32>
    %cst_327 = arith.constant 0.000000e+00 : f32
    %914 = vector.broadcast %cst_327 : f32 to vector<1x128xf32>
    %915 = arith.cmpf ogt, %911, %914 : vector<1x128xf32>
    %cst_328 = arith.constant 9.900000e-01 : f32
    %916 = vector.broadcast %cst_328 : f32 to vector<1x128xf32>
    %917 = arith.mulf %916, %911 : vector<1x128xf32>
    %cst_329 = arith.constant 1.000000e-01 : f32
    %918 = vector.broadcast %cst_329 : f32 to vector<1x128xf32>
    %919 = arith.mulf %918, %913 : vector<1x128xf32>
    %cst_330 = arith.constant -1.000000e-01 : f32
    %920 = vector.broadcast %cst_330 : f32 to vector<1x128xf32>
    %921 = arith.mulf %920, %911 : vector<1x128xf32>
    %cst_331 = arith.constant 9.900000e-01 : f32
    %922 = vector.broadcast %cst_331 : f32 to vector<1x128xf32>
    %923 = arith.mulf %922, %913 : vector<1x128xf32>
    %924 = arith.addf %917, %919 : vector<1x128xf32>
    %925 = arith.select %915, %917, %924 : vector<1x128xi1>, vector<1x128xf32>
    %926 = arith.addf %923, %921 : vector<1x128xf32>
    %927 = arith.select %915, %921, %926 : vector<1x128xi1>, vector<1x128xf32>
    %cst_332 = arith.constant 0.000000e+00 : f32
    %928 = vector.broadcast %cst_332 : f32 to vector<1x128xf32>
    %929 = arith.cmpf ogt, %925, %928 : vector<1x128xf32>
    %cst_333 = arith.constant 9.900000e-01 : f32
    %930 = vector.broadcast %cst_333 : f32 to vector<1x128xf32>
    %931 = arith.mulf %930, %925 : vector<1x128xf32>
    %cst_334 = arith.constant 1.000000e-01 : f32
    %932 = vector.broadcast %cst_334 : f32 to vector<1x128xf32>
    %933 = arith.mulf %932, %927 : vector<1x128xf32>
    %cst_335 = arith.constant -1.000000e-01 : f32
    %934 = vector.broadcast %cst_335 : f32 to vector<1x128xf32>
    %935 = arith.mulf %934, %925 : vector<1x128xf32>
    %cst_336 = arith.constant 9.900000e-01 : f32
    %936 = vector.broadcast %cst_336 : f32 to vector<1x128xf32>
    %937 = arith.mulf %936, %927 : vector<1x128xf32>
    %938 = arith.addf %931, %933 : vector<1x128xf32>
    %939 = arith.select %929, %931, %938 : vector<1x128xi1>, vector<1x128xf32>
    %940 = arith.addf %937, %935 : vector<1x128xf32>
    %941 = arith.select %929, %935, %940 : vector<1x128xi1>, vector<1x128xf32>
    %942 = arith.addf %941, %21 : vector<1x128xf32>
    %cst_337 = arith.constant 0.000000e+00 : f32
    %943 = vector.broadcast %cst_337 : f32 to vector<1x128xf32>
    %944 = arith.cmpf ogt, %939, %943 : vector<1x128xf32>
    %cst_338 = arith.constant 9.900000e-01 : f32
    %945 = vector.broadcast %cst_338 : f32 to vector<1x128xf32>
    %946 = arith.mulf %945, %939 : vector<1x128xf32>
    %cst_339 = arith.constant 1.000000e-01 : f32
    %947 = vector.broadcast %cst_339 : f32 to vector<1x128xf32>
    %948 = arith.mulf %947, %942 : vector<1x128xf32>
    %cst_340 = arith.constant -1.000000e-01 : f32
    %949 = vector.broadcast %cst_340 : f32 to vector<1x128xf32>
    %950 = arith.mulf %949, %939 : vector<1x128xf32>
    %cst_341 = arith.constant 9.900000e-01 : f32
    %951 = vector.broadcast %cst_341 : f32 to vector<1x128xf32>
    %952 = arith.mulf %951, %942 : vector<1x128xf32>
    %953 = arith.addf %946, %948 : vector<1x128xf32>
    %954 = arith.select %944, %946, %953 : vector<1x128xi1>, vector<1x128xf32>
    %955 = arith.addf %952, %950 : vector<1x128xf32>
    %956 = arith.select %944, %950, %955 : vector<1x128xi1>, vector<1x128xf32>
    %cst_342 = arith.constant 0.000000e+00 : f32
    %957 = vector.broadcast %cst_342 : f32 to vector<1x128xf32>
    %958 = arith.cmpf ogt, %954, %957 : vector<1x128xf32>
    %cst_343 = arith.constant 9.900000e-01 : f32
    %959 = vector.broadcast %cst_343 : f32 to vector<1x128xf32>
    %960 = arith.mulf %959, %954 : vector<1x128xf32>
    %cst_344 = arith.constant 1.000000e-01 : f32
    %961 = vector.broadcast %cst_344 : f32 to vector<1x128xf32>
    %962 = arith.mulf %961, %956 : vector<1x128xf32>
    %cst_345 = arith.constant -1.000000e-01 : f32
    %963 = vector.broadcast %cst_345 : f32 to vector<1x128xf32>
    %964 = arith.mulf %963, %954 : vector<1x128xf32>
    %cst_346 = arith.constant 9.900000e-01 : f32
    %965 = vector.broadcast %cst_346 : f32 to vector<1x128xf32>
    %966 = arith.mulf %965, %956 : vector<1x128xf32>
    %967 = arith.addf %960, %962 : vector<1x128xf32>
    %968 = arith.select %958, %960, %967 : vector<1x128xi1>, vector<1x128xf32>
    %969 = arith.addf %966, %964 : vector<1x128xf32>
    %970 = arith.select %958, %964, %969 : vector<1x128xi1>, vector<1x128xf32>
    %cst_347 = arith.constant 0.000000e+00 : f32
    %971 = vector.broadcast %cst_347 : f32 to vector<1x128xf32>
    %972 = arith.cmpf ogt, %968, %971 : vector<1x128xf32>
    %cst_348 = arith.constant 9.900000e-01 : f32
    %973 = vector.broadcast %cst_348 : f32 to vector<1x128xf32>
    %974 = arith.mulf %973, %968 : vector<1x128xf32>
    %cst_349 = arith.constant 1.000000e-01 : f32
    %975 = vector.broadcast %cst_349 : f32 to vector<1x128xf32>
    %976 = arith.mulf %975, %970 : vector<1x128xf32>
    %cst_350 = arith.constant -1.000000e-01 : f32
    %977 = vector.broadcast %cst_350 : f32 to vector<1x128xf32>
    %978 = arith.mulf %977, %968 : vector<1x128xf32>
    %cst_351 = arith.constant 9.900000e-01 : f32
    %979 = vector.broadcast %cst_351 : f32 to vector<1x128xf32>
    %980 = arith.mulf %979, %970 : vector<1x128xf32>
    %981 = arith.addf %974, %976 : vector<1x128xf32>
    %982 = arith.select %972, %974, %981 : vector<1x128xi1>, vector<1x128xf32>
    %983 = arith.addf %980, %978 : vector<1x128xf32>
    %984 = arith.select %972, %978, %983 : vector<1x128xi1>, vector<1x128xf32>
    %cst_352 = arith.constant 0.000000e+00 : f32
    %985 = vector.broadcast %cst_352 : f32 to vector<1x128xf32>
    %986 = arith.cmpf ogt, %982, %985 : vector<1x128xf32>
    %cst_353 = arith.constant 9.900000e-01 : f32
    %987 = vector.broadcast %cst_353 : f32 to vector<1x128xf32>
    %988 = arith.mulf %987, %982 : vector<1x128xf32>
    %cst_354 = arith.constant 1.000000e-01 : f32
    %989 = vector.broadcast %cst_354 : f32 to vector<1x128xf32>
    %990 = arith.mulf %989, %984 : vector<1x128xf32>
    %cst_355 = arith.constant -1.000000e-01 : f32
    %991 = vector.broadcast %cst_355 : f32 to vector<1x128xf32>
    %992 = arith.mulf %991, %982 : vector<1x128xf32>
    %cst_356 = arith.constant 9.900000e-01 : f32
    %993 = vector.broadcast %cst_356 : f32 to vector<1x128xf32>
    %994 = arith.mulf %993, %984 : vector<1x128xf32>
    %995 = arith.addf %988, %990 : vector<1x128xf32>
    %996 = arith.select %986, %988, %995 : vector<1x128xi1>, vector<1x128xf32>
    %997 = arith.addf %994, %992 : vector<1x128xf32>
    %998 = arith.select %986, %992, %997 : vector<1x128xi1>, vector<1x128xf32>
    %cst_357 = arith.constant 0.000000e+00 : f32
    %999 = vector.broadcast %cst_357 : f32 to vector<1x128xf32>
    %1000 = arith.cmpf ogt, %996, %999 : vector<1x128xf32>
    %cst_358 = arith.constant 9.900000e-01 : f32
    %1001 = vector.broadcast %cst_358 : f32 to vector<1x128xf32>
    %1002 = arith.mulf %1001, %996 : vector<1x128xf32>
    %cst_359 = arith.constant 1.000000e-01 : f32
    %1003 = vector.broadcast %cst_359 : f32 to vector<1x128xf32>
    %1004 = arith.mulf %1003, %998 : vector<1x128xf32>
    %cst_360 = arith.constant -1.000000e-01 : f32
    %1005 = vector.broadcast %cst_360 : f32 to vector<1x128xf32>
    %1006 = arith.mulf %1005, %996 : vector<1x128xf32>
    %cst_361 = arith.constant 9.900000e-01 : f32
    %1007 = vector.broadcast %cst_361 : f32 to vector<1x128xf32>
    %1008 = arith.mulf %1007, %998 : vector<1x128xf32>
    %1009 = arith.addf %1002, %1004 : vector<1x128xf32>
    %1010 = arith.select %1000, %1002, %1009 : vector<1x128xi1>, vector<1x128xf32>
    %1011 = arith.addf %1008, %1006 : vector<1x128xf32>
    %1012 = arith.select %1000, %1006, %1011 : vector<1x128xi1>, vector<1x128xf32>
    %cst_362 = arith.constant 0.000000e+00 : f32
    %1013 = vector.broadcast %cst_362 : f32 to vector<1x128xf32>
    %1014 = arith.cmpf ogt, %1010, %1013 : vector<1x128xf32>
    %cst_363 = arith.constant 9.900000e-01 : f32
    %1015 = vector.broadcast %cst_363 : f32 to vector<1x128xf32>
    %1016 = arith.mulf %1015, %1010 : vector<1x128xf32>
    %cst_364 = arith.constant 1.000000e-01 : f32
    %1017 = vector.broadcast %cst_364 : f32 to vector<1x128xf32>
    %1018 = arith.mulf %1017, %1012 : vector<1x128xf32>
    %cst_365 = arith.constant -1.000000e-01 : f32
    %1019 = vector.broadcast %cst_365 : f32 to vector<1x128xf32>
    %1020 = arith.mulf %1019, %1010 : vector<1x128xf32>
    %cst_366 = arith.constant 9.900000e-01 : f32
    %1021 = vector.broadcast %cst_366 : f32 to vector<1x128xf32>
    %1022 = arith.mulf %1021, %1012 : vector<1x128xf32>
    %1023 = arith.addf %1016, %1018 : vector<1x128xf32>
    %1024 = arith.select %1014, %1016, %1023 : vector<1x128xi1>, vector<1x128xf32>
    %1025 = arith.addf %1022, %1020 : vector<1x128xf32>
    %1026 = arith.select %1014, %1020, %1025 : vector<1x128xi1>, vector<1x128xf32>
    %cst_367 = arith.constant 0.000000e+00 : f32
    %1027 = vector.broadcast %cst_367 : f32 to vector<1x128xf32>
    %1028 = arith.cmpf ogt, %1024, %1027 : vector<1x128xf32>
    %cst_368 = arith.constant 9.900000e-01 : f32
    %1029 = vector.broadcast %cst_368 : f32 to vector<1x128xf32>
    %1030 = arith.mulf %1029, %1024 : vector<1x128xf32>
    %cst_369 = arith.constant 1.000000e-01 : f32
    %1031 = vector.broadcast %cst_369 : f32 to vector<1x128xf32>
    %1032 = arith.mulf %1031, %1026 : vector<1x128xf32>
    %1033 = arith.addf %1030, %1032 : vector<1x128xf32>
    %1034 = arith.select %1028, %1030, %1033 : vector<1x128xi1>, vector<1x128xf32>
    %c0_370 = arith.constant 0 : index
    %c0_371 = arith.constant 0 : index
    %1035 = vector.load %arg2[%c0_370, %c0_371] : memref<1x128xf32, #tpu.memory_space<vmem>>, vector<1x128xf32>
    tpu.vector_store %arg2[%c0_370, %c0_371], %1034 {strides = array<i32>} : memref<1x128xf32, #tpu.memory_space<vmem>>, vector<1x128xf32>,
    return
  }
}

</mosaic_0001>

<bundles_post_ra>
// kernel: tpu_custom_call.1
= control target key start
LH: loop header
LB: loop body
LE: loop exit
PB: predicated region body
PF: predicated region fallthrough
CT: control target
= control target key end

     0   :  { %7 = vsyncpa [#allocation3], 0  ;;  %s1497_s0 = inlined_call_operand.hbm [shape: f32[1,128], index: 0, kind: input, shape index: {}]   ;;  %s1498_s1 = inlined_call_operand.hbm [shape: f32[1,128], index: 1, kind: input, shape index: {}]   ;;  %s1499_s2 = inlined_call_operand.hbm [shape: f32[1,128], index: 2, kind: output, shape index: {}]  }
   0x1   :  { %8 = vsyncpa [#allocation6], 0 }
   0x2   :  { %9 = vsyncpa [#allocation4], 0  ;;  %s15_s11 = sshll.u32 %s1497_s0, 4  ;;  %s1441_s12 = smov [#allocation2]   ;;  %s16_s11 = int_to_ptr.hbm [resolvable:$true] %s15_s11 }
   0x3   :  { %s17_s13 = sshll.u32 %s1441_s12, 4  ;;  %s26_s16 = sshll.u32 %s1498_s1, 4  ;;  %s18_s13 = int_to_ptr.vmem [resolvable:$true] %s17_s13  ;;  %s27_s16 = int_to_ptr.hbm [resolvable:$true] %s26_s16 }
   0x4   :  { %20 = dma.hbm_to_vmem [thread:$0]  %s16_s11, 16, %s18_s13, [#allocation3]  }
   0x5   :  { %s1442_s17 = smov [#allocation5]  }
   0x6   :  { %s28_s18 = sshll.u32 %s1442_s17, 4  ;;  %s29_s18 = int_to_ptr.vmem [resolvable:$true] %s28_s18 }
   0x7   :  { %31 = dma.hbm_to_vmem [thread:$0]  %s27_s16, 16, %s29_s18, [#allocation6]  }
   0x8   :  { %1423 = dma.done.wait [#allocation3], 16  }
   0x9   :  { %1424 = vsyncadd [#allocation3], 4294967280 }
   0xa   :  { %1425 = dma.done.wait [#allocation6], 16  }
   0xb   :  { %1426 = vsyncadd [#allocation6], 4294967280  ;;  %v40_v0 = vld [vmem:[#allocation2] sm:$0x1]  ;;  %v44_v1 = vld [vmem:[#allocation5] sm:$0x1] }
   0xc   :  { %vm41_vm0 = vcmp.gt.f32.partialorder %v40_v0, 0.0  ;;  %vm45_vm1 = vcmp.gt.f32.partialorder %v44_v1, 0.0  ;;  %v1443_v2 = vmov 0.0   ;;  %s1476_s0 = smov 0  }
   0xd   :  { %v1309_v3 = vsel %vm41_vm0, 1.0, %v1443_v2  ;;  %v1310_v4 = vsel %vm45_vm1, 1.0, %v1443_v2 }
   0xe   :  { %v48_v5 = vadd.f32 %v1310_v4, %v1309_v3 }
  0x10   :  { %v49_v6 = vmul.f32 0.01, %v48_v5  ;;  %v50_v7 = vsub.f32 2.0, %v48_v5 }
  0x12   :  { %v51_v8 = vmul.f32 0.01, %v50_v7  ;;  %v52_v9 = vmul.f32 0.0, %v49_v6  ;;  %v55_v10 = vmul.f32 20.0, %v49_v6 }
  0x14   :  { %v53_v11 = vmul.f32 20.0, %v51_v8 }
  0x16   :  { %v1466_v12 = vadd.f32 %v53_v11, %v52_v9  ;;  %v1468_v13 = vadd.f32 %v55_v10, %v53_v11 }
  0x18   :  { %v60_v14 = vmul.f32 0.1, %v1466_v12  ;;  %v61_v15 = vmul.f32 0.99, %v1466_v12 }
  0x1a   :  { %v66_v16 = vmul.f32 0.99, %v60_v14  ;;  %v67_v17 = vmul.f32 0.1, %v61_v15  ;;  %vm65_vm2 = vcmp.gt.f32.partialorder %v60_v14, 0.0 }
  0x1b   :  { %v68_v18 = vmul.f32 -0.1, %v60_v14  ;;  %v69_v19 = vmul.f32 0.99, %v61_v15 }
  0x1c   :  { %v70_v20 = vadd.f32 %v67_v17, %v66_v16 }
  0x1d   :  { %v72_v21 = vadd.f32 %v69_v19, %v68_v18 }
  0x1e   :  { %v71_v22 = vsel %vm65_vm2, %v66_v16, %v70_v20 }
  0x1f   :  { %v73_v23 = vsel %vm65_vm2, %v68_v18, %v72_v21  ;;  %v75_v24 = vmul.f32 0.99, %v71_v22  ;;  %v77_v25 = vmul.f32 -0.1, %v71_v22  ;;  %vm74_vm3 = vcmp.gt.f32.partialorder %v71_v22, 0.0 }
  0x20   :  { %v76_v26 = vmul.f32 0.1, %v73_v23  ;;  %v78_v27 = vmul.f32 0.99, %v73_v23 }
  0x22   :  { %v79_v28 = vadd.f32 %v76_v26, %v75_v24  ;;  %v81_v29 = vadd.f32 %v78_v27, %v77_v25 }
  0x24   :  { %v80_v30 = vsel %vm74_vm3, %v75_v24, %v79_v28  ;;  %v82_v31 = vsel %vm74_vm3, %v77_v25, %v81_v29 }
  0x25   :  { %v84_v32 = vmul.f32 0.99, %v80_v30  ;;  %v85_v33 = vmul.f32 0.1, %v82_v31  ;;  %vm83_vm4 = vcmp.gt.f32.partialorder %v80_v30, 0.0 }
  0x26   :  { %v86_v34 = vmul.f32 -0.1, %v80_v30  ;;  %v87_v35 = vmul.f32 0.99, %v82_v31 }
  0x27   :  { %v88_v36 = vadd.f32 %v85_v33, %v84_v32 }
  0x28   :  { %v90_v37 = vadd.f32 %v87_v35, %v86_v34 }
  0x29   :  { %v89_v38 = vsel %vm83_vm4, %v84_v32, %v88_v36 }
  0x2a   :  { %v91_v39 = vsel %vm83_vm4, %v86_v34, %v90_v37  ;;  %v93_v40 = vmul.f32 0.99, %v89_v38  ;;  %v95_v41 = vmul.f32 -0.1, %v89_v38  ;;  %vm92_vm5 = vcmp.gt.f32.partialorder %v89_v38, 0.0 }
  0x2b   :  { %v94_v42 = vmul.f32 0.1, %v91_v39  ;;  %v96_v43 = vmul.f32 0.99, %v91_v39 }
  0x2d   :  { %v97_v44 = vadd.f32 %v94_v42, %v93_v40  ;;  %v99_v45 = vadd.f32 %v96_v43, %v95_v41 }
  0x2f   :  { %v98_v46 = vsel %vm92_vm5, %v93_v40, %v97_v44  ;;  %v100_v47 = vsel %vm92_vm5, %v95_v41, %v99_v45 }
  0x30   :  { %v102_v48 = vmul.f32 0.99, %v98_v46  ;;  %v103_v49 = vmul.f32 0.1, %v100_v47  ;;  %vm101_vm6 = vcmp.gt.f32.partialorder %v98_v46, 0.0 }
  0x31   :  { %v104_v50 = vmul.f32 -0.1, %v98_v46  ;;  %v105_v51 = vmul.f32 0.99, %v100_v47 }
  0x32   :  { %v106_v52 = vadd.f32 %v103_v49, %v102_v48 }
  0x33   :  { %v108_v53 = vadd.f32 %v105_v51, %v104_v50 }
  0x34   :  { %v107_v54 = vsel %vm101_vm6, %v102_v48, %v106_v52 }
  0x35   :  { %v109_v55 = vsel %vm101_vm6, %v104_v50, %v108_v53  ;;  %v111_v56 = vmul.f32 0.99, %v107_v54  ;;  %v113_v57 = vmul.f32 -0.1, %v107_v54  ;;  %vm110_vm7 = vcmp.gt.f32.partialorder %v107_v54, 0.0 }
  0x36   :  { %v112_v58 = vmul.f32 0.1, %v109_v55  ;;  %v114_v59 = vmul.f32 0.99, %v109_v55 }
  0x38   :  { %v115_v60 = vadd.f32 %v112_v58, %v111_v56  ;;  %v117_v61 = vadd.f32 %v114_v59, %v113_v57 }
  0x3a   :  { %v116_v62 = vsel %vm110_vm7, %v111_v56, %v115_v60  ;;  %v118_v63 = vsel %vm110_vm7, %v113_v57, %v117_v61 }
  0x3b   :  { %v120_v0 = vmul.f32 0.99, %v116_v62  ;;  %v121_v1 = vmul.f32 0.1, %v118_v63  ;;  %vm119_vm8 = vcmp.gt.f32.partialorder %v116_v62, 0.0 }
  0x3c   :  { %v122_v2 = vmul.f32 -0.1, %v116_v62  ;;  %v123_v3 = vmul.f32 0.99, %v118_v63 }
  0x3d   :  { %v124_v4 = vadd.f32 %v121_v1, %v120_v0 }
  0x3e   :  { %v126_v5 = vadd.f32 %v123_v3, %v122_v2 }
  0x3f   :  { %v125_v6 = vsel %vm119_vm8, %v120_v0, %v124_v4 }
  0x40   :  { %v127_v7 = vsel %vm119_vm8, %v122_v2, %v126_v5  ;;  %v129_v8 = vmul.f32 0.99, %v125_v6  ;;  %v131_v9 = vmul.f32 -0.1, %v125_v6  ;;  %vm128_vm9 = vcmp.gt.f32.partialorder %v125_v6, 0.0 }
  0x41   :  { %v130_v10 = vmul.f32 0.1, %v127_v7  ;;  %v132_v11 = vmul.f32 0.99, %v127_v7 }
  0x43   :  { %v133_v14 = vadd.f32 %v130_v10, %v129_v8  ;;  %v135_v15 = vadd.f32 %v132_v11, %v131_v9 }
  0x45   :  { %v134_v16 = vsel %vm128_vm9, %v129_v8, %v133_v14  ;;  %v136_v17 = vsel %vm128_vm9, %v131_v9, %v135_v15 }
  0x46   :  { %v138_v18 = vmul.f32 0.99, %v134_v16  ;;  %v139_v19 = vmul.f32 0.1, %v136_v17  ;;  %vm137_vm10 = vcmp.gt.f32.partialorder %v134_v16, 0.0 }
  0x47   :  { %v140_v20 = vmul.f32 -0.1, %v134_v16  ;;  %v141_v21 = vmul.f32 0.99, %v136_v17 }
  0x48   :  { %v142_v22 = vadd.f32 %v139_v19, %v138_v18 }
  0x49   :  { %v144_v23 = vadd.f32 %v141_v21, %v140_v20 }
  0x4a   :  { %v143_v24 = vsel %vm137_vm10, %v138_v18, %v142_v22 }
  0x4b   :  { %v145_v25 = vsel %vm137_vm10, %v140_v20, %v144_v23  ;;  %v147_v26 = vmul.f32 0.99, %v143_v24  ;;  %v149_v27 = vmul.f32 -0.1, %v143_v24  ;;  %vm146_vm11 = vcmp.gt.f32.partialorder %v143_v24, 0.0 }
  0x4c   :  { %v148_v28 = vmul.f32 0.1, %v145_v25  ;;  %v150_v29 = vmul.f32 0.99, %v145_v25 }
  0x4e   :  { %v151_v30 = vadd.f32 %v148_v28, %v147_v26  ;;  %v153_v31 = vadd.f32 %v150_v29, %v149_v27 }
  0x50   :  { %v152_v32 = vsel %vm146_vm11, %v147_v26, %v151_v30  ;;  %v154_v33 = vsel %vm146_vm11, %v149_v27, %v153_v31 }
  0x51   :  { %v156_v34 = vmul.f32 0.99, %v152_v32  ;;  %v157_v35 = vmul.f32 0.1, %v154_v33  ;;  %vm155_vm12 = vcmp.gt.f32.partialorder %v152_v32, 0.0 }
  0x52   :  { %v158_v36 = vmul.f32 -0.1, %v152_v32  ;;  %v159_v37 = vmul.f32 0.99, %v154_v33 }
  0x53   :  { %v160_v38 = vadd.f32 %v157_v35, %v156_v34 }
  0x54   :  { %v162_v39 = vadd.f32 %v159_v37, %v158_v36 }
  0x55   :  { %v161_v40 = vsel %vm155_vm12, %v156_v34, %v160_v38 }
  0x56   :  { %v163_v41 = vsel %vm155_vm12, %v158_v36, %v162_v39  ;;  %v165_v42 = vmul.f32 0.99, %v161_v40  ;;  %v167_v43 = vmul.f32 -0.1, %v161_v40  ;;  %vm164_vm13 = vcmp.gt.f32.partialorder %v161_v40, 0.0 }
  0x57   :  { %v166_v44 = vmul.f32 0.1, %v163_v41  ;;  %v168_v45 = vmul.f32 0.99, %v163_v41 }
  0x59   :  { %v169_v46 = vadd.f32 %v166_v44, %v165_v42  ;;  %v171_v47 = vadd.f32 %v168_v45, %v167_v43 }
  0x5b   :  { %v170_v48 = vsel %vm164_vm13, %v165_v42, %v169_v46  ;;  %v172_v49 = vsel %vm164_vm13, %v167_v43, %v171_v47 }
  0x5c   :  { %v174_v50 = vmul.f32 0.99, %v170_v48  ;;  %v175_v51 = vmul.f32 0.1, %v172_v49  ;;  %vm173_vm14 = vcmp.gt.f32.partialorder %v170_v48, 0.0 }
  0x5d   :  { %v176_v52 = vmul.f32 -0.1, %v170_v48  ;;  %v177_v53 = vmul.f32 0.99, %v172_v49 }
  0x5e   :  { %v178_v54 = vadd.f32 %v175_v51, %v174_v50 }
  0x5f   :  { %v180_v55 = vadd.f32 %v177_v53, %v176_v52 }
  0x60   :  { %v179_v56 = vsel %vm173_vm14, %v174_v50, %v178_v54 }
  0x61   :  { %v181_v57 = vsel %vm173_vm14, %v176_v52, %v180_v55  ;;  %v183_v58 = vmul.f32 0.99, %v179_v56  ;;  %v185_v59 = vmul.f32 -0.1, %v179_v56  ;;  %vm182_vm15 = vcmp.gt.f32.partialorder %v179_v56, 0.0 }
  0x62   :  { %v184_v60 = vmul.f32 0.1, %v181_v57  ;;  %v186_v61 = vmul.f32 0.99, %v181_v57 }
  0x64   :  { %v187_v62 = vadd.f32 %v184_v60, %v183_v58  ;;  %v189_v63 = vadd.f32 %v186_v61, %v185_v59 }
  0x66   :  { %v188_v0 = vsel %vm182_vm15, %v183_v58, %v187_v62  ;;  %v190_v1 = vsel %vm182_vm15, %v185_v59, %v189_v63 }
  0x67   :  { %v192_v2 = vmul.f32 0.99, %v188_v0  ;;  %v193_v3 = vmul.f32 0.1, %v190_v1  ;;  %vm191_vm0 = vcmp.gt.f32.partialorder %v188_v0, 0.0 }
  0x68   :  { %v194_v4 = vmul.f32 -0.1, %v188_v0  ;;  %v195_v5 = vmul.f32 0.99, %v190_v1 }
  0x69   :  { %v196_v6 = vadd.f32 %v193_v3, %v192_v2 }
  0x6a   :  { %v198_v7 = vadd.f32 %v195_v5, %v194_v4 }
  0x6b   :  { %v197_v8 = vsel %vm191_vm0, %v192_v2, %v196_v6 }
  0x6c   :  { %v199_v9 = vsel %vm191_vm0, %v194_v4, %v198_v7  ;;  %v201_v10 = vmul.f32 0.99, %v197_v8  ;;  %v203_v11 = vmul.f32 -0.1, %v197_v8  ;;  %vm200_vm1 = vcmp.gt.f32.partialorder %v197_v8, 0.0 }
  0x6d   :  { %v202_v14 = vmul.f32 0.1, %v199_v9  ;;  %v204_v15 = vmul.f32 0.99, %v199_v9 }
  0x6f   :  { %v205_v16 = vadd.f32 %v202_v14, %v201_v10  ;;  %v207_v17 = vadd.f32 %v204_v15, %v203_v11 }
  0x71   :  { %v206_v18 = vsel %vm200_vm1, %v201_v10, %v205_v16  ;;  %v208_v19 = vsel %vm200_vm1, %v203_v11, %v207_v17 }
  0x72   :  { %v210_v20 = vmul.f32 0.99, %v206_v18  ;;  %v211_v21 = vmul.f32 0.1, %v208_v19  ;;  %vm209_vm2 = vcmp.gt.f32.partialorder %v206_v18, 0.0 }
  0x73   :  { %v212_v22 = vmul.f32 -0.1, %v206_v18  ;;  %v213_v23 = vmul.f32 0.99, %v208_v19 }
  0x74   :  { %v214_v24 = vadd.f32 %v211_v21, %v210_v20 }
  0x75   :  { %v216_v25 = vadd.f32 %v213_v23, %v212_v22 }
  0x76   :  { %v215_v26 = vsel %vm209_vm2, %v210_v20, %v214_v24 }
  0x77   :  { %v217_v27 = vsel %vm209_vm2, %v212_v22, %v216_v25  ;;  %v219_v28 = vmul.f32 0.99, %v215_v26  ;;  %v221_v29 = vmul.f32 -0.1, %v215_v26  ;;  %vm218_vm3 = vcmp.gt.f32.partialorder %v215_v26, 0.0 }
  0x78   :  { %v220_v30 = vmul.f32 0.1, %v217_v27  ;;  %v222_v31 = vmul.f32 0.99, %v217_v27 }
  0x7a   :  { %v223_v32 = vadd.f32 %v220_v30, %v219_v28  ;;  %v225_v33 = vadd.f32 %v222_v31, %v221_v29 }
  0x7c   :  { %v224_v34 = vsel %vm218_vm3, %v219_v28, %v223_v32  ;;  %v226_v35 = vsel %vm218_vm3, %v221_v29, %v225_v33 }
  0x7d   :  { %v228_v36 = vmul.f32 0.99, %v224_v34  ;;  %v229_v37 = vmul.f32 0.1, %v226_v35  ;;  %vm227_vm4 = vcmp.gt.f32.partialorder %v224_v34, 0.0 }
  0x7e   :  { %v230_v38 = vmul.f32 -0.1, %v224_v34  ;;  %v231_v39 = vmul.f32 0.99, %v226_v35 }
  0x7f   :  { %v232_v40 = vadd.f32 %v229_v37, %v228_v36 }
  0x80   :  { %v234_v41 = vadd.f32 %v231_v39, %v230_v38 }
  0x81   :  { %v233_v42 = vsel %vm227_vm4, %v228_v36, %v232_v40 }
  0x82   :  { %v235_v43 = vsel %vm227_vm4, %v230_v38, %v234_v41  ;;  %v237_v44 = vmul.f32 0.99, %v233_v42  ;;  %v239_v45 = vmul.f32 -0.1, %v233_v42  ;;  %vm236_vm5 = vcmp.gt.f32.partialorder %v233_v42, 0.0 }
  0x83   :  { %v238_v46 = vmul.f32 0.1, %v235_v43  ;;  %v240_v47 = vmul.f32 0.99, %v235_v43 }
  0x85   :  { %v241_v48 = vadd.f32 %v238_v46, %v237_v44  ;;  %v243_v49 = vadd.f32 %v240_v47, %v239_v45 }
  0x87   :  { %v242_v50 = vsel %vm236_vm5, %v237_v44, %v241_v48  ;;  %v244_v51 = vsel %vm236_vm5, %v239_v45, %v243_v49 }
  0x88   :  { %v246_v52 = vmul.f32 0.99, %v242_v50  ;;  %v247_v53 = vmul.f32 0.1, %v244_v51  ;;  %vm245_vm6 = vcmp.gt.f32.partialorder %v242_v50, 0.0 }
  0x89   :  { %v248_v54 = vmul.f32 -0.1, %v242_v50  ;;  %v249_v55 = vmul.f32 0.99, %v244_v51 }
  0x8a   :  { %v250_v56 = vadd.f32 %v247_v53, %v246_v52 }
  0x8b   :  { %v252_v57 = vadd.f32 %v249_v55, %v248_v54 }
  0x8c   :  { %v251_v58 = vsel %vm245_vm6, %v246_v52, %v250_v56 }
  0x8d   :  { %v253_v59 = vsel %vm245_vm6, %v248_v54, %v252_v57  ;;  %v255_v60 = vmul.f32 0.99, %v251_v58  ;;  %v257_v61 = vmul.f32 -0.1, %v251_v58  ;;  %vm254_vm7 = vcmp.gt.f32.partialorder %v251_v58, 0.0 }
  0x8e   :  { %v256_v62 = vmul.f32 0.1, %v253_v59  ;;  %v258_v63 = vmul.f32 0.99, %v253_v59 }
  0x90   :  { %v259_v0 = vadd.f32 %v256_v62, %v255_v60  ;;  %v261_v1 = vadd.f32 %v258_v63, %v257_v61 }
  0x92   :  { %v260_v2 = vsel %vm254_vm7, %v255_v60, %v259_v0  ;;  %v262_v3 = vsel %vm254_vm7, %v257_v61, %v261_v1 }
  0x93   :  { %v264_v4 = vmul.f32 0.99, %v260_v2  ;;  %v265_v5 = vmul.f32 0.1, %v262_v3  ;;  %vm263_vm8 = vcmp.gt.f32.partialorder %v260_v2, 0.0 }
  0x94   :  { %v266_v6 = vmul.f32 -0.1, %v260_v2  ;;  %v267_v7 = vmul.f32 0.99, %v262_v3 }
  0x95   :  { %v268_v8 = vadd.f32 %v265_v5, %v264_v4 }
  0x96   :  { %v270_v9 = vadd.f32 %v267_v7, %v266_v6 }
  0x97   :  { %v269_v10 = vsel %vm263_vm8, %v264_v4, %v268_v8 }
  0x98   :  { %v271_v11 = vsel %vm263_vm8, %v266_v6, %v270_v9  ;;  %v273_v14 = vmul.f32 0.99, %v269_v10  ;;  %v275_v15 = vmul.f32 -0.1, %v269_v10  ;;  %vm272_vm9 = vcmp.gt.f32.partialorder %v269_v10, 0.0 }
  0x99   :  { %v274_v16 = vmul.f32 0.1, %v271_v11  ;;  %v276_v17 = vmul.f32 0.99, %v271_v11 }
  0x9b   :  { %v277_v18 = vadd.f32 %v274_v16, %v273_v14  ;;  %v279_v19 = vadd.f32 %v276_v17, %v275_v15 }
  0x9d   :  { %v278_v20 = vsel %vm272_vm9, %v273_v14, %v277_v18  ;;  %v280_v21 = vsel %vm272_vm9, %v275_v15, %v279_v19 }
  0x9e   :  { %v282_v22 = vmul.f32 0.99, %v278_v20  ;;  %v283_v23 = vmul.f32 0.1, %v280_v21  ;;  %vm281_vm10 = vcmp.gt.f32.partialorder %v278_v20, 0.0 }
  0x9f   :  { %v284_v24 = vmul.f32 -0.1, %v278_v20  ;;  %v285_v25 = vmul.f32 0.99, %v280_v21 }
  0xa0   :  { %v286_v26 = vadd.f32 %v283_v23, %v282_v22 }
  0xa1   :  { %v288_v27 = vadd.f32 %v285_v25, %v284_v24 }
  0xa2   :  { %v287_v28 = vsel %vm281_vm10, %v282_v22, %v286_v26 }
  0xa3   :  { %v289_v29 = vsel %vm281_vm10, %v284_v24, %v288_v27  ;;  %v291_v30 = vmul.f32 0.99, %v287_v28  ;;  %v293_v31 = vmul.f32 -0.1, %v287_v28  ;;  %vm290_vm11 = vcmp.gt.f32.partialorder %v287_v28, 0.0 }
  0xa4   :  { %v292_v32 = vmul.f32 0.1, %v289_v29  ;;  %v294_v33 = vmul.f32 0.99, %v289_v29 }
  0xa6   :  { %v295_v34 = vadd.f32 %v292_v32, %v291_v30  ;;  %v297_v35 = vadd.f32 %v294_v33, %v293_v31 }
  0xa8   :  { %v296_v36 = vsel %vm290_vm11, %v291_v30, %v295_v34  ;;  %v298_v37 = vsel %vm290_vm11, %v293_v31, %v297_v35 }
  0xa9   :  { %v300_v38 = vmul.f32 0.99, %v296_v36  ;;  %v301_v39 = vmul.f32 0.1, %v298_v37  ;;  %vm299_vm12 = vcmp.gt.f32.partialorder %v296_v36, 0.0 }
  0xaa   :  { %v302_v40 = vmul.f32 -0.1, %v296_v36  ;;  %v303_v41 = vmul.f32 0.99, %v298_v37 }
  0xab   :  { %v304_v42 = vadd.f32 %v301_v39, %v300_v38 }
  0xac   :  { %v306_v43 = vadd.f32 %v303_v41, %v302_v40 }
  0xad   :  { %v305_v44 = vsel %vm299_vm12, %v300_v38, %v304_v42 }
  0xae   :  { %v307_v45 = vsel %vm299_vm12, %v302_v40, %v306_v43  ;;  %v309_v46 = vmul.f32 0.99, %v305_v44  ;;  %v311_v47 = vmul.f32 -0.1, %v305_v44  ;;  %vm308_vm13 = vcmp.gt.f32.partialorder %v305_v44, 0.0 }
  0xaf   :  { %v310_v48 = vmul.f32 0.1, %v307_v45  ;;  %v312_v49 = vmul.f32 0.99, %v307_v45 }
  0xb1   :  { %v313_v50 = vadd.f32 %v310_v48, %v309_v46  ;;  %v315_v51 = vadd.f32 %v312_v49, %v311_v47 }
  0xb3   :  { %v314_v52 = vsel %vm308_vm13, %v309_v46, %v313_v50  ;;  %v316_v53 = vsel %vm308_vm13, %v311_v47, %v315_v51 }
  0xb4   :  { %v318_v54 = vmul.f32 0.99, %v314_v52  ;;  %v319_v55 = vmul.f32 0.1, %v316_v53  ;;  %vm317_vm14 = vcmp.gt.f32.partialorder %v314_v52, 0.0 }
  0xb5   :  { %v320_v56 = vmul.f32 -0.1, %v314_v52  ;;  %v321_v57 = vmul.f32 0.99, %v316_v53 }
  0xb6   :  { %v322_v58 = vadd.f32 %v319_v55, %v318_v54 }
  0xb7   :  { %v324_v59 = vadd.f32 %v321_v57, %v320_v56 }
  0xb8   :  { %v323_v60 = vsel %vm317_vm14, %v318_v54, %v322_v58 }
  0xb9   :  { %v325_v61 = vsel %vm317_vm14, %v320_v56, %v324_v59  ;;  %v327_v62 = vmul.f32 0.99, %v323_v60  ;;  %v329_v63 = vmul.f32 -0.1, %v323_v60  ;;  %vm326_vm15 = vcmp.gt.f32.partialorder %v323_v60, 0.0 }
  0xba   :  { %v328_v0 = vmul.f32 0.1, %v325_v61  ;;  %v330_v1 = vmul.f32 0.99, %v325_v61 }
  0xbc   :  { %v331_v2 = vadd.f32 %v328_v0, %v327_v62  ;;  %v333_v3 = vadd.f32 %v330_v1, %v329_v63 }
  0xbe   :  { %v332_v4 = vsel %vm326_vm15, %v327_v62, %v331_v2   ;;  %v334_v5 = vsel %vm326_vm15, %v329_v63, %v333_v3  }
  0xbf LB: > { %v344_v6 = vmul.f32 0.99, %v1431_v4  ;;  %v345_v7 = vmul.f32 0.1, %v1435_v5  ;;  %v346_v8 = vmul.f32 -0.1, %v1431_v4  ;;  %s1439_s0 = sphi %s1476_s0, %s340_s0   ;;  %v1435_v5 = vphi %v334_v5, %v1501_v5   ;;  %v1431_v4 = vphi %v332_v4, %v1500_v4  }
  0xc0   : > { %v347_v9 = vmul.f32 0.99, %v1435_v5  ;;  %vm343_vm0 = vcmp.gt.f32.partialorder %v1431_v4, 0.0  ;;  %s340_s0 = sadd.s32 1, %s1439_s0  }
  0xc1   : > { %v348_v10 = vadd.f32 %v345_v7, %v344_v6  ;;  %p337_p0 = scmp.ge.s32.totalorder %s340_s0, 14  }
  0xc2   : > { %v350_v11 = vadd.f32 %v347_v9, %v346_v8  ;;  %s1444_s1 = smov (%p337_p0), [#allocation7]   ;;  %s1287_s22 = sshll.u32 (%p337_p0), %s1499_s2, 4  ;;  %s1288_s22 = int_to_ptr.hbm [resolvable:$true] %s1287_s22 }
  0xc3   : > { %v349_v14 = vsel %vm343_vm0, %v344_v6, %v348_v10  ;;  %s1285_s19 = sshll.u32 (%p337_p0), %s1444_s1, 4  ;;  %s1286_s19 = int_to_ptr.vmem [resolvable:$true] %s1285_s19 }
  0xc4   : > { %v351_v15 = vsel %vm343_vm0, %v346_v8, %v350_v11  ;;  %v354_v17 = vmul.f32 0.99, %v349_v14  ;;  %v356_v18 = vmul.f32 -0.1, %v349_v14  ;;  %vm353_vm1 = vcmp.gt.f32.partialorder %v349_v14, 0.0 }
  0xc5   : > { %v352_v16 = vadd.f32 %v351_v15, %v1468_v13 }
  0xc7   : > { %v355_v19 = vmul.f32 0.1, %v352_v16  ;;  %v357_v20 = vmul.f32 0.99, %v352_v16 }
  0xc9   : > { %v358_v21 = vadd.f32 %v355_v19, %v354_v17  ;;  %v360_v22 = vadd.f32 %v357_v20, %v356_v18 }
  0xcb   : > { %v359_v23 = vsel %vm353_vm1, %v354_v17, %v358_v21  ;;  %v361_v24 = vsel %vm353_vm1, %v356_v18, %v360_v22 }
  0xcc   : > { %v363_v25 = vmul.f32 0.99, %v359_v23  ;;  %v364_v26 = vmul.f32 0.1, %v361_v24  ;;  %vm362_vm2 = vcmp.gt.f32.partialorder %v359_v23, 0.0 }
  0xcd   : > { %v365_v27 = vmul.f32 -0.1, %v359_v23  ;;  %v366_v28 = vmul.f32 0.99, %v361_v24 }
  0xce   : > { %v367_v29 = vadd.f32 %v364_v26, %v363_v25 }
  0xcf   : > { %v369_v30 = vadd.f32 %v366_v28, %v365_v27 }
  0xd0   : > { %v368_v31 = vsel %vm362_vm2, %v363_v25, %v367_v29 }
  0xd1   : > { %v370_v32 = vsel %vm362_vm2, %v365_v27, %v369_v30  ;;  %v372_v33 = vmul.f32 0.99, %v368_v31  ;;  %v374_v34 = vmul.f32 -0.1, %v368_v31  ;;  %vm371_vm3 = vcmp.gt.f32.partialorder %v368_v31, 0.0 }
  0xd2   : > { %v373_v35 = vmul.f32 0.1, %v370_v32  ;;  %v375_v36 = vmul.f32 0.99, %v370_v32 }
  0xd4   : > { %v376_v37 = vadd.f32 %v373_v35, %v372_v33  ;;  %v378_v38 = vadd.f32 %v375_v36, %v374_v34 }
  0xd6   : > { %v377_v39 = vsel %vm371_vm3, %v372_v33, %v376_v37  ;;  %v379_v40 = vsel %vm371_vm3, %v374_v34, %v378_v38 }
  0xd7   : > { %v381_v41 = vmul.f32 0.99, %v377_v39  ;;  %v382_v42 = vmul.f32 0.1, %v379_v40  ;;  %vm380_vm4 = vcmp.gt.f32.partialorder %v377_v39, 0.0 }
  0xd8   : > { %v383_v43 = vmul.f32 -0.1, %v377_v39  ;;  %v384_v44 = vmul.f32 0.99, %v379_v40 }
  0xd9   : > { %v385_v45 = vadd.f32 %v382_v42, %v381_v41 }
  0xda   : > { %v387_v46 = vadd.f32 %v384_v44, %v383_v43 }
  0xdb   : > { %v386_v47 = vsel %vm380_vm4, %v381_v41, %v385_v45 }
  0xdc   : > { %v388_v48 = vsel %vm380_vm4, %v383_v43, %v387_v46  ;;  %v390_v49 = vmul.f32 0.99, %v386_v47  ;;  %v392_v50 = vmul.f32 -0.1, %v386_v47  ;;  %vm389_vm5 = vcmp.gt.f32.partialorder %v386_v47, 0.0 }
  0xdd   : > { %v391_v51 = vmul.f32 0.1, %v388_v48  ;;  %v393_v52 = vmul.f32 0.99, %v388_v48 }
  0xdf   : > { %v394_v53 = vadd.f32 %v391_v51, %v390_v49  ;;  %v396_v54 = vadd.f32 %v393_v52, %v392_v50 }
  0xe1   : > { %v395_v55 = vsel %vm389_vm5, %v390_v49, %v394_v53  ;;  %v397_v56 = vsel %vm389_vm5, %v392_v50, %v396_v54 }
  0xe2   : > { %v399_v57 = vmul.f32 0.99, %v395_v55  ;;  %v400_v58 = vmul.f32 0.1, %v397_v56  ;;  %vm398_vm6 = vcmp.gt.f32.partialorder %v395_v55, 0.0 }
  0xe3   : > { %v401_v59 = vmul.f32 -0.1, %v395_v55  ;;  %v402_v60 = vmul.f32 0.99, %v397_v56 }
  0xe4   : > { %v403_v61 = vadd.f32 %v400_v58, %v399_v57 }
  0xe5   : > { %v405_v62 = vadd.f32 %v402_v60, %v401_v59 }
  0xe6   : > { %v404_v63 = vsel %vm398_vm6, %v399_v57, %v403_v61 }
  0xe7   : > { %v406_v0 = vsel %vm398_vm6, %v401_v59, %v405_v62  ;;  %v408_v1 = vmul.f32 0.99, %v404_v63  ;;  %v410_v2 = vmul.f32 -0.1, %v404_v63  ;;  %vm407_vm7 = vcmp.gt.f32.partialorder %v404_v63, 0.0 }
  0xe8   : > { %v409_v3 = vmul.f32 0.1, %v406_v0  ;;  %v411_v4 = vmul.f32 0.99, %v406_v0 }
  0xea   : > { %v412_v5 = vadd.f32 %v409_v3, %v408_v1  ;;  %v414_v6 = vadd.f32 %v411_v4, %v410_v2 }
  0xec   : > { %v413_v7 = vsel %vm407_vm7, %v408_v1, %v412_v5  ;;  %v415_v8 = vsel %vm407_vm7, %v410_v2, %v414_v6 }
  0xed   : > { %v417_v9 = vmul.f32 0.99, %v413_v7  ;;  %v418_v10 = vmul.f32 0.1, %v415_v8  ;;  %vm416_vm8 = vcmp.gt.f32.partialorder %v413_v7, 0.0 }
  0xee   : > { %v419_v11 = vmul.f32 -0.1, %v413_v7  ;;  %v420_v14 = vmul.f32 0.99, %v415_v8 }
  0xef   : > { %v421_v15 = vadd.f32 %v418_v10, %v417_v9 }
  0xf0   : > { %v423_v16 = vadd.f32 %v420_v14, %v419_v11 }
  0xf1   : > { %v422_v17 = vsel %vm416_vm8, %v417_v9, %v421_v15 }
  0xf2   : > { %v424_v18 = vsel %vm416_vm8, %v419_v11, %v423_v16  ;;  %v426_v19 = vmul.f32 0.99, %v422_v17  ;;  %v428_v20 = vmul.f32 -0.1, %v422_v17  ;;  %vm425_vm9 = vcmp.gt.f32.partialorder %v422_v17, 0.0 }
  0xf3   : > { %v427_v21 = vmul.f32 0.1, %v424_v18  ;;  %v429_v22 = vmul.f32 0.99, %v424_v18 }
  0xf5   : > { %v430_v23 = vadd.f32 %v427_v21, %v426_v19  ;;  %v432_v24 = vadd.f32 %v429_v22, %v428_v20 }
  0xf7   : > { %v431_v25 = vsel %vm425_vm9, %v426_v19, %v430_v23  ;;  %v433_v26 = vsel %vm425_vm9, %v428_v20, %v432_v24 }
  0xf8   : > { %v435_v27 = vmul.f32 0.99, %v431_v25  ;;  %v436_v28 = vmul.f32 0.1, %v433_v26  ;;  %vm434_vm10 = vcmp.gt.f32.partialorder %v431_v25, 0.0 }
  0xf9   : > { %v437_v29 = vmul.f32 -0.1, %v431_v25  ;;  %v438_v30 = vmul.f32 0.99, %v433_v26 }
  0xfa   : > { %v439_v31 = vadd.f32 %v436_v28, %v435_v27 }
  0xfb   : > { %v441_v32 = vadd.f32 %v438_v30, %v437_v29 }
  0xfc   : > { %v440_v33 = vsel %vm434_vm10, %v435_v27, %v439_v31 }
  0xfd   : > { %v442_v34 = vsel %vm434_vm10, %v437_v29, %v441_v32  ;;  %v444_v35 = vmul.f32 0.99, %v440_v33  ;;  %v446_v36 = vmul.f32 -0.1, %v440_v33  ;;  %vm443_vm11 = vcmp.gt.f32.partialorder %v440_v33, 0.0 }
  0xfe   : > { %v445_v37 = vmul.f32 0.1, %v442_v34  ;;  %v447_v38 = vmul.f32 0.99, %v442_v34 }
 0x100   : > { %v448_v39 = vadd.f32 %v445_v37, %v444_v35  ;;  %v450_v40 = vadd.f32 %v447_v38, %v446_v36 }
 0x102   : > { %v449_v41 = vsel %vm443_vm11, %v444_v35, %v448_v39  ;;  %v451_v42 = vsel %vm443_vm11, %v446_v36, %v450_v40 }
 0x103   : > { %v453_v43 = vmul.f32 0.99, %v449_v41  ;;  %v454_v44 = vmul.f32 0.1, %v451_v42  ;;  %vm452_vm12 = vcmp.gt.f32.partialorder %v449_v41, 0.0 }
 0x104   : > { %v455_v45 = vmul.f32 -0.1, %v449_v41  ;;  %v456_v46 = vmul.f32 0.99, %v451_v42 }
 0x105   : > { %v457_v47 = vadd.f32 %v454_v44, %v453_v43 }
 0x106   : > { %v459_v48 = vadd.f32 %v456_v46, %v455_v45 }
 0x107   : > { %v458_v49 = vsel %vm452_vm12, %v453_v43, %v457_v47 }
 0x108   : > { %v460_v50 = vsel %vm452_vm12, %v455_v45, %v459_v48  ;;  %v462_v51 = vmul.f32 0.99, %v458_v49  ;;  %v464_v52 = vmul.f32 -0.1, %v458_v49  ;;  %vm461_vm13 = vcmp.gt.f32.partialorder %v458_v49, 0.0 }
 0x109   : > { %v463_v53 = vmul.f32 0.1, %v460_v50  ;;  %v465_v54 = vmul.f32 0.99, %v460_v50 }
 0x10b   : > { %v466_v55 = vadd.f32 %v463_v53, %v462_v51  ;;  %v468_v56 = vadd.f32 %v465_v54, %v464_v52 }
 0x10d   : > { %v467_v57 = vsel %vm461_vm13, %v462_v51, %v466_v55  ;;  %v469_v58 = vsel %vm461_vm13, %v464_v52, %v468_v56 }
 0x10e   : > { %v471_v59 = vmul.f32 0.99, %v467_v57  ;;  %v472_v60 = vmul.f32 0.1, %v469_v58  ;;  %vm470_vm14 = vcmp.gt.f32.partialorder %v467_v57, 0.0 }
 0x10f   : > { %v473_v61 = vmul.f32 -0.1, %v467_v57  ;;  %v474_v62 = vmul.f32 0.99, %v469_v58 }
 0x110   : > { %v475_v63 = vadd.f32 %v472_v60, %v471_v59 }
 0x111   : > { %v477_v0 = vadd.f32 %v474_v62, %v473_v61 }
 0x112   : > { %v476_v1 = vsel %vm470_vm14, %v471_v59, %v475_v63 }
 0x113   : > { %v478_v2 = vsel %vm470_vm14, %v473_v61, %v477_v0  ;;  %v480_v3 = vmul.f32 0.99, %v476_v1  ;;  %v482_v4 = vmul.f32 -0.1, %v476_v1  ;;  %vm479_vm15 = vcmp.gt.f32.partialorder %v476_v1, 0.0 }
 0x114   : > { %v481_v5 = vmul.f32 0.1, %v478_v2  ;;  %v483_v6 = vmul.f32 0.99, %v478_v2 }
 0x116   : > { %v484_v7 = vadd.f32 %v481_v5, %v480_v3  ;;  %v486_v8 = vadd.f32 %v483_v6, %v482_v4 }
 0x118   : > { %v485_v9 = vsel %vm479_vm15, %v480_v3, %v484_v7  ;;  %v487_v10 = vsel %vm479_vm15, %v482_v4, %v486_v8 }
 0x119   : > { %v489_v11 = vmul.f32 0.99, %v485_v9  ;;  %v490_v14 = vmul.f32 0.1, %v487_v10  ;;  %vm488_vm0 = vcmp.gt.f32.partialorder %v485_v9, 0.0 }
 0x11a   : > { %v491_v15 = vmul.f32 -0.1, %v485_v9  ;;  %v492_v16 = vmul.f32 0.99, %v487_v10 }
 0x11b   : > { %v493_v17 = vadd.f32 %v490_v14, %v489_v11 }
 0x11c   : > { %v495_v18 = vadd.f32 %v492_v16, %v491_v15 }
 0x11d   : > { %v494_v19 = vsel %vm488_vm0, %v489_v11, %v493_v17 }
 0x11e   : > { %v496_v20 = vsel %vm488_vm0, %v491_v15, %v495_v18  ;;  %v498_v21 = vmul.f32 0.99, %v494_v19  ;;  %v500_v22 = vmul.f32 -0.1, %v494_v19  ;;  %vm497_vm1 = vcmp.gt.f32.partialorder %v494_v19, 0.0 }
 0x11f   : > { %v499_v23 = vmul.f32 0.1, %v496_v20  ;;  %v501_v24 = vmul.f32 0.99, %v496_v20 }
 0x121   : > { %v502_v25 = vadd.f32 %v499_v23, %v498_v21  ;;  %v504_v26 = vadd.f32 %v501_v24, %v500_v22 }
 0x123   : > { %v503_v27 = vsel %vm497_vm1, %v498_v21, %v502_v25  ;;  %v505_v28 = vsel %vm497_vm1, %v500_v22, %v504_v26 }
 0x124   : > { %v507_v29 = vmul.f32 0.99, %v503_v27  ;;  %v508_v30 = vmul.f32 0.1, %v505_v28  ;;  %vm506_vm2 = vcmp.gt.f32.partialorder %v503_v27, 0.0 }
 0x125   : > { %v509_v31 = vmul.f32 -0.1, %v503_v27  ;;  %v510_v32 = vmul.f32 0.99, %v505_v28 }
 0x126   : > { %v511_v33 = vadd.f32 %v508_v30, %v507_v29 }
 0x127   : > { %v513_v34 = vadd.f32 %v510_v32, %v509_v31 }
 0x128   : > { %v512_v35 = vsel %vm506_vm2, %v507_v29, %v511_v33 }
 0x129   : > { %v514_v36 = vsel %vm506_vm2, %v509_v31, %v513_v34  ;;  %v516_v37 = vmul.f32 0.99, %v512_v35  ;;  %v518_v38 = vmul.f32 -0.1, %v512_v35  ;;  %vm515_vm3 = vcmp.gt.f32.partialorder %v512_v35, 0.0 }
 0x12a   : > { %v517_v39 = vmul.f32 0.1, %v514_v36  ;;  %v519_v40 = vmul.f32 0.99, %v514_v36 }
 0x12c   : > { %v520_v41 = vadd.f32 %v517_v39, %v516_v37  ;;  %v522_v42 = vadd.f32 %v519_v40, %v518_v38 }
 0x12e   : > { %v521_v43 = vsel %vm515_vm3, %v516_v37, %v520_v41  ;;  %v523_v44 = vsel %vm515_vm3, %v518_v38, %v522_v42 }
 0x12f   : > { %v525_v45 = vmul.f32 0.99, %v521_v43  ;;  %v526_v46 = vmul.f32 0.1, %v523_v44  ;;  %vm524_vm4 = vcmp.gt.f32.partialorder %v521_v43, 0.0 }
 0x130   : > { %v527_v47 = vmul.f32 -0.1, %v521_v43  ;;  %v528_v48 = vmul.f32 0.99, %v523_v44 }
 0x131   : > { %v529_v49 = vadd.f32 %v526_v46, %v525_v45 }
 0x132   : > { %v531_v50 = vadd.f32 %v528_v48, %v527_v47 }
 0x133   : > { %v530_v51 = vsel %vm524_vm4, %v525_v45, %v529_v49 }
 0x134   : > { %v532_v52 = vsel %vm524_vm4, %v527_v47, %v531_v50  ;;  %v534_v53 = vmul.f32 0.99, %v530_v51  ;;  %v536_v54 = vmul.f32 -0.1, %v530_v51  ;;  %vm533_vm5 = vcmp.gt.f32.partialorder %v530_v51, 0.0 }
 0x135   : > { %v535_v55 = vmul.f32 0.1, %v532_v52  ;;  %v537_v56 = vmul.f32 0.99, %v532_v52 }
 0x137   : > { %v538_v57 = vadd.f32 %v535_v55, %v534_v53  ;;  %v540_v58 = vadd.f32 %v537_v56, %v536_v54 }
 0x139   : > { %v539_v59 = vsel %vm533_vm5, %v534_v53, %v538_v57  ;;  %v541_v60 = vsel %vm533_vm5, %v536_v54, %v540_v58 }
 0x13a   : > { %v543_v61 = vmul.f32 0.99, %v539_v59  ;;  %v544_v62 = vmul.f32 0.1, %v541_v60  ;;  %vm542_vm6 = vcmp.gt.f32.partialorder %v539_v59, 0.0 }
 0x13b   : > { %v545_v63 = vmul.f32 -0.1, %v539_v59  ;;  %v546_v0 = vmul.f32 0.99, %v541_v60 }
 0x13c   : > { %v547_v1 = vadd.f32 %v544_v62, %v543_v61 }
 0x13d   : > { %v549_v2 = vadd.f32 %v546_v0, %v545_v63 }
 0x13e   : > { %v548_v3 = vsel %vm542_vm6, %v543_v61, %v547_v1 }
 0x13f   : > { %v550_v4 = vsel %vm542_vm6, %v545_v63, %v549_v2  ;;  %v552_v5 = vmul.f32 0.99, %v548_v3  ;;  %v554_v6 = vmul.f32 -0.1, %v548_v3  ;;  %vm551_vm7 = vcmp.gt.f32.partialorder %v548_v3, 0.0 }
 0x140   : > { %v553_v7 = vmul.f32 0.1, %v550_v4  ;;  %v555_v8 = vmul.f32 0.99, %v550_v4 }
 0x142   : > { %v556_v9 = vadd.f32 %v553_v7, %v552_v5  ;;  %v558_v10 = vadd.f32 %v555_v8, %v554_v6 }
 0x144   : > { %v557_v11 = vsel %vm551_vm7, %v552_v5, %v556_v9  ;;  %v559_v14 = vsel %vm551_vm7, %v554_v6, %v558_v10 }
 0x145   : > { %v561_v15 = vmul.f32 0.99, %v557_v11  ;;  %v562_v16 = vmul.f32 0.1, %v559_v14  ;;  %vm560_vm8 = vcmp.gt.f32.partialorder %v557_v11, 0.0 }
 0x146   : > { %v563_v17 = vmul.f32 -0.1, %v557_v11  ;;  %v564_v18 = vmul.f32 0.99, %v559_v14 }
 0x147   : > { %v565_v19 = vadd.f32 %v562_v16, %v561_v15 }
 0x148   : > { %v567_v20 = vadd.f32 %v564_v18, %v563_v17 }
 0x149   : > { %v566_v21 = vsel %vm560_vm8, %v561_v15, %v565_v19 }
 0x14a   : > { %v568_v22 = vsel %vm560_vm8, %v563_v17, %v567_v20  ;;  %v570_v23 = vmul.f32 0.99, %v566_v21  ;;  %v572_v24 = vmul.f32 -0.1, %v566_v21  ;;  %vm569_vm9 = vcmp.gt.f32.partialorder %v566_v21, 0.0 }
 0x14b   : > { %v571_v25 = vmul.f32 0.1, %v568_v22  ;;  %v573_v26 = vmul.f32 0.99, %v568_v22 }
 0x14d   : > { %v574_v27 = vadd.f32 %v571_v25, %v570_v23  ;;  %v576_v28 = vadd.f32 %v573_v26, %v572_v24 }
 0x14f   : > { %v575_v29 = vsel %vm569_vm9, %v570_v23, %v574_v27  ;;  %v577_v30 = vsel %vm569_vm9, %v572_v24, %v576_v28 }
 0x150   : > { %v579_v31 = vmul.f32 0.99, %v575_v29  ;;  %v580_v32 = vmul.f32 0.1, %v577_v30  ;;  %vm578_vm10 = vcmp.gt.f32.partialorder %v575_v29, 0.0 }
 0x151   : > { %v581_v33 = vmul.f32 -0.1, %v575_v29  ;;  %v582_v34 = vmul.f32 0.99, %v577_v30 }
 0x152   : > { %v583_v35 = vadd.f32 %v580_v32, %v579_v31 }
 0x153   : > { %v585_v36 = vadd.f32 %v582_v34, %v581_v33 }
 0x154   : > { %v584_v37 = vsel %vm578_vm10, %v579_v31, %v583_v35 }
 0x155   : > { %v586_v38 = vsel %vm578_vm10, %v581_v33, %v585_v36  ;;  %v588_v39 = vmul.f32 0.99, %v584_v37  ;;  %v590_v40 = vmul.f32 -0.1, %v584_v37  ;;  %vm587_vm11 = vcmp.gt.f32.partialorder %v584_v37, 0.0 }
 0x156   : > { %v589_v41 = vmul.f32 0.1, %v586_v38  ;;  %v591_v42 = vmul.f32 0.99, %v586_v38 }
 0x158   : > { %v592_v43 = vadd.f32 %v589_v41, %v588_v39  ;;  %v594_v44 = vadd.f32 %v591_v42, %v590_v40 }
 0x15a   : > { %v593_v45 = vsel %vm587_vm11, %v588_v39, %v592_v43  ;;  %v595_v46 = vsel %vm587_vm11, %v590_v40, %v594_v44 }
 0x15b   : > { %v597_v47 = vmul.f32 0.99, %v593_v45  ;;  %v598_v48 = vmul.f32 0.1, %v595_v46  ;;  %vm596_vm12 = vcmp.gt.f32.partialorder %v593_v45, 0.0 }
 0x15c   : > { %v599_v49 = vmul.f32 -0.1, %v593_v45  ;;  %v600_v50 = vmul.f32 0.99, %v595_v46 }
 0x15d   : > { %v601_v51 = vadd.f32 %v598_v48, %v597_v47 }
 0x15e   : > { %v603_v52 = vadd.f32 %v600_v50, %v599_v49 }
 0x15f   : > { %v602_v53 = vsel %vm596_vm12, %v597_v47, %v601_v51 }
 0x160   : > { %v604_v54 = vsel %vm596_vm12, %v599_v49, %v603_v52  ;;  %v606_v55 = vmul.f32 0.99, %v602_v53  ;;  %v608_v56 = vmul.f32 -0.1, %v602_v53  ;;  %vm605_vm13 = vcmp.gt.f32.partialorder %v602_v53, 0.0 }
 0x161   : > { %v607_v57 = vmul.f32 0.1, %v604_v54  ;;  %v609_v58 = vmul.f32 0.99, %v604_v54 }
 0x163   : > { %v610_v59 = vadd.f32 %v607_v57, %v606_v55  ;;  %v612_v60 = vadd.f32 %v609_v58, %v608_v56 }
 0x165   : > { %v611_v61 = vsel %vm605_vm13, %v606_v55, %v610_v59  ;;  %v613_v62 = vsel %vm605_vm13, %v608_v56, %v612_v60 }
 0x166   : > { %v615_v63 = vmul.f32 0.99, %v611_v61  ;;  %v616_v0 = vmul.f32 0.1, %v613_v62  ;;  %vm614_vm14 = vcmp.gt.f32.partialorder %v611_v61, 0.0 }
 0x167   : > { %v617_v1 = vmul.f32 -0.1, %v611_v61  ;;  %v618_v2 = vmul.f32 0.99, %v613_v62 }
 0x168   : > { %v619_v3 = vadd.f32 %v616_v0, %v615_v63 }
 0x169   : > { %v621_v4 = vadd.f32 %v618_v2, %v617_v1 }
 0x16a   : > { %v620_v5 = vsel %vm614_vm14, %v615_v63, %v619_v3 }
 0x16b   : > { %v622_v6 = vsel %vm614_vm14, %v617_v1, %v621_v4  ;;  %v624_v7 = vmul.f32 0.99, %v620_v5  ;;  %v626_v8 = vmul.f32 -0.1, %v620_v5  ;;  %vm623_vm15 = vcmp.gt.f32.partialorder %v620_v5, 0.0 }
 0x16c   : > { %v625_v9 = vmul.f32 0.1, %v622_v6  ;;  %v627_v10 = vmul.f32 0.99, %v622_v6 }
 0x16e   : > { %v628_v11 = vadd.f32 %v625_v9, %v624_v7  ;;  %v630_v14 = vadd.f32 %v627_v10, %v626_v8 }
 0x170   : > { %v629_v15 = vsel %vm623_vm15, %v624_v7, %v628_v11  ;;  %v631_v16 = vsel %vm623_vm15, %v626_v8, %v630_v14 }
 0x171   : > { %v633_v17 = vmul.f32 0.99, %v629_v15  ;;  %v634_v18 = vmul.f32 0.1, %v631_v16  ;;  %v635_v19 = vmul.f32 -0.1, %v629_v15 }
 0x172   : > { %v636_v20 = vmul.f32 0.99, %v631_v16  ;;  %vm632_vm0 = vcmp.gt.f32.partialorder %v629_v15, 0.0 }
 0x173   : > { %v637_v21 = vadd.f32 %v634_v18, %v633_v17 }
 0x174   : > { %v639_v22 = vadd.f32 %v636_v20, %v635_v19 }
 0x175   : > { %v638_v23 = vsel %vm632_vm0, %v633_v17, %v637_v21 }
 0x176   : > { %v640_v24 = vsel %vm632_vm0, %v635_v19, %v639_v22  ;;  %v643_v26 = vmul.f32 0.99, %v638_v23  ;;  %v645_v27 = vmul.f32 -0.1, %v638_v23  ;;  %vm642_vm1 = vcmp.gt.f32.partialorder %v638_v23, 0.0 }
 0x177   : > { %v641_v25 = vadd.f32 %v640_v24, %v1466_v12 }
 0x179   : > { %v644_v28 = vmul.f32 0.1, %v641_v25  ;;  %v646_v29 = vmul.f32 0.99, %v641_v25 }
 0x17b   : > { %v647_v30 = vadd.f32 %v644_v28, %v643_v26  ;;  %v649_v31 = vadd.f32 %v646_v29, %v645_v27 }
 0x17d   : > { %v648_v32 = vsel %vm642_vm1, %v643_v26, %v647_v30  ;;  %v650_v33 = vsel %vm642_vm1, %v645_v27, %v649_v31 }
 0x17e   : > { %v652_v34 = vmul.f32 0.99, %v648_v32  ;;  %v653_v35 = vmul.f32 0.1, %v650_v33  ;;  %vm651_vm2 = vcmp.gt.f32.partialorder %v648_v32, 0.0 }
 0x17f   : > { %v654_v36 = vmul.f32 -0.1, %v648_v32  ;;  %v655_v37 = vmul.f32 0.99, %v650_v33 }
 0x180   : > { %v656_v38 = vadd.f32 %v653_v35, %v652_v34 }
 0x181   : > { %v658_v39 = vadd.f32 %v655_v37, %v654_v36 }
 0x182   : > { %v657_v40 = vsel %vm651_vm2, %v652_v34, %v656_v38 }
 0x183   : > { %v659_v41 = vsel %vm651_vm2, %v654_v36, %v658_v39  ;;  %v661_v42 = vmul.f32 0.99, %v657_v40  ;;  %v663_v43 = vmul.f32 -0.1, %v657_v40  ;;  %vm660_vm3 = vcmp.gt.f32.partialorder %v657_v40, 0.0 }
 0x184   : > { %v662_v44 = vmul.f32 0.1, %v659_v41  ;;  %v664_v45 = vmul.f32 0.99, %v659_v41 }
 0x186   : > { %v665_v46 = vadd.f32 %v662_v44, %v661_v42  ;;  %v667_v47 = vadd.f32 %v664_v45, %v663_v43 }
 0x188   : > { %v666_v48 = vsel %vm660_vm3, %v661_v42, %v665_v46  ;;  %v668_v49 = vsel %vm660_vm3, %v663_v43, %v667_v47 }
 0x189   : > { %v670_v50 = vmul.f32 0.99, %v666_v48  ;;  %v671_v51 = vmul.f32 0.1, %v668_v49  ;;  %vm669_vm4 = vcmp.gt.f32.partialorder %v666_v48, 0.0 }
 0x18a   : > { %v672_v52 = vmul.f32 -0.1, %v666_v48  ;;  %v673_v53 = vmul.f32 0.99, %v668_v49 }
 0x18b   : > { %v674_v54 = vadd.f32 %v671_v51, %v670_v50 }
 0x18c   : > { %v676_v55 = vadd.f32 %v673_v53, %v672_v52 }
 0x18d   : > { %v675_v56 = vsel %vm669_vm4, %v670_v50, %v674_v54 }
 0x18e   : > { %v677_v57 = vsel %vm669_vm4, %v672_v52, %v676_v55  ;;  %v679_v58 = vmul.f32 0.99, %v675_v56  ;;  %v681_v59 = vmul.f32 -0.1, %v675_v56  ;;  %vm678_vm5 = vcmp.gt.f32.partialorder %v675_v56, 0.0 }
 0x18f   : > { %v680_v60 = vmul.f32 0.1, %v677_v57  ;;  %v682_v61 = vmul.f32 0.99, %v677_v57 }
 0x191   : > { %v683_v62 = vadd.f32 %v680_v60, %v679_v58  ;;  %v685_v63 = vadd.f32 %v682_v61, %v681_v59 }
 0x193   : > { %v684_v0 = vsel %vm678_vm5, %v679_v58, %v683_v62  ;;  %v686_v1 = vsel %vm678_vm5, %v681_v59, %v685_v63 }
 0x194   : > { %v688_v2 = vmul.f32 0.99, %v684_v0  ;;  %v689_v3 = vmul.f32 0.1, %v686_v1  ;;  %vm687_vm6 = vcmp.gt.f32.partialorder %v684_v0, 0.0 }
 0x195   : > { %v690_v4 = vmul.f32 -0.1, %v684_v0  ;;  %v691_v5 = vmul.f32 0.99, %v686_v1 }
 0x196   : > { %v692_v6 = vadd.f32 %v689_v3, %v688_v2 }
 0x197   : > { %v694_v7 = vadd.f32 %v691_v5, %v690_v4 }
 0x198   : > { %v693_v8 = vsel %vm687_vm6, %v688_v2, %v692_v6 }
 0x199   : > { %v695_v9 = vsel %vm687_vm6, %v690_v4, %v694_v7  ;;  %v697_v10 = vmul.f32 0.99, %v693_v8  ;;  %v699_v11 = vmul.f32 -0.1, %v693_v8  ;;  %vm696_vm7 = vcmp.gt.f32.partialorder %v693_v8, 0.0 }
 0x19a   : > { %v698_v14 = vmul.f32 0.1, %v695_v9  ;;  %v700_v15 = vmul.f32 0.99, %v695_v9 }
 0x19c   : > { %v701_v16 = vadd.f32 %v698_v14, %v697_v10  ;;  %v703_v17 = vadd.f32 %v700_v15, %v699_v11 }
 0x19e   : > { %v702_v18 = vsel %vm696_vm7, %v697_v10, %v701_v16  ;;  %v704_v19 = vsel %vm696_vm7, %v699_v11, %v703_v17 }
 0x19f   : > { %v706_v20 = vmul.f32 0.99, %v702_v18  ;;  %v707_v21 = vmul.f32 0.1, %v704_v19  ;;  %vm705_vm8 = vcmp.gt.f32.partialorder %v702_v18, 0.0 }
 0x1a0   : > { %v708_v22 = vmul.f32 -0.1, %v702_v18  ;;  %v709_v23 = vmul.f32 0.99, %v704_v19 }
 0x1a1   : > { %v710_v24 = vadd.f32 %v707_v21, %v706_v20 }
 0x1a2   : > { %v712_v25 = vadd.f32 %v709_v23, %v708_v22 }
 0x1a3   : > { %v711_v26 = vsel %vm705_vm8, %v706_v20, %v710_v24 }
 0x1a4   : > { %v713_v27 = vsel %vm705_vm8, %v708_v22, %v712_v25  ;;  %v715_v28 = vmul.f32 0.99, %v711_v26  ;;  %v717_v29 = vmul.f32 -0.1, %v711_v26  ;;  %vm714_vm9 = vcmp.gt.f32.partialorder %v711_v26, 0.0 }
 0x1a5   : > { %v716_v30 = vmul.f32 0.1, %v713_v27  ;;  %v718_v31 = vmul.f32 0.99, %v713_v27 }
 0x1a7   : > { %v719_v32 = vadd.f32 %v716_v30, %v715_v28  ;;  %v721_v33 = vadd.f32 %v718_v31, %v717_v29 }
 0x1a9   : > { %v720_v34 = vsel %vm714_vm9, %v715_v28, %v719_v32  ;;  %v722_v35 = vsel %vm714_vm9, %v717_v29, %v721_v33 }
 0x1aa   : > { %v724_v36 = vmul.f32 0.99, %v720_v34  ;;  %v725_v37 = vmul.f32 0.1, %v722_v35  ;;  %vm723_vm10 = vcmp.gt.f32.partialorder %v720_v34, 0.0 }
 0x1ab   : > { %v726_v38 = vmul.f32 -0.1, %v720_v34  ;;  %v727_v39 = vmul.f32 0.99, %v722_v35 }
 0x1ac   : > { %v728_v40 = vadd.f32 %v725_v37, %v724_v36 }
 0x1ad   : > { %v730_v41 = vadd.f32 %v727_v39, %v726_v38 }
 0x1ae   : > { %v729_v42 = vsel %vm723_vm10, %v724_v36, %v728_v40 }
 0x1af   : > { %v731_v43 = vsel %vm723_vm10, %v726_v38, %v730_v41  ;;  %v733_v44 = vmul.f32 0.99, %v729_v42  ;;  %v735_v45 = vmul.f32 -0.1, %v729_v42  ;;  %vm732_vm11 = vcmp.gt.f32.partialorder %v729_v42, 0.0 }
 0x1b0   : > { %v734_v46 = vmul.f32 0.1, %v731_v43  ;;  %v736_v47 = vmul.f32 0.99, %v731_v43 }
 0x1b2   : > { %v737_v48 = vadd.f32 %v734_v46, %v733_v44  ;;  %v739_v49 = vadd.f32 %v736_v47, %v735_v45 }
 0x1b4   : > { %v738_v50 = vsel %vm732_vm11, %v733_v44, %v737_v48  ;;  %v740_v51 = vsel %vm732_vm11, %v735_v45, %v739_v49 }
 0x1b5   : > { %v742_v52 = vmul.f32 0.99, %v738_v50  ;;  %v743_v53 = vmul.f32 0.1, %v740_v51  ;;  %vm741_vm12 = vcmp.gt.f32.partialorder %v738_v50, 0.0 }
 0x1b6   : > { %v744_v54 = vmul.f32 -0.1, %v738_v50  ;;  %v745_v55 = vmul.f32 0.99, %v740_v51 }
 0x1b7   : > { %v746_v56 = vadd.f32 %v743_v53, %v742_v52 }
 0x1b8   : > { %v748_v57 = vadd.f32 %v745_v55, %v744_v54 }
 0x1b9   : > { %v747_v58 = vsel %vm741_vm12, %v742_v52, %v746_v56 }
 0x1ba   : > { %v749_v59 = vsel %vm741_vm12, %v744_v54, %v748_v57  ;;  %v751_v60 = vmul.f32 0.99, %v747_v58  ;;  %v753_v61 = vmul.f32 -0.1, %v747_v58  ;;  %vm750_vm13 = vcmp.gt.f32.partialorder %v747_v58, 0.0 }
 0x1bb   : > { %v752_v62 = vmul.f32 0.1, %v749_v59  ;;  %v754_v63 = vmul.f32 0.99, %v749_v59 }
 0x1bd   : > { %v755_v0 = vadd.f32 %v752_v62, %v751_v60  ;;  %v757_v1 = vadd.f32 %v754_v63, %v753_v61 }
 0x1bf   : > { %v756_v2 = vsel %vm750_vm13, %v751_v60, %v755_v0  ;;  %v758_v3 = vsel %vm750_vm13, %v753_v61, %v757_v1 }
 0x1c0   : > { %v760_v4 = vmul.f32 0.99, %v756_v2  ;;  %v761_v5 = vmul.f32 0.1, %v758_v3  ;;  %vm759_vm14 = vcmp.gt.f32.partialorder %v756_v2, 0.0 }
 0x1c1   : > { %v762_v6 = vmul.f32 -0.1, %v756_v2  ;;  %v763_v7 = vmul.f32 0.99, %v758_v3 }
 0x1c2   : > { %v764_v8 = vadd.f32 %v761_v5, %v760_v4 }
 0x1c3   : > { %v766_v9 = vadd.f32 %v763_v7, %v762_v6 }
 0x1c4   : > { %v765_v10 = vsel %vm759_vm14, %v760_v4, %v764_v8 }
 0x1c5   : > { %v767_v11 = vsel %vm759_vm14, %v762_v6, %v766_v9  ;;  %v769_v14 = vmul.f32 0.99, %v765_v10  ;;  %v771_v15 = vmul.f32 -0.1, %v765_v10  ;;  %vm768_vm15 = vcmp.gt.f32.partialorder %v765_v10, 0.0 }
 0x1c6   : > { %v770_v16 = vmul.f32 0.1, %v767_v11  ;;  %v772_v17 = vmul.f32 0.99, %v767_v11 }
 0x1c8   : > { %v773_v18 = vadd.f32 %v770_v16, %v769_v14  ;;  %v775_v19 = vadd.f32 %v772_v17, %v771_v15 }
 0x1ca   : > { %v774_v20 = vsel %vm768_vm15, %v769_v14, %v773_v18  ;;  %v776_v21 = vsel %vm768_vm15, %v771_v15, %v775_v19 }
 0x1cb   : > { %v778_v22 = vmul.f32 0.99, %v774_v20  ;;  %v779_v23 = vmul.f32 0.1, %v776_v21  ;;  %vm777_vm0 = vcmp.gt.f32.partialorder %v774_v20, 0.0 }
 0x1cc   : > { %v780_v24 = vmul.f32 -0.1, %v774_v20  ;;  %v781_v25 = vmul.f32 0.99, %v776_v21 }
 0x1cd   : > { %v782_v26 = vadd.f32 %v779_v23, %v778_v22 }
 0x1ce   : > { %v784_v27 = vadd.f32 %v781_v25, %v780_v24 }
 0x1cf   : > { %v783_v28 = vsel %vm777_vm0, %v778_v22, %v782_v26 }
 0x1d0   : > { %v785_v29 = vsel %vm777_vm0, %v780_v24, %v784_v27  ;;  %v787_v30 = vmul.f32 0.99, %v783_v28  ;;  %v789_v31 = vmul.f32 -0.1, %v783_v28  ;;  %vm786_vm1 = vcmp.gt.f32.partialorder %v783_v28, 0.0 }
 0x1d1   : > { %v788_v32 = vmul.f32 0.1, %v785_v29  ;;  %v790_v33 = vmul.f32 0.99, %v785_v29 }
 0x1d3   : > { %v791_v34 = vadd.f32 %v788_v32, %v787_v30  ;;  %v793_v35 = vadd.f32 %v790_v33, %v789_v31 }
 0x1d5   : > { %v792_v36 = vsel %vm786_vm1, %v787_v30, %v791_v34  ;;  %v794_v37 = vsel %vm786_vm1, %v789_v31, %v793_v35 }
 0x1d6   : > { %v796_v38 = vmul.f32 0.99, %v792_v36  ;;  %v797_v39 = vmul.f32 0.1, %v794_v37  ;;  %vm795_vm2 = vcmp.gt.f32.partialorder %v792_v36, 0.0 }
 0x1d7   : > { %v798_v40 = vmul.f32 -0.1, %v792_v36  ;;  %v799_v41 = vmul.f32 0.99, %v794_v37 }
 0x1d8   : > { %v800_v42 = vadd.f32 %v797_v39, %v796_v38 }
 0x1d9   : > { %v802_v43 = vadd.f32 %v799_v41, %v798_v40 }
 0x1da   : > { %v801_v44 = vsel %vm795_vm2, %v796_v38, %v800_v42 }
 0x1db   : > { %v803_v45 = vsel %vm795_vm2, %v798_v40, %v802_v43  ;;  %v805_v46 = vmul.f32 0.99, %v801_v44  ;;  %v807_v47 = vmul.f32 -0.1, %v801_v44  ;;  %vm804_vm3 = vcmp.gt.f32.partialorder %v801_v44, 0.0 }
 0x1dc   : > { %v806_v48 = vmul.f32 0.1, %v803_v45  ;;  %v808_v49 = vmul.f32 0.99, %v803_v45 }
 0x1de   : > { %v809_v50 = vadd.f32 %v806_v48, %v805_v46  ;;  %v811_v51 = vadd.f32 %v808_v49, %v807_v47 }
 0x1e0   : > { %v810_v52 = vsel %vm804_vm3, %v805_v46, %v809_v50  ;;  %v812_v53 = vsel %vm804_vm3, %v807_v47, %v811_v51 }
 0x1e1   : > { %v814_v54 = vmul.f32 0.99, %v810_v52  ;;  %v815_v55 = vmul.f32 0.1, %v812_v53  ;;  %vm813_vm4 = vcmp.gt.f32.partialorder %v810_v52, 0.0 }
 0x1e2   : > { %v816_v56 = vmul.f32 -0.1, %v810_v52  ;;  %v817_v57 = vmul.f32 0.99, %v812_v53 }
 0x1e3   : > { %v818_v58 = vadd.f32 %v815_v55, %v814_v54 }
 0x1e4   : > { %v820_v59 = vadd.f32 %v817_v57, %v816_v56 }
 0x1e5   : > { %v819_v60 = vsel %vm813_vm4, %v814_v54, %v818_v58 }
 0x1e6   : > { %v821_v61 = vsel %vm813_vm4, %v816_v56, %v820_v59  ;;  %v823_v62 = vmul.f32 0.99, %v819_v60  ;;  %v825_v63 = vmul.f32 -0.1, %v819_v60  ;;  %vm822_vm5 = vcmp.gt.f32.partialorder %v819_v60, 0.0 }
 0x1e7   : > { %v824_v0 = vmul.f32 0.1, %v821_v61  ;;  %v826_v1 = vmul.f32 0.99, %v821_v61 }
 0x1e9   : > { %v827_v2 = vadd.f32 %v824_v0, %v823_v62  ;;  %v829_v3 = vadd.f32 %v826_v1, %v825_v63 }
 0x1eb   : > { %v828_v4 = vsel %vm822_vm5, %v823_v62, %v827_v2  ;;  %v830_v5 = vsel %vm822_vm5, %v825_v63, %v829_v3 }
 0x1ec   : > { %v832_v6 = vmul.f32 0.99, %v828_v4  ;;  %v833_v7 = vmul.f32 0.1, %v830_v5  ;;  %vm831_vm6 = vcmp.gt.f32.partialorder %v828_v4, 0.0 }
 0x1ed   : > { %v834_v8 = vmul.f32 -0.1, %v828_v4  ;;  %v835_v9 = vmul.f32 0.99, %v830_v5 }
 0x1ee   : > { %v836_v10 = vadd.f32 %v833_v7, %v832_v6 }
 0x1ef   : > { %v838_v11 = vadd.f32 %v835_v9, %v834_v8 }
 0x1f0   : > { %v837_v14 = vsel %vm831_vm6, %v832_v6, %v836_v10 }
 0x1f1   : > { %v839_v15 = vsel %vm831_vm6, %v834_v8, %v838_v11  ;;  %v841_v16 = vmul.f32 0.99, %v837_v14  ;;  %v843_v17 = vmul.f32 -0.1, %v837_v14  ;;  %vm840_vm7 = vcmp.gt.f32.partialorder %v837_v14, 0.0 }
 0x1f2   : > { %v842_v18 = vmul.f32 0.1, %v839_v15  ;;  %v844_v19 = vmul.f32 0.99, %v839_v15 }
 0x1f4   : > { %v845_v20 = vadd.f32 %v842_v18, %v841_v16  ;;  %v847_v21 = vadd.f32 %v844_v19, %v843_v17 }
 0x1f6   : > { %v846_v22 = vsel %vm840_vm7, %v841_v16, %v845_v20  ;;  %v848_v23 = vsel %vm840_vm7, %v843_v17, %v847_v21 }
 0x1f7   : > { %v850_v24 = vmul.f32 0.99, %v846_v22  ;;  %v851_v25 = vmul.f32 0.1, %v848_v23  ;;  %vm849_vm8 = vcmp.gt.f32.partialorder %v846_v22, 0.0 }
 0x1f8   : > { %v852_v26 = vmul.f32 -0.1, %v846_v22  ;;  %v853_v27 = vmul.f32 0.99, %v848_v23 }
 0x1f9   : > { %v854_v28 = vadd.f32 %v851_v25, %v850_v24 }
 0x1fa   : > { %v856_v29 = vadd.f32 %v853_v27, %v852_v26 }
 0x1fb   : > { %v855_v30 = vsel %vm849_vm8, %v850_v24, %v854_v28 }
 0x1fc   : > { %v857_v31 = vsel %vm849_vm8, %v852_v26, %v856_v29  ;;  %v859_v32 = vmul.f32 0.99, %v855_v30  ;;  %v861_v33 = vmul.f32 -0.1, %v855_v30  ;;  %vm858_vm9 = vcmp.gt.f32.partialorder %v855_v30, 0.0 }
 0x1fd   : > { %v860_v34 = vmul.f32 0.1, %v857_v31  ;;  %v862_v35 = vmul.f32 0.99, %v857_v31 }
 0x1ff   : > { %v863_v36 = vadd.f32 %v860_v34, %v859_v32  ;;  %v865_v37 = vadd.f32 %v862_v35, %v861_v33 }
 0x201   : > { %v864_v38 = vsel %vm858_vm9, %v859_v32, %v863_v36  ;;  %v866_v39 = vsel %vm858_vm9, %v861_v33, %v865_v37 }
 0x202   : > { %v868_v40 = vmul.f32 0.99, %v864_v38  ;;  %v869_v41 = vmul.f32 0.1, %v866_v39  ;;  %vm867_vm10 = vcmp.gt.f32.partialorder %v864_v38, 0.0 }
 0x203   : > { %v870_v42 = vmul.f32 -0.1, %v864_v38  ;;  %v871_v43 = vmul.f32 0.99, %v866_v39 }
 0x204   : > { %v872_v44 = vadd.f32 %v869_v41, %v868_v40 }
 0x205   : > { %v874_v45 = vadd.f32 %v871_v43, %v870_v42 }
 0x206   : > { %v873_v46 = vsel %vm867_vm10, %v868_v40, %v872_v44 }
 0x207   : > { %v875_v47 = vsel %vm867_vm10, %v870_v42, %v874_v45  ;;  %v877_v48 = vmul.f32 0.99, %v873_v46  ;;  %v879_v49 = vmul.f32 -0.1, %v873_v46  ;;  %vm876_vm11 = vcmp.gt.f32.partialorder %v873_v46, 0.0 }
 0x208   : > { %v878_v50 = vmul.f32 0.1, %v875_v47  ;;  %v880_v51 = vmul.f32 0.99, %v875_v47 }
 0x20a   : > { %v881_v52 = vadd.f32 %v878_v50, %v877_v48  ;;  %v883_v53 = vadd.f32 %v880_v51, %v879_v49 }
 0x20c   : > { %v882_v54 = vsel %vm876_vm11, %v877_v48, %v881_v52  ;;  %v884_v55 = vsel %vm876_vm11, %v879_v49, %v883_v53 }
 0x20d   : > { %v886_v56 = vmul.f32 0.99, %v882_v54  ;;  %v887_v57 = vmul.f32 0.1, %v884_v55  ;;  %vm885_vm12 = vcmp.gt.f32.partialorder %v882_v54, 0.0 }
 0x20e   : > { %v888_v58 = vmul.f32 -0.1, %v882_v54  ;;  %v889_v59 = vmul.f32 0.99, %v884_v55 }
 0x20f   : > { %v890_v60 = vadd.f32 %v887_v57, %v886_v56 }
 0x210   : > { %v892_v61 = vadd.f32 %v889_v59, %v888_v58 }
 0x211   : > { %v891_v62 = vsel %vm885_vm12, %v886_v56, %v890_v60 }
 0x212   : > { %v893_v63 = vsel %vm885_vm12, %v888_v58, %v892_v61  ;;  %v895_v0 = vmul.f32 0.99, %v891_v62  ;;  %v897_v1 = vmul.f32 -0.1, %v891_v62  ;;  %vm894_vm13 = vcmp.gt.f32.partialorder %v891_v62, 0.0 }
 0x213   : > { %v896_v2 = vmul.f32 0.1, %v893_v63  ;;  %v898_v3 = vmul.f32 0.99, %v893_v63 }
 0x215   : > { %v899_v4 = vadd.f32 %v896_v2, %v895_v0  ;;  %v901_v5 = vadd.f32 %v898_v3, %v897_v1 }
 0x217   : > { %v900_v6 = vsel %vm894_vm13, %v895_v0, %v899_v4  ;;  %v902_v7 = vsel %vm894_vm13, %v897_v1, %v901_v5 }
 0x218   : > { %v904_v8 = vmul.f32 0.99, %v900_v6  ;;  %v905_v9 = vmul.f32 0.1, %v902_v7  ;;  %vm903_vm14 = vcmp.gt.f32.partialorder %v900_v6, 0.0 }
 0x219   : > { %v906_v10 = vmul.f32 -0.1, %v900_v6  ;;  %v907_v11 = vmul.f32 0.99, %v902_v7 }
 0x21a   : > { %v908_v14 = vadd.f32 %v905_v9, %v904_v8 }
 0x21b   : > { %v910_v15 = vadd.f32 %v907_v11, %v906_v10 }
 0x21c   : > { %v909_v16 = vsel %vm903_vm14, %v904_v8, %v908_v14 }
 0x21d   : > { %v911_v17 = vsel %vm903_vm14, %v906_v10, %v910_v15  ;;  %v913_v18 = vmul.f32 0.99, %v909_v16  ;;  %v915_v19 = vmul.f32 -0.1, %v909_v16  ;;  %vm912_vm15 = vcmp.gt.f32.partialorder %v909_v16, 0.0 }
 0x21e   : > { %v914_v20 = vmul.f32 0.1, %v911_v17  ;;  %v916_v21 = vmul.f32 0.99, %v911_v17 }
 0x21f   :  { %339 = sbr.rel (!%p337_p0) target bundleno = 191 (0xbf), region = 43 }
 0x220   : > { %v917_v22 = vadd.f32 %v914_v20, %v913_v18  ;;  %v919_v23 = vadd.f32 %v916_v21, %v915_v19 }
 0x222   : > { %v918_v24 = vsel %vm912_vm15, %v913_v18, %v917_v22   ;;  %v920_v25 = vsel %vm912_vm15, %v915_v19, %v919_v23  }
 0x223   : > { %v1500_v4 = vmov %v918_v24  ;;  %v1501_v5 = vmov %v920_v25  ;;  %v922_v26 = vmul.f32 (%p337_p0), 0.99, %v918_v24  ;;  %v923_v27 = vmul.f32 (%p337_p0), 0.1, %v920_v25 }
 0x224   :  { %v924_v28 = vmul.f32 -0.1, %v918_v24  ;;  %v925_v29 = vmul.f32 0.99, %v920_v25  ;;  %vm921_vm0 = vcmp.gt.f32.partialorder %v918_v24, 0.0 }
 0x225   :  { %v926_v30 = vadd.f32 %v923_v27, %v922_v26 }
 0x226   :  { %v928_v31 = vadd.f32 %v925_v29, %v924_v28 }
 0x227   :  { %v927_v32 = vsel %vm921_vm0, %v922_v26, %v926_v30 }
 0x228   :  { %v929_v33 = vsel %vm921_vm0, %v924_v28, %v928_v31  ;;  %v932_v35 = vmul.f32 0.99, %v927_v32  ;;  %v934_v36 = vmul.f32 -0.1, %v927_v32  ;;  %vm931_vm1 = vcmp.gt.f32.partialorder %v927_v32, 0.0 }
 0x229   :  { %v930_v34 = vadd.f32 %v929_v33, %v1468_v13 }
 0x22b   :  { %v933_v37 = vmul.f32 0.1, %v930_v34  ;;  %v935_v38 = vmul.f32 0.99, %v930_v34 }
 0x22d   :  { %v936_v39 = vadd.f32 %v933_v37, %v932_v35  ;;  %v938_v40 = vadd.f32 %v935_v38, %v934_v36 }
 0x22f   :  { %v937_v41 = vsel %vm931_vm1, %v932_v35, %v936_v39  ;;  %v939_v42 = vsel %vm931_vm1, %v934_v36, %v938_v40 }
 0x230   :  { %v941_v43 = vmul.f32 0.99, %v937_v41  ;;  %v942_v44 = vmul.f32 0.1, %v939_v42  ;;  %vm940_vm2 = vcmp.gt.f32.partialorder %v937_v41, 0.0 }
 0x231   :  { %v943_v45 = vmul.f32 -0.1, %v937_v41  ;;  %v944_v46 = vmul.f32 0.99, %v939_v42 }
 0x232   :  { %v945_v47 = vadd.f32 %v942_v44, %v941_v43 }
 0x233   :  { %v947_v48 = vadd.f32 %v944_v46, %v943_v45 }
 0x234   :  { %v946_v49 = vsel %vm940_vm2, %v941_v43, %v945_v47 }
 0x235   :  { %v948_v50 = vsel %vm940_vm2, %v943_v45, %v947_v48  ;;  %v950_v51 = vmul.f32 0.99, %v946_v49  ;;  %v952_v13 = vmul.f32 -0.1, %v946_v49  ;;  %vm949_vm3 = vcmp.gt.f32.partialorder %v946_v49, 0.0 }
 0x236   :  { %v951_v52 = vmul.f32 0.1, %v948_v50  ;;  %v953_v53 = vmul.f32 0.99, %v948_v50 }
 0x238   :  { %v954_v54 = vadd.f32 %v951_v52, %v950_v51  ;;  %v956_v55 = vadd.f32 %v953_v53, %v952_v13 }
 0x23a   :  { %v955_v56 = vsel %vm949_vm3, %v950_v51, %v954_v54  ;;  %v957_v57 = vsel %vm949_vm3, %v952_v13, %v956_v55 }
 0x23b   :  { %v959_v58 = vmul.f32 0.99, %v955_v56  ;;  %v960_v59 = vmul.f32 0.1, %v957_v57  ;;  %vm958_vm4 = vcmp.gt.f32.partialorder %v955_v56, 0.0 }
 0x23c   :  { %v961_v60 = vmul.f32 -0.1, %v955_v56  ;;  %v962_v61 = vmul.f32 0.99, %v957_v57 }
 0x23d   :  { %v963_v62 = vadd.f32 %v960_v59, %v959_v58 }
 0x23e   :  { %v965_v63 = vadd.f32 %v962_v61, %v961_v60 }
 0x23f   :  { %v964_v0 = vsel %vm958_vm4, %v959_v58, %v963_v62 }
 0x240   :  { %v966_v1 = vsel %vm958_vm4, %v961_v60, %v965_v63  ;;  %v968_v2 = vmul.f32 0.99, %v964_v0  ;;  %v970_v3 = vmul.f32 -0.1, %v964_v0  ;;  %vm967_vm5 = vcmp.gt.f32.partialorder %v964_v0, 0.0 }
 0x241   :  { %v969_v4 = vmul.f32 0.1, %v966_v1  ;;  %v971_v5 = vmul.f32 0.99, %v966_v1 }
 0x243   :  { %v972_v6 = vadd.f32 %v969_v4, %v968_v2  ;;  %v974_v7 = vadd.f32 %v971_v5, %v970_v3 }
 0x245   :  { %v973_v8 = vsel %vm967_vm5, %v968_v2, %v972_v6  ;;  %v975_v9 = vsel %vm967_vm5, %v970_v3, %v974_v7 }
 0x246   :  { %v977_v10 = vmul.f32 0.99, %v973_v8  ;;  %v978_v11 = vmul.f32 0.1, %v975_v9  ;;  %vm976_vm6 = vcmp.gt.f32.partialorder %v973_v8, 0.0 }
 0x247   :  { %v979_v14 = vmul.f32 -0.1, %v973_v8  ;;  %v980_v15 = vmul.f32 0.99, %v975_v9 }
 0x248   :  { %v981_v16 = vadd.f32 %v978_v11, %v977_v10 }
 0x249   :  { %v983_v17 = vadd.f32 %v980_v15, %v979_v14 }
 0x24a   :  { %v982_v18 = vsel %vm976_vm6, %v977_v10, %v981_v16 }
 0x24b   :  { %v984_v19 = vsel %vm976_vm6, %v979_v14, %v983_v17  ;;  %v986_v20 = vmul.f32 0.99, %v982_v18  ;;  %v988_v21 = vmul.f32 -0.1, %v982_v18  ;;  %vm985_vm7 = vcmp.gt.f32.partialorder %v982_v18, 0.0 }
 0x24c   :  { %v987_v22 = vmul.f32 0.1, %v984_v19  ;;  %v989_v23 = vmul.f32 0.99, %v984_v19 }
 0x24e   :  { %v990_v24 = vadd.f32 %v987_v22, %v986_v20  ;;  %v992_v25 = vadd.f32 %v989_v23, %v988_v21 }
 0x250   :  { %v991_v26 = vsel %vm985_vm7, %v986_v20, %v990_v24  ;;  %v993_v27 = vsel %vm985_vm7, %v988_v21, %v992_v25 }
 0x251   :  { %v995_v28 = vmul.f32 0.99, %v991_v26  ;;  %v996_v29 = vmul.f32 0.1, %v993_v27  ;;  %vm994_vm8 = vcmp.gt.f32.partialorder %v991_v26, 0.0 }
 0x252   :  { %v997_v30 = vmul.f32 -0.1, %v991_v26  ;;  %v998_v31 = vmul.f32 0.99, %v993_v27 }
 0x253   :  { %v999_v32 = vadd.f32 %v996_v29, %v995_v28 }
 0x254   :  { %v1001_v33 = vadd.f32 %v998_v31, %v997_v30 }
 0x255   :  { %v1000_v34 = vsel %vm994_vm8, %v995_v28, %v999_v32 }
 0x256   :  { %v1002_v35 = vsel %vm994_vm8, %v997_v30, %v1001_v33  ;;  %v1004_v36 = vmul.f32 0.99, %v1000_v34  ;;  %v1006_v37 = vmul.f32 -0.1, %v1000_v34  ;;  %vm1003_vm9 = vcmp.gt.f32.partialorder %v1000_v34, 0.0 }
 0x257   :  { %v1005_v38 = vmul.f32 0.1, %v1002_v35  ;;  %v1007_v39 = vmul.f32 0.99, %v1002_v35 }
 0x259   :  { %v1008_v40 = vadd.f32 %v1005_v38, %v1004_v36  ;;  %v1010_v41 = vadd.f32 %v1007_v39, %v1006_v37 }
 0x25b   :  { %v1009_v42 = vsel %vm1003_vm9, %v1004_v36, %v1008_v40  ;;  %v1011_v43 = vsel %vm1003_vm9, %v1006_v37, %v1010_v41 }
 0x25c   :  { %v1013_v44 = vmul.f32 0.99, %v1009_v42  ;;  %v1014_v45 = vmul.f32 0.1, %v1011_v43  ;;  %vm1012_vm10 = vcmp.gt.f32.partialorder %v1009_v42, 0.0 }
 0x25d   :  { %v1015_v46 = vmul.f32 -0.1, %v1009_v42  ;;  %v1016_v47 = vmul.f32 0.99, %v1011_v43 }
 0x25e   :  { %v1017_v48 = vadd.f32 %v1014_v45, %v1013_v44 }
 0x25f   :  { %v1019_v49 = vadd.f32 %v1016_v47, %v1015_v46 }
 0x260   :  { %v1018_v50 = vsel %vm1012_vm10, %v1013_v44, %v1017_v48 }
 0x261   :  { %v1020_v51 = vsel %vm1012_vm10, %v1015_v46, %v1019_v49  ;;  %v1022_v13 = vmul.f32 0.99, %v1018_v50  ;;  %v1024_v52 = vmul.f32 -0.1, %v1018_v50  ;;  %vm1021_vm11 = vcmp.gt.f32.partialorder %v1018_v50, 0.0 }
 0x262   :  { %v1023_v53 = vmul.f32 0.1, %v1020_v51  ;;  %v1025_v54 = vmul.f32 0.99, %v1020_v51 }
 0x264   :  { %v1026_v55 = vadd.f32 %v1023_v53, %v1022_v13  ;;  %v1028_v56 = vadd.f32 %v1025_v54, %v1024_v52 }
 0x266   :  { %v1027_v57 = vsel %vm1021_vm11, %v1022_v13, %v1026_v55  ;;  %v1029_v58 = vsel %vm1021_vm11, %v1024_v52, %v1028_v56 }
 0x267   :  { %v1031_v59 = vmul.f32 0.99, %v1027_v57  ;;  %v1032_v60 = vmul.f32 0.1, %v1029_v58  ;;  %vm1030_vm12 = vcmp.gt.f32.partialorder %v1027_v57, 0.0 }
 0x268   :  { %v1033_v61 = vmul.f32 -0.1, %v1027_v57  ;;  %v1034_v62 = vmul.f32 0.99, %v1029_v58 }
 0x269   :  { %v1035_v63 = vadd.f32 %v1032_v60, %v1031_v59 }
 0x26a   :  { %v1037_v0 = vadd.f32 %v1034_v62, %v1033_v61 }
 0x26b   :  { %v1036_v1 = vsel %vm1030_vm12, %v1031_v59, %v1035_v63 }
 0x26c   :  { %v1038_v2 = vsel %vm1030_vm12, %v1033_v61, %v1037_v0  ;;  %v1040_v3 = vmul.f32 0.99, %v1036_v1  ;;  %v1042_v4 = vmul.f32 -0.1, %v1036_v1  ;;  %vm1039_vm13 = vcmp.gt.f32.partialorder %v1036_v1, 0.0 }
 0x26d   :  { %v1041_v5 = vmul.f32 0.1, %v1038_v2  ;;  %v1043_v6 = vmul.f32 0.99, %v1038_v2 }
 0x26f   :  { %v1044_v7 = vadd.f32 %v1041_v5, %v1040_v3  ;;  %v1046_v8 = vadd.f32 %v1043_v6, %v1042_v4 }
 0x271   :  { %v1045_v9 = vsel %vm1039_vm13, %v1040_v3, %v1044_v7  ;;  %v1047_v10 = vsel %vm1039_vm13, %v1042_v4, %v1046_v8 }
 0x272   :  { %v1049_v11 = vmul.f32 0.99, %v1045_v9  ;;  %v1050_v14 = vmul.f32 0.1, %v1047_v10  ;;  %vm1048_vm14 = vcmp.gt.f32.partialorder %v1045_v9, 0.0 }
 0x273   :  { %v1051_v15 = vmul.f32 -0.1, %v1045_v9  ;;  %v1052_v16 = vmul.f32 0.99, %v1047_v10 }
 0x274   :  { %v1053_v17 = vadd.f32 %v1050_v14, %v1049_v11 }
 0x275   :  { %v1055_v18 = vadd.f32 %v1052_v16, %v1051_v15 }
 0x276   :  { %v1054_v19 = vsel %vm1048_vm14, %v1049_v11, %v1053_v17 }
 0x277   :  { %v1056_v20 = vsel %vm1048_vm14, %v1051_v15, %v1055_v18  ;;  %v1058_v21 = vmul.f32 0.99, %v1054_v19  ;;  %v1060_v22 = vmul.f32 -0.1, %v1054_v19  ;;  %vm1057_vm15 = vcmp.gt.f32.partialorder %v1054_v19, 0.0 }
 0x278   :  { %v1059_v23 = vmul.f32 0.1, %v1056_v20  ;;  %v1061_v24 = vmul.f32 0.99, %v1056_v20 }
 0x27a   :  { %v1062_v25 = vadd.f32 %v1059_v23, %v1058_v21  ;;  %v1064_v26 = vadd.f32 %v1061_v24, %v1060_v22 }
 0x27c   :  { %v1063_v27 = vsel %vm1057_vm15, %v1058_v21, %v1062_v25  ;;  %v1065_v28 = vsel %vm1057_vm15, %v1060_v22, %v1064_v26 }
 0x27d   :  { %v1067_v29 = vmul.f32 0.99, %v1063_v27  ;;  %v1068_v30 = vmul.f32 0.1, %v1065_v28  ;;  %vm1066_vm0 = vcmp.gt.f32.partialorder %v1063_v27, 0.0 }
 0x27e   :  { %v1069_v31 = vmul.f32 -0.1, %v1063_v27  ;;  %v1070_v32 = vmul.f32 0.99, %v1065_v28 }
 0x27f   :  { %v1071_v33 = vadd.f32 %v1068_v30, %v1067_v29 }
 0x280   :  { %v1073_v34 = vadd.f32 %v1070_v32, %v1069_v31 }
 0x281   :  { %v1072_v35 = vsel %vm1066_vm0, %v1067_v29, %v1071_v33 }
 0x282   :  { %v1074_v36 = vsel %vm1066_vm0, %v1069_v31, %v1073_v34  ;;  %v1076_v37 = vmul.f32 0.99, %v1072_v35  ;;  %v1078_v38 = vmul.f32 -0.1, %v1072_v35  ;;  %vm1075_vm1 = vcmp.gt.f32.partialorder %v1072_v35, 0.0 }
 0x283   :  { %v1077_v39 = vmul.f32 0.1, %v1074_v36  ;;  %v1079_v40 = vmul.f32 0.99, %v1074_v36 }
 0x285   :  { %v1080_v41 = vadd.f32 %v1077_v39, %v1076_v37  ;;  %v1082_v42 = vadd.f32 %v1079_v40, %v1078_v38 }
 0x287   :  { %v1081_v43 = vsel %vm1075_vm1, %v1076_v37, %v1080_v41  ;;  %v1083_v44 = vsel %vm1075_vm1, %v1078_v38, %v1082_v42 }
 0x288   :  { %v1085_v45 = vmul.f32 0.99, %v1081_v43  ;;  %v1086_v46 = vmul.f32 0.1, %v1083_v44  ;;  %vm1084_vm2 = vcmp.gt.f32.partialorder %v1081_v43, 0.0 }
 0x289   :  { %v1087_v47 = vmul.f32 -0.1, %v1081_v43  ;;  %v1088_v48 = vmul.f32 0.99, %v1083_v44 }
 0x28a   :  { %v1089_v49 = vadd.f32 %v1086_v46, %v1085_v45 }
 0x28b   :  { %v1091_v50 = vadd.f32 %v1088_v48, %v1087_v47 }
 0x28c   :  { %v1090_v51 = vsel %vm1084_vm2, %v1085_v45, %v1089_v49 }
 0x28d   :  { %v1092_v13 = vsel %vm1084_vm2, %v1087_v47, %v1091_v50  ;;  %v1094_v52 = vmul.f32 0.99, %v1090_v51  ;;  %v1096_v53 = vmul.f32 -0.1, %v1090_v51  ;;  %vm1093_vm3 = vcmp.gt.f32.partialorder %v1090_v51, 0.0 }
 0x28e   :  { %v1095_v54 = vmul.f32 0.1, %v1092_v13  ;;  %v1097_v55 = vmul.f32 0.99, %v1092_v13 }
 0x290   :  { %v1098_v56 = vadd.f32 %v1095_v54, %v1094_v52  ;;  %v1100_v57 = vadd.f32 %v1097_v55, %v1096_v53 }
 0x292   :  { %v1099_v58 = vsel %vm1093_vm3, %v1094_v52, %v1098_v56  ;;  %v1101_v59 = vsel %vm1093_vm3, %v1096_v53, %v1100_v57 }
 0x293   :  { %v1103_v60 = vmul.f32 0.99, %v1099_v58  ;;  %v1104_v61 = vmul.f32 0.1, %v1101_v59  ;;  %vm1102_vm4 = vcmp.gt.f32.partialorder %v1099_v58, 0.0 }
 0x294   :  { %v1105_v62 = vmul.f32 -0.1, %v1099_v58  ;;  %v1106_v63 = vmul.f32 0.99, %v1101_v59 }
 0x295   :  { %v1107_v0 = vadd.f32 %v1104_v61, %v1103_v60 }
 0x296   :  { %v1109_v1 = vadd.f32 %v1106_v63, %v1105_v62 }
 0x297   :  { %v1108_v2 = vsel %vm1102_vm4, %v1103_v60, %v1107_v0 }
 0x298   :  { %v1110_v3 = vsel %vm1102_vm4, %v1105_v62, %v1109_v1  ;;  %v1112_v4 = vmul.f32 0.99, %v1108_v2  ;;  %v1114_v5 = vmul.f32 -0.1, %v1108_v2  ;;  %vm1111_vm5 = vcmp.gt.f32.partialorder %v1108_v2, 0.0 }
 0x299   :  { %v1113_v6 = vmul.f32 0.1, %v1110_v3  ;;  %v1115_v7 = vmul.f32 0.99, %v1110_v3 }
 0x29b   :  { %v1116_v8 = vadd.f32 %v1113_v6, %v1112_v4  ;;  %v1118_v9 = vadd.f32 %v1115_v7, %v1114_v5 }
 0x29d   :  { %v1117_v10 = vsel %vm1111_vm5, %v1112_v4, %v1116_v8  ;;  %v1119_v11 = vsel %vm1111_vm5, %v1114_v5, %v1118_v9 }
 0x29e   :  { %v1121_v14 = vmul.f32 0.99, %v1117_v10  ;;  %v1122_v15 = vmul.f32 0.1, %v1119_v11  ;;  %vm1120_vm6 = vcmp.gt.f32.partialorder %v1117_v10, 0.0 }
 0x29f   :  { %v1123_v16 = vmul.f32 -0.1, %v1117_v10  ;;  %v1124_v17 = vmul.f32 0.99, %v1119_v11 }
 0x2a0   :  { %v1125_v18 = vadd.f32 %v1122_v15, %v1121_v14 }
 0x2a1   :  { %v1127_v19 = vadd.f32 %v1124_v17, %v1123_v16 }
 0x2a2   :  { %v1126_v20 = vsel %vm1120_vm6, %v1121_v14, %v1125_v18 }
 0x2a3   :  { %v1128_v21 = vsel %vm1120_vm6, %v1123_v16, %v1127_v19  ;;  %v1130_v22 = vmul.f32 0.99, %v1126_v20  ;;  %v1132_v23 = vmul.f32 -0.1, %v1126_v20  ;;  %vm1129_vm7 = vcmp.gt.f32.partialorder %v1126_v20, 0.0 }
 0x2a4   :  { %v1131_v24 = vmul.f32 0.1, %v1128_v21  ;;  %v1133_v25 = vmul.f32 0.99, %v1128_v21 }
 0x2a6   :  { %v1134_v26 = vadd.f32 %v1131_v24, %v1130_v22  ;;  %v1136_v27 = vadd.f32 %v1133_v25, %v1132_v23 }
 0x2a8   :  { %v1135_v28 = vsel %vm1129_vm7, %v1130_v22, %v1134_v26  ;;  %v1137_v29 = vsel %vm1129_vm7, %v1132_v23, %v1136_v27 }
 0x2a9   :  { %v1139_v30 = vmul.f32 0.99, %v1135_v28  ;;  %v1140_v31 = vmul.f32 0.1, %v1137_v29  ;;  %vm1138_vm8 = vcmp.gt.f32.partialorder %v1135_v28, 0.0 }
 0x2aa   :  { %v1141_v32 = vmul.f32 -0.1, %v1135_v28  ;;  %v1142_v33 = vmul.f32 0.99, %v1137_v29 }
 0x2ab   :  { %v1143_v34 = vadd.f32 %v1140_v31, %v1139_v30 }
 0x2ac   :  { %v1145_v35 = vadd.f32 %v1142_v33, %v1141_v32 }
 0x2ad   :  { %v1144_v36 = vsel %vm1138_vm8, %v1139_v30, %v1143_v34 }
 0x2ae   :  { %v1146_v37 = vsel %vm1138_vm8, %v1141_v32, %v1145_v35  ;;  %v1148_v38 = vmul.f32 0.99, %v1144_v36  ;;  %v1150_v39 = vmul.f32 -0.1, %v1144_v36  ;;  %vm1147_vm9 = vcmp.gt.f32.partialorder %v1144_v36, 0.0 }
 0x2af   :  { %v1149_v40 = vmul.f32 0.1, %v1146_v37  ;;  %v1151_v41 = vmul.f32 0.99, %v1146_v37 }
 0x2b1   :  { %v1152_v42 = vadd.f32 %v1149_v40, %v1148_v38  ;;  %v1154_v43 = vadd.f32 %v1151_v41, %v1150_v39 }
 0x2b3   :  { %v1153_v44 = vsel %vm1147_vm9, %v1148_v38, %v1152_v42  ;;  %v1155_v45 = vsel %vm1147_vm9, %v1150_v39, %v1154_v43 }
 0x2b4   :  { %v1157_v46 = vmul.f32 0.99, %v1153_v44  ;;  %v1158_v47 = vmul.f32 0.1, %v1155_v45  ;;  %vm1156_vm10 = vcmp.gt.f32.partialorder %v1153_v44, 0.0 }
 0x2b5   :  { %v1159_v48 = vmul.f32 -0.1, %v1153_v44  ;;  %v1160_v49 = vmul.f32 0.99, %v1155_v45 }
 0x2b6   :  { %v1161_v50 = vadd.f32 %v1158_v47, %v1157_v46 }
 0x2b7   :  { %v1163_v51 = vadd.f32 %v1160_v49, %v1159_v48 }
 0x2b8   :  { %v1162_v13 = vsel %vm1156_vm10, %v1157_v46, %v1161_v50 }
 0x2b9   :  { %v1164_v52 = vsel %vm1156_vm10, %v1159_v48, %v1163_v51  ;;  %v1166_v53 = vmul.f32 0.99, %v1162_v13  ;;  %v1168_v54 = vmul.f32 -0.1, %v1162_v13  ;;  %vm1165_vm11 = vcmp.gt.f32.partialorder %v1162_v13, 0.0 }
 0x2ba   :  { %v1167_v55 = vmul.f32 0.1, %v1164_v52  ;;  %v1169_v56 = vmul.f32 0.99, %v1164_v52 }
 0x2bc   :  { %v1170_v57 = vadd.f32 %v1167_v55, %v1166_v53  ;;  %v1172_v58 = vadd.f32 %v1169_v56, %v1168_v54 }
 0x2be   :  { %v1171_v59 = vsel %vm1165_vm11, %v1166_v53, %v1170_v57  ;;  %v1173_v60 = vsel %vm1165_vm11, %v1168_v54, %v1172_v58 }
 0x2bf   :  { %v1175_v61 = vmul.f32 0.99, %v1171_v59  ;;  %v1176_v62 = vmul.f32 0.1, %v1173_v60  ;;  %vm1174_vm12 = vcmp.gt.f32.partialorder %v1171_v59, 0.0 }
 0x2c0   :  { %v1177_v63 = vmul.f32 -0.1, %v1171_v59  ;;  %v1178_v0 = vmul.f32 0.99, %v1173_v60 }
 0x2c1   :  { %v1179_v1 = vadd.f32 %v1176_v62, %v1175_v61 }
 0x2c2   :  { %v1181_v2 = vadd.f32 %v1178_v0, %v1177_v63 }
 0x2c3   :  { %v1180_v3 = vsel %vm1174_vm12, %v1175_v61, %v1179_v1 }
 0x2c4   :  { %v1182_v4 = vsel %vm1174_vm12, %v1177_v63, %v1181_v2  ;;  %v1184_v5 = vmul.f32 0.99, %v1180_v3  ;;  %v1186_v6 = vmul.f32 -0.1, %v1180_v3  ;;  %vm1183_vm13 = vcmp.gt.f32.partialorder %v1180_v3, 0.0 }
 0x2c5   :  { %v1185_v7 = vmul.f32 0.1, %v1182_v4  ;;  %v1187_v8 = vmul.f32 0.99, %v1182_v4 }
 0x2c7   :  { %v1188_v9 = vadd.f32 %v1185_v7, %v1184_v5  ;;  %v1190_v10 = vadd.f32 %v1187_v8, %v1186_v6 }
 0x2c9   :  { %v1189_v11 = vsel %vm1183_vm13, %v1184_v5, %v1188_v9  ;;  %v1191_v14 = vsel %vm1183_vm13, %v1186_v6, %v1190_v10 }
 0x2ca   :  { %v1193_v15 = vmul.f32 0.99, %v1189_v11  ;;  %v1194_v16 = vmul.f32 0.1, %v1191_v14  ;;  %vm1192_vm14 = vcmp.gt.f32.partialorder %v1189_v11, 0.0 }
 0x2cb   :  { %v1195_v17 = vmul.f32 -0.1, %v1189_v11  ;;  %v1196_v18 = vmul.f32 0.99, %v1191_v14 }
 0x2cc   :  { %v1197_v19 = vadd.f32 %v1194_v16, %v1193_v15 }
 0x2cd   :  { %v1199_v20 = vadd.f32 %v1196_v18, %v1195_v17 }
 0x2ce   :  { %v1198_v21 = vsel %vm1192_vm14, %v1193_v15, %v1197_v19 }
 0x2cf   :  { %v1200_v22 = vsel %vm1192_vm14, %v1195_v17, %v1199_v20  ;;  %v1202_v23 = vmul.f32 0.99, %v1198_v21  ;;  %v1204_v24 = vmul.f32 -0.1, %v1198_v21  ;;  %vm1201_vm15 = vcmp.gt.f32.partialorder %v1198_v21, 0.0 }
 0x2d0   :  { %v1203_v25 = vmul.f32 0.1, %v1200_v22  ;;  %v1205_v26 = vmul.f32 0.99, %v1200_v22 }
 0x2d2   :  { %v1206_v27 = vadd.f32 %v1203_v25, %v1202_v23  ;;  %v1208_v28 = vadd.f32 %v1205_v26, %v1204_v24 }
 0x2d4   :  { %v1207_v29 = vsel %vm1201_vm15, %v1202_v23, %v1206_v27  ;;  %v1209_v30 = vsel %vm1201_vm15, %v1204_v24, %v1208_v28 }
 0x2d5   :  { %v1211_v31 = vmul.f32 0.99, %v1207_v29  ;;  %v1212_v32 = vmul.f32 0.1, %v1209_v30  ;;  %v1213_v33 = vmul.f32 -0.1, %v1207_v29 }
 0x2d6   :  { %v1214_v34 = vmul.f32 0.99, %v1209_v30  ;;  %vm1210_vm0 = vcmp.gt.f32.partialorder %v1207_v29, 0.0 }
 0x2d7   :  { %v1215_v35 = vadd.f32 %v1212_v32, %v1211_v31 }
 0x2d8   :  { %v1217_v36 = vadd.f32 %v1214_v34, %v1213_v33 }
 0x2d9   :  { %v1216_v37 = vsel %vm1210_vm0, %v1211_v31, %v1215_v35 }
 0x2da   :  { %v1218_v38 = vsel %vm1210_vm0, %v1213_v33, %v1217_v36  ;;  %v1221_v40 = vmul.f32 0.99, %v1216_v37  ;;  %v1223_v41 = vmul.f32 -0.1, %v1216_v37  ;;  %vm1220_vm1 = vcmp.gt.f32.partialorder %v1216_v37, 0.0 }
 0x2db   :  { %v1219_v39 = vadd.f32 %v1218_v38, %v1466_v12 }
 0x2dd   :  { %v1222_v42 = vmul.f32 0.1, %v1219_v39  ;;  %v1224_v43 = vmul.f32 0.99, %v1219_v39 }
 0x2df   :  { %v1225_v44 = vadd.f32 %v1222_v42, %v1221_v40  ;;  %v1227_v45 = vadd.f32 %v1224_v43, %v1223_v41 }
 0x2e1   :  { %v1226_v46 = vsel %vm1220_vm1, %v1221_v40, %v1225_v44  ;;  %v1228_v47 = vsel %vm1220_vm1, %v1223_v41, %v1227_v45 }
 0x2e2   :  { %v1230_v48 = vmul.f32 0.99, %v1226_v46  ;;  %v1231_v49 = vmul.f32 0.1, %v1228_v47  ;;  %vm1229_vm2 = vcmp.gt.f32.partialorder %v1226_v46, 0.0 }
 0x2e3   :  { %v1232_v50 = vmul.f32 -0.1, %v1226_v46  ;;  %v1233_v51 = vmul.f32 0.99, %v1228_v47 }
 0x2e4   :  { %v1234_v13 = vadd.f32 %v1231_v49, %v1230_v48 }
 0x2e5   :  { %v1236_v52 = vadd.f32 %v1233_v51, %v1232_v50 }
 0x2e6   :  { %v1235_v53 = vsel %vm1229_vm2, %v1230_v48, %v1234_v13 }
 0x2e7   :  { %v1237_v54 = vsel %vm1229_vm2, %v1232_v50, %v1236_v52  ;;  %v1239_v55 = vmul.f32 0.99, %v1235_v53  ;;  %v1241_v12 = vmul.f32 -0.1, %v1235_v53  ;;  %vm1238_vm3 = vcmp.gt.f32.partialorder %v1235_v53, 0.0 }
 0x2e8   :  { %v1240_v56 = vmul.f32 0.1, %v1237_v54  ;;  %v1242_v57 = vmul.f32 0.99, %v1237_v54 }
 0x2ea   :  { %v1243_v58 = vadd.f32 %v1240_v56, %v1239_v55  ;;  %v1245_v59 = vadd.f32 %v1242_v57, %v1241_v12 }
 0x2ec   :  { %v1244_v60 = vsel %vm1238_vm3, %v1239_v55, %v1243_v58  ;;  %v1246_v61 = vsel %vm1238_vm3, %v1241_v12, %v1245_v59 }
 0x2ed   :  { %v1248_v62 = vmul.f32 0.99, %v1244_v60  ;;  %v1249_v63 = vmul.f32 0.1, %v1246_v61  ;;  %vm1247_vm4 = vcmp.gt.f32.partialorder %v1244_v60, 0.0 }
 0x2ee   :  { %v1250_v0 = vmul.f32 -0.1, %v1244_v60  ;;  %v1251_v1 = vmul.f32 0.99, %v1246_v61 }
 0x2ef   :  { %v1252_v2 = vadd.f32 %v1249_v63, %v1248_v62 }
 0x2f0   :  { %v1254_v3 = vadd.f32 %v1251_v1, %v1250_v0 }
 0x2f1   :  { %v1253_v4 = vsel %vm1247_vm4, %v1248_v62, %v1252_v2 }
 0x2f2   :  { %v1255_v5 = vsel %vm1247_vm4, %v1250_v0, %v1254_v3  ;;  %v1257_v6 = vmul.f32 0.99, %v1253_v4  ;;  %v1259_v7 = vmul.f32 -0.1, %v1253_v4  ;;  %vm1256_vm5 = vcmp.gt.f32.partialorder %v1253_v4, 0.0 }
 0x2f3   :  { %v1258_v8 = vmul.f32 0.1, %v1255_v5  ;;  %v1260_v9 = vmul.f32 0.99, %v1255_v5 }
 0x2f5   :  { %v1261_v10 = vadd.f32 %v1258_v8, %v1257_v6  ;;  %v1263_v11 = vadd.f32 %v1260_v9, %v1259_v7 }
 0x2f7   :  { %v1262_v14 = vsel %vm1256_vm5, %v1257_v6, %v1261_v10  ;;  %v1264_v15 = vsel %vm1256_vm5, %v1259_v7, %v1263_v11 }
 0x2f8   :  { %v1266_v16 = vmul.f32 0.99, %v1262_v14  ;;  %v1267_v17 = vmul.f32 0.1, %v1264_v15  ;;  %vm1265_vm6 = vcmp.gt.f32.partialorder %v1262_v14, 0.0 }
 0x2f9   :  { %v1268_v18 = vmul.f32 -0.1, %v1262_v14  ;;  %v1269_v19 = vmul.f32 0.99, %v1264_v15 }
 0x2fa   :  { %v1270_v20 = vadd.f32 %v1267_v17, %v1266_v16 }
 0x2fb   :  { %v1272_v21 = vadd.f32 %v1269_v19, %v1268_v18 }
 0x2fc   :  { %v1271_v22 = vsel %vm1265_vm6, %v1266_v16, %v1270_v20 }
 0x2fd   :  { %v1273_v23 = vsel %vm1265_vm6, %v1268_v18, %v1272_v21  ;;  %v1275_v24 = vmul.f32 0.99, %v1271_v22  ;;  %vm1274_vm7 = vcmp.gt.f32.partialorder %v1271_v22, 0.0 }
 0x2fe   :  { %v1276_v25 = vmul.f32 0.1, %v1273_v23 }
 0x300   :  { %v1277_v26 = vadd.f32 %v1276_v25, %v1275_v24 }
 0x302   :  { %v1278_v27 = vsel %vm1274_vm7, %v1275_v24, %v1277_v26 }
 0x303   :  { %1279 = vst [vmem:[#allocation7] sm:$0x1] %v1278_v27 }
 0x304   :  { %1290 = dma.vmem_to_hbm [thread:$0]  %s1286_s19, 16, %s1288_s22, [#allocation4]  }
 0x305   :  { %1427 = dma.done.wait [#allocation4], 16  }
 0x306   :  { %1428 = vsyncadd [#allocation4], 4294967280 }
 0x307   :  { %1295 = vsyncpa [#allocation3], 1 }
 0x308   :  { %1296 = vsyncpa [#allocation6], 1 }
 0x309   :  { %1297 = vsyncpa [#allocation4], 1 }

</bundles_post_ra>
